<compile_context>
chip_gen: v7x
topology: tpu7x:2x2x1
jax: 0.10.0
libtpu: 0.0.40
codegen_flags: <defaults>
</compile_context>

<pallas_src>
import math

import jax
import jax.numpy as jnp
from jax.experimental import pallas as pl
from jax.experimental.pallas import tpu as pltpu

_VMEM_LIMIT = 32 * 1024 * 1024


# ----------------------------------------------------------------------------
# Small helpers
# ----------------------------------------------------------------------------

def _round_up(x, m):
    return (x + m - 1) // m * m


def _choose_tile(dim, desired, align):
    """Largest convenient tile: full (aligned) dim if small, else a divisor-ish
    tile of `desired` that keeps padding low."""
    padded = _round_up(dim, align)
    if padded <= desired:
        return padded
    for t in (desired, desired // 2, desired // 4):
        if t >= align and padded % t == 0:
            return t
    return desired


def _pad2(x, rows, cols):
    pr, pc = rows - x.shape[0], cols - x.shape[1]
    if pr or pc:
        x = jnp.pad(x, ((0, pr), (0, pc)))
    return x


def _quick_gelu(y):
    # CLIP's QuickGELU: x * sigmoid(1.702 * x)  (sigmoid -> EUP slot).
    return y * jax.nn.sigmoid(1.702 * y)


# ----------------------------------------------------------------------------
# Tiled linear:  y = act(x @ w + b) [+ residual]      (K-tiled, accumulator)
# ----------------------------------------------------------------------------

def _make_linear_kernel(activation, has_bias, has_residual):
    def kernel(*refs):
        x_ref, w_ref = refs[0], refs[1]
        idx = 2
        b_ref = r_ref = None
        if has_bias:
            b_ref = refs[idx]
            idx += 1
        if has_residual:
            r_ref = refs[idx]
            idx += 1
        o_ref = refs[idx]
        acc_ref = refs[idx + 1]

        @pl.when(pl.program_id(2) == 0)
        def _():
            acc_ref[...] = jnp.zeros_like(acc_ref)

        acc_ref[...] += jnp.dot(x_ref[...].astype(jnp.bfloat16), w_ref[...],
                                preferred_element_type=jnp.float32)

        @pl.when(pl.program_id(2) == pl.num_programs(2) - 1)
        def _():
            y = acc_ref[...]
            if has_bias:
                y = y + b_ref[...]
            if activation == "quick_gelu":
                y = _quick_gelu(y)
            if has_residual:
                y = y + r_ref[...]
            o_ref[...] = y.astype(o_ref.dtype)

    return kernel


def pallas_linear(x, w, b=None, activation=None, residual=None,
                  tm=256, tn=512, tk=512):
    """x: (N, K) f32, w: (K, M) bf16/f32, b: (M,), residual: (N, M)."""
    N, K = x.shape
    M = w.shape[1]
    tm = _choose_tile(N, tm, 8)
    tn = _choose_tile(M, tn, 128)
    tk = _choose_tile(K, tk, 128)
    Np, Mp, Kp = _round_up(N, tm), _round_up(M, tn), _round_up(K, tk)

    xp = _pad2(x, Np, Kp)
    wp = _pad2(w.astype(jnp.bfloat16), Kp, Mp)

    in_specs = [pl.BlockSpec((tm, tk), lambda i, j, k: (i, k)),
                pl.BlockSpec((tk, tn), lambda i, j, k: (k, j))]
    args = [xp, wp]
    if b is not None:
        in_specs.append(pl.BlockSpec((1, tn), lambda i, j, k: (0, j)))
        args.append(_pad2(b.astype(jnp.float32).reshape(1, M), 1, Mp))
    if residual is not None:
        in_specs.append(pl.BlockSpec((tm, tn), lambda i, j, k: (i, j)))
        args.append(_pad2(residual, Np, Mp))

    out = pl.pallas_call(
        _make_linear_kernel(activation, b is not None, residual is not None),
        out_shape=jax.ShapeDtypeStruct((Np, Mp), jnp.float32),
        grid=(Np // tm, Mp // tn, Kp // tk),
        in_specs=in_specs,
        out_specs=pl.BlockSpec((tm, tn), lambda i, j, k: (i, j)),
        scratch_shapes=[pltpu.VMEM((tm, tn), jnp.float32)],
        compiler_params=pltpu.CompilerParams(
            dimension_semantics=("parallel", "parallel", "arbitrary"),
            vmem_limit_bytes=_VMEM_LIMIT),
    )(*args)
    return out[:N, :M]


# ----------------------------------------------------------------------------
# Fused LayerNorm + linear:  y = act(LN(x) @ w + b)    (full-K blocks)
# ----------------------------------------------------------------------------

def _make_ln_linear_kernel(activation, has_bias):
    def kernel(*refs):
        x_ref, g_ref, be_ref, w_ref = refs[:4]
        idx = 4
        b_ref = None
        if has_bias:
            b_ref = refs[idx]
            idx += 1
        o_ref = refs[idx]

        x = x_ref[...]                                   # f32 (tm, K)
        mean = jnp.mean(x, axis=-1, keepdims=True)
        var = jnp.mean(jnp.square(x - mean), axis=-1, keepdims=True)
        xn = (x - mean) * jax.lax.rsqrt(var + 1e-5)
        xn = xn * g_ref[...] + be_ref[...]
        y = jnp.dot(xn.astype(jnp.bfloat16), w_ref[...],
                    preferred_element_type=jnp.float32)
        if has_bias:
            y = y + b_ref[...]
        if activation == "quick_gelu":
            y = _quick_gelu(y)
        o_ref[...] = y.astype(o_ref.dtype)

    return kernel


def pallas_ln_linear(x, gamma, beta, w, b=None, activation=None,
                     tm=256, tn=512):
    """y = act(LayerNorm(x) @ w + b).  x: (N, K), w: (K, M)."""
    N, K = x.shape
    M = w.shape[1]
    tm = _choose_tile(N, tm, 8)
    tn = _choose_tile(M, tn, 128)
    Np, Mp = _round_up(N, tm), _round_up(M, tn)

    xp = _pad2(x, Np, K)
    wp = _pad2(w.astype(jnp.bfloat16), K, Mp)

    in_specs = [pl.BlockSpec((tm, K), lambda i, j: (i, 0)),
                pl.BlockSpec((1, K), lambda i, j: (0, 0)),
                pl.BlockSpec((1, K), lambda i, j: (0, 0)),
                pl.BlockSpec((K, tn), lambda i, j: (0, j))]
    args = [xp, gamma.reshape(1, K), beta.reshape(1, K), wp]
    if b is not None:
        in_specs.append(pl.BlockSpec((1, tn), lambda i, j: (0, j)))
        args.append(_pad2(b.astype(jnp.float32).reshape(1, M), 1, Mp))

    out = pl.pallas_call(
        _make_ln_linear_kernel(activation, b is not None),
        out_shape=jax.ShapeDtypeStruct((Np, Mp), jnp.float32),
        grid=(Np // tm, Mp // tn),
        in_specs=in_specs,
        out_specs=pl.BlockSpec((tm, tn), lambda i, j: (i, j)),
        compiler_params=pltpu.CompilerParams(
            dimension_semantics=("parallel", "parallel"),
            vmem_limit_bytes=_VMEM_LIMIT),
    )(*args)
    return out[:N, :M]


# ----------------------------------------------------------------------------
# Row-tiled LayerNorm / L2-norm
# ----------------------------------------------------------------------------

def _layernorm_kernel(x_ref, g_ref, b_ref, o_ref):
    x = x_ref[...]
    mean = jnp.mean(x, axis=-1, keepdims=True)
    var = jnp.mean(jnp.square(x - mean), axis=-1, keepdims=True)
    o_ref[...] = ((x - mean) * jax.lax.rsqrt(var + 1e-5) * g_ref[...]
                  + b_ref[...]).astype(o_ref.dtype)


def pallas_layernorm(x, g, b, tm=1024):
    N, D = x.shape
    tm = _choose_tile(N, tm, 8)
    Np = _round_up(N, tm)
    xp = _pad2(x, Np, D)
    out = pl.pallas_call(
        _layernorm_kernel,
        out_shape=jax.ShapeDtypeStruct((Np, D), jnp.float32),
        grid=(Np // tm,),
        in_specs=[pl.BlockSpec((tm, D), lambda i: (i, 0)),
                  pl.BlockSpec((1, D), lambda i: (0, 0)),
                  pl.BlockSpec((1, D), lambda i: (0, 0))],
        out_specs=pl.BlockSpec((tm, D), lambda i: (i, 0)),
        compiler_params=pltpu.CompilerParams(
            dimension_semantics=("parallel",),
            vmem_limit_bytes=_VMEM_LIMIT),
    )(xp, g.reshape(1, D), b.reshape(1, D))
    return out[:N]


def _l2norm_kernel(x_ref, o_ref):
    x = x_ref[...]
    n = jnp.sqrt(jnp.sum(x * x, axis=-1, keepdims=True))
    o_ref[...] = (x / n).astype(o_ref.dtype)


def pallas_l2norm(x, tm=1024):
    N, D = x.shape
    tm = _choose_tile(N, tm, 8)
    Np = _round_up(N, tm)
    xp = _pad2(x, Np, D)
    out = pl.pallas_call(
        _l2norm_kernel,
        out_shape=jax.ShapeDtypeStruct((Np, D), jnp.float32),
        grid=(Np // tm,),
        in_specs=[pl.BlockSpec((tm, D), lambda i: (i, 0))],
        out_specs=pl.BlockSpec((tm, D), lambda i: (i, 0)),
        compiler_params=pltpu.CompilerParams(
            dimension_semantics=("parallel",),
            vmem_limit_bytes=_VMEM_LIMIT),
    )(xp)
    return out[:N]


# ----------------------------------------------------------------------------
# Attention: grid over batch, ALL heads per block, in-kernel causal mask
# ----------------------------------------------------------------------------

def _make_attn_kernel(scale, causal):
    def kernel(q_ref, k_ref, v_ref, o_ref):
        q = q_ref[0].astype(jnp.bfloat16)        # (H, S, Dh)
        k = k_ref[0].astype(jnp.bfloat16)
        v = v_ref[0].astype(jnp.bfloat16)
        s = jnp.einsum("hqd,hkd->hqk", q, k,
                       preferred_element_type=jnp.float32) * scale
        if causal:
            S = s.shape[-1]
            qi = jax.lax.broadcasted_iota(jnp.int32, (S, S), 0)
            kj = jax.lax.broadcasted_iota(jnp.int32, (S, S), 1)
            s = jnp.where((kj <= qi)[None, :, :], s, -1e30)
        s = s - jnp.max(s, axis=-1, keepdims=True)
        p = jnp.exp(s)
        p = p * pl.reciprocal(jnp.sum(p, axis=-1, keepdims=True), approx=True)
        o = jnp.einsum("hqk,hkd->hqd", p.astype(jnp.bfloat16), v,
                       preferred_element_type=jnp.float32)
        o_ref[0] = o.astype(o_ref.dtype)

    return kernel


def pallas_attention(q, k, v, causal):
    """q, k, v: (N, H, S, Dh) f32 -> (N, H, S, Dh) f32."""
    N, H, S, Dh = q.shape
    scale = 1.0 / math.sqrt(Dh)
    return pl.pallas_call(
        _make_attn_kernel(scale, causal),
        out_shape=jax.ShapeDtypeStruct((N, H, S, Dh), jnp.float32),
        grid=(N,),
        in_specs=[pl.BlockSpec((1, H, S, Dh), lambda i: (i, 0, 0, 0))] * 3,
        out_specs=pl.BlockSpec((1, H, S, Dh), lambda i: (i, 0, 0, 0)),
        compiler_params=pltpu.CompilerParams(
            dimension_semantics=("parallel",),
            vmem_limit_bytes=_VMEM_LIMIT),
    )(q, k, v)


# ----------------------------------------------------------------------------
# CLIP-like model built on top of the kernels
# ----------------------------------------------------------------------------

def residual_block(x, p, heads, causal):
    """x += attn(ln1(x)); x += mlp(ln2(x)).  Everything hot-path fused."""
    N, S, W = x.shape
    Dh = W // heads
    x_flat = x.reshape(N * S, W)

    # Fused LN1 + QKV projection (one matmul over the concatenated weight).
    qkv = pallas_ln_linear(x_flat, p["ln1_g"], p["ln1_b"],
                           p["w_qkv"], p["b_qkv"])                # (N*S, 3W)
    qkv = qkv.reshape(N, S, 3, heads, Dh)
    q = qkv[:, :, 0].transpose(0, 2, 1, 3)                        # (N, H, S, Dh)
    k = qkv[:, :, 1].transpose(0, 2, 1, 3)
    v = qkv[:, :, 2].transpose(0, 2, 1, 3)

    attn = pallas_attention(q, k, v, causal)                      # (N, H, S, Dh)
    attn = attn.transpose(0, 2, 1, 3).reshape(N * S, W)

    # Out-projection with fused bias + residual add.
    x_flat = pallas_linear(attn, p["wo"], p["bo"], residual=x_flat)

    # Fused LN2 + MLP1 (QuickGELU), then MLP2 with fused residual add.
    h = pallas_ln_linear(x_flat, p["ln2_g"], p["ln2_b"],
                         p["mlp_w1"], p["mlp_b1"], activation="quick_gelu")
    x_flat = pallas_linear(h, p["mlp_w2"], p["mlp_b2"], residual=x_flat)
    return x_flat.reshape(N, S, W)


def encode_image(frames, p, cfg):
    """frames: (BT, C, H, W) -> (BT, embed_dim)."""
    BT, C, H, W_img = frames.shape
    ps, width, heads = cfg["patch"], cfg["width"], cfg["heads"]
    Hp, Wp = H // ps, W_img // ps

    # Patchify (equivalent to strided conv with kernel = stride = patch).
    x = (frames.reshape(BT, C, Hp, ps, Wp, ps)
               .transpose(0, 2, 4, 1, 3, 5)
               .reshape(BT * Hp * Wp, C * ps * ps))
    x = pallas_linear(x, p["patch_w"])             # CLIP conv1 has no bias
    x = x.reshape(BT, Hp * Wp, width)

    cls = jnp.broadcast_to(p["cls"], (BT, 1, width))
    x = jnp.concatenate([cls, x], axis=1) + p["pos"][None]
    S = x.shape[1]

    x = pallas_layernorm(x.reshape(BT * S, width),
                         p["ln_pre_g"], p["ln_pre_b"]).reshape(BT, S, width)

    for blk in p["blocks"]:
        x = residual_block(x, blk, heads, causal=False)

    # CLS token -> fused ln_post + projection (CLIP proj has no bias).
    return pallas_ln_linear(x[:, 0, :], p["ln_post_g"], p["ln_post_b"],
                            p["proj_w"])


def encode_text(tokens, p, cfg):
    """tokens: (B, L) int32 -> (B, embed_dim)."""
    B, L = tokens.shape
    x = p["tok_emb"][tokens] + p["text_pos"][None]          # (B, L, W)

    for blk in p["blocks"]:
        x = residual_block(x, blk, cfg["text_heads"], causal=True)

    # EOT pooling first (LN is row-wise so pool-then-LN == LN-then-pool),
    # then fused ln_final + text projection (no bias in CLIP).
    eot = jnp.argmax(tokens, axis=-1)
    pooled = x[jnp.arange(B), eot]                           # (B, W)
    return pallas_ln_linear(pooled, p["ln_final_g"], p["ln_final_b"],
                            p["text_proj_w"])


def _forward_impl(video_frames, text_tokens, params, cfg):
    B, C, T, H, W = video_frames.shape
    frames = (jnp.transpose(video_frames, (0, 2, 1, 3, 4))
                 .reshape(B * T, C, H, W))

    # clip_preprocess: per-channel normalization with CLIP mean/std.
    # TODO(synk): PIL resize-to-224 / to_pil_image has no Pallas equivalent;
    # inputs are assumed already at model resolution.
    mean = jnp.array([0.48145466, 0.4578275, 0.40821073],
                     jnp.float32).reshape(1, C, 1, 1)
    std = jnp.array([0.26862954, 0.26130258, 0.27577711],
                    jnp.float32).reshape(1, C, 1, 1)
    frames = (frames - mean) / std

    frame_features = encode_image(frames, params["visual"], cfg)
    frame_features = frame_features.reshape(B, T, cfg["embed_dim"])

    text_features = encode_text(text_tokens, params["text"], cfg)

    # On-device NaN / Inf / zero-norm checks (single host transfer later).
    norms_sq = jnp.sum(text_features * text_features, axis=-1)
    flags_pre = jnp.stack([jnp.any(jnp.isnan(text_features)),
                           jnp.any(jnp.isinf(text_features)),
                           jnp.any(norms_sq == 0.0)])

    text_features = pallas_l2norm(text_features)

    flags_post = jnp.stack([jnp.any(jnp.isnan(text_features)),
                            jnp.any(jnp.isinf(text_features))])
    flags = jnp.concatenate([flags_pre, flags_post])
    return frame_features, text_features, flags


_FWD_CACHE = {}


def _get_forward(cfg):
    key = tuple(sorted(cfg.items()))
    if key not in _FWD_CACHE:
        _FWD_CACHE[key] = jax.jit(
            lambda vf, tt, pr: _forward_impl(vf, tt, pr, cfg))
    return _FWD_CACHE[key]


def video_feature_extractor(video_frames, text_tokens, params, cfg):
    """Mirrors VideoFeatureExtractor.forward.

    video_frames: (B, C, T, H, W) float32   (NCTHW, as in PyTorch)
    text_tokens:  (B, L) int32              (pre-tokenized text)
    returns (frame_features (B, T, D), text_features (B, D) L2-normalized)
    """
    fwd = _get_forward(cfg)
    frame_features, text_features, flags = fwd(video_frames, text_tokens,
                                               params)
    # Single device->host sync for all sanity checks (original semantics).
    f = jax.device_get(flags)
    if f[0]:
        raise ValueError("NaN detected in text_features before normalization!")
    if f[1]:
        raise ValueError("Inf detected in text_features before normalization!")
    if f[2]:
        raise ValueError("Zero norm detected in text_features during normalization!")
    if f[3]:
        raise ValueError("NaN detected in text_features after normalization!")
    if f[4]:
        raise ValueError("Inf detected in text_features after normalization!")
    return frame_features, text_features


# ----------------------------------------------------------------------------
# Deterministic parameter init (synthetic CLIP weights; matmul weights bf16)
# ----------------------------------------------------------------------------

def _init_block(key, width, scale=0.02):
    ks = jax.random.split(key, 4)
    hid = 4 * width
    bf = jnp.bfloat16
    return dict(
        ln1_g=jnp.ones((width,), jnp.float32),
        ln1_b=jnp.zeros((width,), jnp.float32),
        w_qkv=(scale * jax.random.normal(ks[0], (width, 3 * width),
                                         jnp.float32)).astype(bf),
        b_qkv=jnp.zeros((3 * width,), jnp.float32),
        wo=(scale * jax.random.normal(ks[1], (width, width),
                                      jnp.float32)).astype(bf),
        bo=jnp.zeros((width,), jnp.float32),
        ln2_g=jnp.ones((width,), jnp.float32),
        ln2_b=jnp.zeros((width,), jnp.float32),
        mlp_w1=(scale * jax.random.normal(ks[2], (width, hid),
                                          jnp.float32)).astype(bf),
        mlp_b1=jnp.zeros((hid,), jnp.float32),
        mlp_w2=(scale * jax.random.normal(ks[3], (hid, width),
                                          jnp.float32)).astype(bf),
        mlp_b2=jnp.zeros((width,), jnp.float32),
    )


def init_params(key, cfg):
    C, ps, width, D = cfg["channels"], cfg["patch"], cfg["width"], cfg["embed_dim"]
    Hp = cfg["image_size"] // ps
    S_v = Hp * Hp + 1
    tw, L, V = cfg["text_width"], cfg["context_len"], cfg["vocab"]
    scale = 0.02
    bf = jnp.bfloat16

    kv, kt = jax.random.split(key)
    kvs = jax.random.split(kv, 4 + cfg["layers"])
    kts = jax.random.split(kt, 4 + cfg["text_layers"])

    visual = dict(
        patch_w=(scale * jax.random.normal(kvs[0], (C * ps * ps, width),
                                           jnp.float32)).astype(bf),
        cls=scale * jax.random.normal(kvs[1], (width,), jnp.float32),
        pos=scale * jax.random.normal(kvs[2], (S_v, width), jnp.float32),
        ln_pre_g=jnp.ones((width,), jnp.float32),
        ln_pre_b=jnp.zeros((width,), jnp.float32),
        blocks=[_init_block(kvs[4 + i], width) for i in range(cfg["layers"])],
        ln_post_g=jnp.ones((width,), jnp.float32),
        ln_post_b=jnp.zeros((width,), jnp.float32),
        proj_w=(scale * jax.random.normal(kvs[3], (width, D),
                                          jnp.float32)).astype(bf),
    )
    text = dict(
        tok_emb=scale * jax.random.normal(kts[0], (V, tw), jnp.float32),
        text_pos=scale * jax.random.normal(kts[1], (L, tw), jnp.float32),
        blocks=[_init_block(kts[4 + i], tw) for i in range(cfg["text_layers"])],
        ln_final_g=jnp.ones((tw,), jnp.float32),
        ln_final_b=jnp.zeros((tw,), jnp.float32),
        text_proj_w=(scale * jax.random.normal(kts[2], (tw, D),
                                               jnp.float32)).astype(bf),
    )
    return dict(visual=visual, text=text)


# ----------------------------------------------------------------------------
# Demo
# ----------------------------------------------------------------------------

if __name__ == "__main__":
    cfg = dict(
        channels=3, image_size=32, patch=16, width=64, heads=2, layers=1,
        embed_dim=32,
        vocab=64, context_len=8, text_width=64, text_heads=2, text_layers=1,
    )

    key = jax.random.PRNGKey(0)
    k_params, k_video, k_text = jax.random.split(key, 3)

    params = init_params(k_params, cfg)

    B, C, T, H, W = 2, 3, 4, 32, 32
    video_frames = jax.random.uniform(k_video, (B, C, T, H, W), jnp.float32)

    # TODO(synk): clip.tokenize (string tokenization) has no Pallas equivalent;
    # use deterministic pre-tokenized ids with an EOT (= vocab-1) last token.
    L = cfg["context_len"]
    text_tokens = jax.random.randint(k_text, (B, L), 1, cfg["vocab"] - 2)
    text_tokens = text_tokens.at[:, -1].set(cfg["vocab"] - 1).astype(jnp.int32)

    frame_features, text_features = video_feature_extractor(
        video_frames, text_tokens, params, cfg)
    jax.block_until_ready((frame_features, text_features))

    assert frame_features.shape == (B, T, cfg["embed_dim"])
    assert text_features.shape == (B, cfg["embed_dim"])
    assert bool(jnp.allclose(jnp.linalg.norm(text_features, axis=-1), 1.0,
                             atol=1e-4))
    print("KERNEL_OK")
</pallas_src>

<mosaic_0001>
module attributes {stable_mosaic.version = 11 : i64} {
  func.func @kernel(%arg0: i32, %arg1: i32, %arg2: i32, %arg3: memref<32x256xf32, #tpu.memory_space<vmem>>, %arg4: memref<256x128xbf16, #tpu.memory_space<vmem>>, %arg5: memref<32x128xf32, #tpu.memory_space<vmem>>, %arg6: memref<32x128xf32, #tpu.memory_space<vmem>>) attributes {dimension_semantics = [#tpu.dimension_semantics<parallel>, #tpu.dimension_semantics<parallel>, #tpu.dimension_semantics<arbitrary>], iteration_bounds = array<i64: 1, 1, 3>, scalar_prefetch = 0 : i64, scratch_operands = 1 : i64, tpu.core_type = #tpu.core_type<tc>, window_params = [{transform_indices = @transform_0, window_bounds = array<i64: 32, 256>}, {transform_indices = @transform_1, window_bounds = array<i64: 256, 128>}, {transform_indices = @transform_2, window_bounds = array<i64: 32, 128>}]} {
    %c0_i32 = arith.constant 0 : i32
    %0 = arith.cmpi eq, %arg2, %c0_i32 : i32
    %1 = arith.extui %0 : i1 to i32
    %c0_i32_0 = arith.constant 0 : i32
    %2 = arith.cmpi ne, %1, %c0_i32_0 : i32
    scf.if %2 {
      %cst_9 = arith.constant 0.000000e+00 : f32
      %13 = vector.broadcast %cst_9 : f32 to vector<32x128xf32>
      %c0_10 = arith.constant 0 : index
      %c0_11 = arith.constant 0 : index
      %14 = vector.load %arg6[%c0_10, %c0_11] : memref<32x128xf32, #tpu.memory_space<vmem>>, vector<32x128xf32>
      tpu.vector_store %arg6[%c0_10, %c0_11], %13 {strides = array<i32>} : memref<32x128xf32, #tpu.memory_space<vmem>>, vector<32x128xf32>,
    } else {
    }
    %c0 = arith.constant 0 : index
    %c0_1 = arith.constant 0 : index
    %3 = vector.load %arg6[%c0, %c0_1] : memref<32x128xf32, #tpu.memory_space<vmem>>, vector<32x128xf32>
    %c0_2 = arith.constant 0 : index
    %c0_3 = arith.constant 0 : index
    %4 = vector.load %arg3[%c0_2, %c0_3] : memref<32x256xf32, #tpu.memory_space<vmem>>, vector<32x256xf32>
    %5 = arith.truncf %4 : vector<32x256xf32> to vector<32x256xbf16>
    %c0_4 = arith.constant 0 : index
    %c0_5 = arith.constant 0 : index
    %6 = vector.load %arg4[%c0_4, %c0_5] : memref<256x128xbf16, #tpu.memory_space<vmem>>, vector<256x128xbf16>
    %cst = arith.constant dense<0.000000e+00> : vector<32x128xf32>
    %7 = tpu.matmul %5, %6, %cst {dimension_numbers = #tpu.dot_dimension_numbers<[1], [0], [0], [1], [0, 0, 1, 1], [], []>} : vector<32x256xbf16>, vector<256x128xbf16>, vector<32x128xf32> -> vector<32x128xf32>
    %8 = arith.addf %3, %7 : vector<32x128xf32>
    %c0_6 = arith.constant 0 : index
    %c0_7 = arith.constant 0 : index
    %9 = vector.load %arg6[%c0_6, %c0_7] : memref<32x128xf32, #tpu.memory_space<vmem>>, vector<32x128xf32>
    tpu.vector_store %arg6[%c0_6, %c0_7], %8 {strides = array<i32>} : memref<32x128xf32, #tpu.memory_space<vmem>>, vector<32x128xf32>,
    %c2_i32 = arith.constant 2 : i32
    %10 = arith.cmpi eq, %arg2, %c2_i32 : i32
    %11 = arith.extui %10 : i1 to i32
    %c0_i32_8 = arith.constant 0 : i32
    %12 = arith.cmpi ne, %11, %c0_i32_8 : i32
    scf.if %12 {
      %c0_9 = arith.constant 0 : index
      %c0_10 = arith.constant 0 : index
      %13 = vector.load %arg6[%c0_9, %c0_10] : memref<32x128xf32, #tpu.memory_space<vmem>>, vector<32x128xf32>
      %c0_11 = arith.constant 0 : index
      %c0_12 = arith.constant 0 : index
      %14 = vector.load %arg5[%c0_11, %c0_12] : memref<32x128xf32, #tpu.memory_space<vmem>>, vector<32x128xf32>
      tpu.vector_store %arg5[%c0_11, %c0_12], %13 {strides = array<i32>} : memref<32x128xf32, #tpu.memory_space<vmem>>, vector<32x128xf32>,
    } else {
    }
    return
  }
  func.func @transform_0(%arg0: i32, %arg1: i32, %arg2: i32) -> (i32, i32) {
    %c0_i32 = arith.constant 0 : i32
    return %arg0, %arg2 : i32, i32
  }
  func.func @transform_1(%arg0: i32, %arg1: i32, %arg2: i32) -> (i32, i32) {
    %c0_i32 = arith.constant 0 : i32
    return %arg2, %arg1 : i32, i32
  }
  func.func @transform_2(%arg0: i32, %arg1: i32, %arg2: i32) -> (i32, i32) {
    %c0_i32 = arith.constant 0 : i32
    return %arg0, %arg1 : i32, i32
  }
}

module attributes {stable_mosaic.version = 11 : i64} {
  func.func @_layernorm_kernel(%arg0: i32, %arg1: memref<40x64xf32, #tpu.memory_space<vmem>>, %arg2: memref<1x64xf32, #tpu.memory_space<vmem>>, %arg3: memref<1x64xf32, #tpu.memory_space<vmem>>, %arg4: memref<40x64xf32, #tpu.memory_space<vmem>>) attributes {dimension_semantics = [#tpu.dimension_semantics<parallel>], iteration_bounds = array<i64: 1>, scalar_prefetch = 0 : i64, scratch_operands = 0 : i64, tpu.core_type = #tpu.core_type<tc>, window_params = [{transform_indices = @transform_0, window_bounds = array<i64: 40, 64>}, {pipeline_mode = #tpu.pipeline_mode<synchronous>, transform_indices = @transform_1, window_bounds = array<i64: 1, 64>}, {pipeline_mode = #tpu.pipeline_mode<synchronous>, transform_indices = @transform_2, window_bounds = array<i64: 1, 64>}, {transform_indices = @transform_3, window_bounds = array<i64: 40, 64>}]} {
    %c0 = arith.constant 0 : index
    %c0_0 = arith.constant 0 : index
    %0 = vector.load %arg1[%c0, %c0_0] : memref<40x64xf32, #tpu.memory_space<vmem>>, vector<40x64xf32>
    %cst = arith.constant dense<0.000000e+00> : vector<40xf32>
    %1 = vector.multi_reduction <add>, %0, %cst [1] : vector<40x64xf32> to vector<40xf32>
    %2 = vector.shape_cast %1 : vector<40xf32> to vector<40x1xf32>
    %cst_1 = arith.constant 6.400000e+01 : f32
    %3 = vector.broadcast %cst_1 : f32 to vector<40x1xf32>
    %4 = arith.divf %2, %3 : vector<40x1xf32>
    %5 = vector.broadcast %4 : vector<40x1xf32> to vector<40x64xf32>
    %6 = arith.subf %0, %5 : vector<40x64xf32>
    %7 = arith.mulf %6, %6 : vector<40x64xf32>
    %cst_2 = arith.constant dense<0.000000e+00> : vector<40xf32>
    %8 = vector.multi_reduction <add>, %7, %cst_2 [1] : vector<40x64xf32> to vector<40xf32>
    %9 = vector.shape_cast %8 : vector<40xf32> to vector<40x1xf32>
    %cst_3 = arith.constant 6.400000e+01 : f32
    %10 = vector.broadcast %cst_3 : f32 to vector<40x1xf32>
    %11 = arith.divf %9, %10 : vector<40x1xf32>
    %12 = vector.broadcast %4 : vector<40x1xf32> to vector<40x64xf32>
    %13 = arith.subf %0, %12 : vector<40x64xf32>
    %cst_4 = arith.constant 9.99999974E-6 : f32
    %14 = vector.broadcast %cst_4 : f32 to vector<40x1xf32>
    %15 = arith.addf %11, %14 : vector<40x1xf32>
    %16 = math.rsqrt %15 : vector<40x1xf32>
    %17 = vector.broadcast %16 : vector<40x1xf32> to vector<40x64xf32>
    %18 = arith.mulf %13, %17 : vector<40x64xf32>
    %c0_5 = arith.constant 0 : index
    %c0_6 = arith.constant 0 : index
    %19 = vector.load %arg2[%c0_5, %c0_6] : memref<1x64xf32, #tpu.memory_space<vmem>>, vector<1x64xf32>
    %20 = vector.broadcast %19 : vector<1x64xf32> to vector<40x64xf32>
    %21 = arith.mulf %18, %20 : vector<40x64xf32>
    %c0_7 = arith.constant 0 : index
    %c0_8 = arith.constant 0 : index
    %22 = vector.load %arg3[%c0_7, %c0_8] : memref<1x64xf32, #tpu.memory_space<vmem>>, vector<1x64xf32>
    %23 = vector.broadcast %22 : vector<1x64xf32> to vector<40x64xf32>
    %24 = arith.addf %21, %23 : vector<40x64xf32>
    %c0_9 = arith.constant 0 : index
    %c0_10 = arith.constant 0 : index
    %25 = vector.load %arg4[%c0_9, %c0_10] : memref<40x64xf32, #tpu.memory_space<vmem>>, vector<40x64xf32>
    tpu.vector_store %arg4[%c0_9, %c0_10], %24 {strides = array<i32>} : memref<40x64xf32, #tpu.memory_space<vmem>>, vector<40x64xf32>,
    return
  }
  func.func @transform_0(%arg0: i32) -> (i32, i32) {
    %c0_i32 = arith.constant 0 : i32
    %c0_i32_0 = arith.constant 0 : i32
    return %arg0, %c0_i32 : i32, i32
  }
  func.func @transform_1(%arg0: i32) -> (i32, i32) {
    %c0_i32 = arith.constant 0 : i32
    %c0_i32_0 = arith.constant 0 : i32
    %c0_i32_1 = arith.constant 0 : i32
    return %c0_i32, %c0_i32_0 : i32, i32
  }
  func.func @transform_2(%arg0: i32) -> (i32, i32) {
    %c0_i32 = arith.constant 0 : i32
    %c0_i32_0 = arith.constant 0 : i32
    %c0_i32_1 = arith.constant 0 : i32
    return %c0_i32, %c0_i32_0 : i32, i32
  }
  func.func @transform_3(%arg0: i32) -> (i32, i32) {
    %c0_i32 = arith.constant 0 : i32
    %c0_i32_0 = arith.constant 0 : i32
    return %arg0, %c0_i32 : i32, i32
  }
}

module attributes {stable_mosaic.version = 11 : i64} {
  func.func @kernel(%arg0: i32, %arg1: i32, %arg2: memref<40x64xf32, #tpu.memory_space<vmem>>, %arg3: memref<1x64xf32, #tpu.memory_space<vmem>>, %arg4: memref<1x64xf32, #tpu.memory_space<vmem>>, %arg5: memref<64x256xbf16, #tpu.memory_space<vmem>>, %arg6: memref<1x256xf32, #tpu.memory_space<vmem>>, %arg7: memref<40x256xf32, #tpu.memory_space<vmem>>) attributes {dimension_semantics = [#tpu.dimension_semantics<parallel>, #tpu.dimension_semantics<parallel>], iteration_bounds = array<i64: 1, 1>, scalar_prefetch = 0 : i64, scratch_operands = 0 : i64, tpu.core_type = #tpu.core_type<tc>, window_params = [{transform_indices = @transform_0, window_bounds = array<i64: 40, 64>}, {pipeline_mode = #tpu.pipeline_mode<synchronous>, transform_indices = @transform_1, window_bounds = array<i64: 1, 64>}, {pipeline_mode = #tpu.pipeline_mode<synchronous>, transform_indices = @transform_2, window_bounds = array<i64: 1, 64>}, {transform_indices = @transform_3, window_bounds = array<i64: 64, 256>}, {transform_indices = @transform_4, window_bounds = array<i64: 1, 256>}, {transform_indices = @transform_5, window_bounds = array<i64: 40, 256>}]} {
    %c0 = arith.constant 0 : index
    %c0_0 = arith.constant 0 : index
    %0 = vector.load %arg2[%c0, %c0_0] : memref<40x64xf32, #tpu.memory_space<vmem>>, vector<40x64xf32>
    %cst = arith.constant dense<0.000000e+00> : vector<40xf32>
    %1 = vector.multi_reduction <add>, %0, %cst [1] : vector<40x64xf32> to vector<40xf32>
    %2 = vector.shape_cast %1 : vector<40xf32> to vector<40x1xf32>
    %cst_1 = arith.constant 6.400000e+01 : f32
    %3 = vector.broadcast %cst_1 : f32 to vector<40x1xf32>
    %4 = arith.divf %2, %3 : vector<40x1xf32>
    %5 = vector.broadcast %4 : vector<40x1xf32> to vector<40x64xf32>
    %6 = arith.subf %0, %5 : vector<40x64xf32>
    %7 = arith.mulf %6, %6 : vector<40x64xf32>
    %cst_2 = arith.constant dense<0.000000e+00> : vector<40xf32>
    %8 = vector.multi_reduction <add>, %7, %cst_2 [1] : vector<40x64xf32> to vector<40xf32>
    %9 = vector.shape_cast %8 : vector<40xf32> to vector<40x1xf32>
    %cst_3 = arith.constant 6.400000e+01 : f32
    %10 = vector.broadcast %cst_3 : f32 to vector<40x1xf32>
    %11 = arith.divf %9, %10 : vector<40x1xf32>
    %12 = vector.broadcast %4 : vector<40x1xf32> to vector<40x64xf32>
    %13 = arith.subf %0, %12 : vector<40x64xf32>
    %cst_4 = arith.constant 9.99999974E-6 : f32
    %14 = vector.broadcast %cst_4 : f32 to vector<40x1xf32>
    %15 = arith.addf %11, %14 : vector<40x1xf32>
    %16 = math.rsqrt %15 : vector<40x1xf32>
    %17 = vector.broadcast %16 : vector<40x1xf32> to vector<40x64xf32>
    %18 = arith.mulf %13, %17 : vector<40x64xf32>
    %c0_5 = arith.constant 0 : index
    %c0_6 = arith.constant 0 : index
    %19 = vector.load %arg3[%c0_5, %c0_6] : memref<1x64xf32, #tpu.memory_space<vmem>>, vector<1x64xf32>
    %20 = vector.broadcast %19 : vector<1x64xf32> to vector<40x64xf32>
    %21 = arith.mulf %18, %20 : vector<40x64xf32>
    %c0_7 = arith.constant 0 : index
    %c0_8 = arith.constant 0 : index
    %22 = vector.load %arg4[%c0_7, %c0_8] : memref<1x64xf32, #tpu.memory_space<vmem>>, vector<1x64xf32>
    %23 = vector.broadcast %22 : vector<1x64xf32> to vector<40x64xf32>
    %24 = arith.addf %21, %23 : vector<40x64xf32>
    %25 = arith.truncf %24 : vector<40x64xf32> to vector<40x64xbf16>
    %c0_9 = arith.constant 0 : index
    %c0_10 = arith.constant 0 : index
    %26 = vector.load %arg5[%c0_9, %c0_10] : memref<64x256xbf16, #tpu.memory_space<vmem>>, vector<64x256xbf16>
    %cst_11 = arith.constant dense<0.000000e+00> : vector<40x256xf32>
    %27 = tpu.matmul %25, %26, %cst_11 {dimension_numbers = #tpu.dot_dimension_numbers<[1], [0], [0], [1], [0, 0, 1, 1], [], []>} : vector<40x64xbf16>, vector<64x256xbf16>, vector<40x256xf32> -> vector<40x256xf32>
    %c0_12 = arith.constant 0 : index
    %c0_13 = arith.constant 0 : index
    %28 = vector.load %arg6[%c0_12, %c0_13] : memref<1x256xf32, #tpu.memory_space<vmem>>, vector<1x256xf32>
    %29 = vector.broadcast %28 : vector<1x256xf32> to vector<40x256xf32>
    %30 = arith.addf %27, %29 : vector<40x256xf32>
    %c0_14 = arith.constant 0 : index
    %c0_15 = arith.constant 0 : index
    %31 = vector.load %arg7[%c0_14, %c0_15] : memref<40x256xf32, #tpu.memory_space<vmem>>, vector<40x256xf32>
    tpu.vector_store %arg7[%c0_14, %c0_15], %30 {strides = array<i32>} : memref<40x256xf32, #tpu.memory_space<vmem>>, vector<40x256xf32>,
    return
  }
  func.func @transform_0(%arg0: i32, %arg1: i32) -> (i32, i32) {
    %c0_i32 = arith.constant 0 : i32
    %c0_i32_0 = arith.constant 0 : i32
    return %arg0, %c0_i32 : i32, i32
  }
  func.func @transform_1(%arg0: i32, %arg1: i32) -> (i32, i32) {
    %c0_i32 = arith.constant 0 : i32
    %c0_i32_0 = arith.constant 0 : i32
    %c0_i32_1 = arith.constant 0 : i32
    return %c0_i32, %c0_i32_0 : i32, i32
  }
  func.func @transform_2(%arg0: i32, %arg1: i32) -> (i32, i32) {
    %c0_i32 = arith.constant 0 : i32
    %c0_i32_0 = arith.constant 0 : i32
    %c0_i32_1 = arith.constant 0 : i32
    return %c0_i32, %c0_i32_0 : i32, i32
  }
  func.func @transform_3(%arg0: i32, %arg1: i32) -> (i32, i32) {
    %c0_i32 = arith.constant 0 : i32
    %c0_i32_0 = arith.constant 0 : i32
    return %c0_i32, %arg1 : i32, i32
  }
  func.func @transform_4(%arg0: i32, %arg1: i32) -> (i32, i32) {
    %c0_i32 = arith.constant 0 : i32
    %c0_i32_0 = arith.constant 0 : i32
    return %c0_i32, %arg1 : i32, i32
  }
  func.func @transform_5(%arg0: i32, %arg1: i32) -> (i32, i32) {
    %c0_i32 = arith.constant 0 : i32
    return %arg0, %arg1 : i32, i32
  }
}

module attributes {stable_mosaic.version = 11 : i64} {
  func.func @kernel(%arg0: i32, %arg1: memref<1x2x5x32xf32, #tpu.memory_space<vmem>>, %arg2: memref<1x2x5x32xf32, #tpu.memory_space<vmem>>, %arg3: memref<1x2x5x32xf32, #tpu.memory_space<vmem>>, %arg4: memref<1x2x5x32xf32, #tpu.memory_space<vmem>>) attributes {dimension_semantics = [#tpu.dimension_semantics<parallel>], iteration_bounds = array<i64: 8>, scalar_prefetch = 0 : i64, scratch_operands = 0 : i64, tpu.core_type = #tpu.core_type<tc>, window_params = [{transform_indices = @transform_0, window_bounds = array<i64: 1, 2, 5, 32>}, {transform_indices = @transform_1, window_bounds = array<i64: 1, 2, 5, 32>}, {transform_indices = @transform_2, window_bounds = array<i64: 1, 2, 5, 32>}, {transform_indices = @transform_3, window_bounds = array<i64: 1, 2, 5, 32>}]} {
    %c0 = arith.constant 0 : index
    %c0_0 = arith.constant 0 : index
    %c0_1 = arith.constant 0 : index
    %c0_2 = arith.constant 0 : index
    %0 = vector.load %arg1[%c0, %c0_0, %c0_1, %c0_2] : memref<1x2x5x32xf32, #tpu.memory_space<vmem>>, vector<1x2x5x32xf32>
    %1 = vector.shape_cast %0 : vector<1x2x5x32xf32> to vector<2x5x32xf32>
    %2 = arith.truncf %1 : vector<2x5x32xf32> to vector<2x5x32xbf16>
    %c0_3 = arith.constant 0 : index
    %c0_4 = arith.constant 0 : index
    %c0_5 = arith.constant 0 : index
    %c0_6 = arith.constant 0 : index
    %3 = vector.load %arg2[%c0_3, %c0_4, %c0_5, %c0_6] : memref<1x2x5x32xf32, #tpu.memory_space<vmem>>, vector<1x2x5x32xf32>
    %4 = vector.shape_cast %3 : vector<1x2x5x32xf32> to vector<2x5x32xf32>
    %5 = arith.truncf %4 : vector<2x5x32xf32> to vector<2x5x32xbf16>
    %c0_7 = arith.constant 0 : index
    %c0_8 = arith.constant 0 : index
    %c0_9 = arith.constant 0 : index
    %c0_10 = arith.constant 0 : index
    %6 = vector.load %arg3[%c0_7, %c0_8, %c0_9, %c0_10] : memref<1x2x5x32xf32, #tpu.memory_space<vmem>>, vector<1x2x5x32xf32>
    %7 = vector.shape_cast %6 : vector<1x2x5x32xf32> to vector<2x5x32xf32>
    %8 = arith.truncf %7 : vector<2x5x32xf32> to vector<2x5x32xbf16>
    "tpu.trace_start"() <{level = 10 : i32, message = "hqd,hkd->hqk"}> : () -> ()
    %cst = arith.constant dense<0.000000e+00> : vector<2x5x5xf32>
    %9 = tpu.matmul %2, %5, %cst {dimension_numbers = #tpu.dot_dimension_numbers<[2], [2], [1], [1], [0, 0, 0, 1, 1, 1], [0], [0]>} : vector<2x5x32xbf16>, vector<2x5x32xbf16>, vector<2x5x5xf32> -> vector<2x5x5xf32>
    "tpu.trace_stop"() : () -> ()
    %cst_11 = arith.constant 0.176776692 : f32
    %10 = vector.broadcast %cst_11 : f32 to vector<2x5x5xf32>
    %11 = arith.mulf %9, %10 : vector<2x5x5xf32>
    %cst_12 = arith.constant dense<0xFF800000> : vector<2x5xf32>
    %12 = vector.multi_reduction <maximumf>, %11, %cst_12 [2] : vector<2x5x5xf32> to vector<2x5xf32>
    %13 = vector.shape_cast %12 : vector<2x5xf32> to vector<2x5x1xf32>
    %14 = vector.broadcast %13 : vector<2x5x1xf32> to vector<2x5x5xf32>
    %15 = arith.subf %11, %14 : vector<2x5x5xf32>
    %16 = math.exp %15 : vector<2x5x5xf32>
    %cst_13 = arith.constant dense<0.000000e+00> : vector<2x5xf32>
    %17 = vector.multi_reduction <add>, %16, %cst_13 [2] : vector<2x5x5xf32> to vector<2x5xf32>
    %18 = vector.shape_cast %17 : vector<2x5xf32> to vector<2x5x1xf32>
    %19 = tpu.reciprocal %18 {approx = true} : vector<2x5x1xf32> -> vector<2x5x1xf32>
    %20 = vector.broadcast %19 : vector<2x5x1xf32> to vector<2x5x5xf32>
    %21 = arith.mulf %16, %20 : vector<2x5x5xf32>
    %22 = arith.truncf %21 : vector<2x5x5xf32> to vector<2x5x5xbf16>
    "tpu.trace_start"() <{level = 10 : i32, message = "hqk,hkd->hqd"}> : () -> ()
    %cst_14 = arith.constant dense<0.000000e+00> : vector<2x5x32xf32>
    %23 = tpu.matmul %22, %8, %cst_14 {dimension_numbers = #tpu.dot_dimension_numbers<[2], [1], [1], [2], [0, 0, 0, 1, 1, 2], [0], [0]>} : vector<2x5x5xbf16>, vector<2x5x32xbf16>, vector<2x5x32xf32> -> vector<2x5x32xf32>
    "tpu.trace_stop"() : () -> ()
    %c0_15 = arith.constant 0 : index
    %c0_16 = arith.constant 0 : index
    %c0_17 = arith.constant 0 : index
    %c0_18 = arith.constant 0 : index
    %24 = vector.load %arg4[%c0_15, %c0_16, %c0_17, %c0_18] : memref<1x2x5x32xf32, #tpu.memory_space<vmem>>, vector<1x2x5x32xf32>
    %25 = vector.shape_cast %24 : vector<1x2x5x32xf32> to vector<2x5x32xf32>
    %26 = vector.shape_cast %23 : vector<2x5x32xf32> to vector<1x2x5x32xf32>
    tpu.vector_store %arg4[%c0_15, %c0_16, %c0_17, %c0_18], %26 {strides = array<i32>} : memref<1x2x5x32xf32, #tpu.memory_space<vmem>>, vector<1x2x5x32xf32>,
    return
  }
  func.func @transform_0(%arg0: i32) -> (i32, i32, i32, i32) {
    %c0_i32 = arith.constant 0 : i32
    %c0_i32_0 = arith.constant 0 : i32
    %c0_i32_1 = arith.constant 0 : i32
    %c0_i32_2 = arith.constant 0 : i32
    return %arg0, %c0_i32, %c0_i32_0, %c0_i32_1 : i32, i32, i32, i32
  }
  func.func @transform_1(%arg0: i32) -> (i32, i32, i32, i32) {
    %c0_i32 = arith.constant 0 : i32
    %c0_i32_0 = arith.constant 0 : i32
    %c0_i32_1 = arith.constant 0 : i32
    %c0_i32_2 = arith.constant 0 : i32
    return %arg0, %c0_i32, %c0_i32_0, %c0_i32_1 : i32, i32, i32, i32
  }
  func.func @transform_2(%arg0: i32) -> (i32, i32, i32, i32) {
    %c0_i32 = arith.constant 0 : i32
    %c0_i32_0 = arith.constant 0 : i32
    %c0_i32_1 = arith.constant 0 : i32
    %c0_i32_2 = arith.constant 0 : i32
    return %arg0, %c0_i32, %c0_i32_0, %c0_i32_1 : i32, i32, i32, i32
  }
  func.func @transform_3(%arg0: i32) -> (i32, i32, i32, i32) {
    %c0_i32 = arith.constant 0 : i32
    %c0_i32_0 = arith.constant 0 : i32
    %c0_i32_1 = arith.constant 0 : i32
    %c0_i32_2 = arith.constant 0 : i32
    return %arg0, %c0_i32, %c0_i32_0, %c0_i32_1 : i32, i32, i32, i32
  }
}

module attributes {stable_mosaic.version = 11 : i64} {
  func.func @kernel(%arg0: i32, %arg1: i32, %arg2: memref<40x64xf32, #tpu.memory_space<vmem>>, %arg3: memref<1x64xf32, #tpu.memory_space<vmem>>, %arg4: memref<1x64xf32, #tpu.memory_space<vmem>>, %arg5: memref<64x256xbf16, #tpu.memory_space<vmem>>, %arg6: memref<1x256xf32, #tpu.memory_space<vmem>>, %arg7: memref<40x256xf32, #tpu.memory_space<vmem>>) attributes {dimension_semantics = [#tpu.dimension_semantics<parallel>, #tpu.dimension_semantics<parallel>], iteration_bounds = array<i64: 1, 1>, scalar_prefetch = 0 : i64, scratch_operands = 0 : i64, tpu.core_type = #tpu.core_type<tc>, window_params = [{transform_indices = @transform_0, window_bounds = array<i64: 40, 64>}, {pipeline_mode = #tpu.pipeline_mode<synchronous>, transform_indices = @transform_1, window_bounds = array<i64: 1, 64>}, {pipeline_mode = #tpu.pipeline_mode<synchronous>, transform_indices = @transform_2, window_bounds = array<i64: 1, 64>}, {transform_indices = @transform_3, window_bounds = array<i64: 64, 256>}, {transform_indices = @transform_4, window_bounds = array<i64: 1, 256>}, {transform_indices = @transform_5, window_bounds = array<i64: 40, 256>}]} {
    %c0 = arith.constant 0 : index
    %c0_0 = arith.constant 0 : index
    %0 = vector.load %arg2[%c0, %c0_0] : memref<40x64xf32, #tpu.memory_space<vmem>>, vector<40x64xf32>
    %cst = arith.constant dense<0.000000e+00> : vector<40xf32>
    %1 = vector.multi_reduction <add>, %0, %cst [1] : vector<40x64xf32> to vector<40xf32>
    %2 = vector.shape_cast %1 : vector<40xf32> to vector<40x1xf32>
    %cst_1 = arith.constant 6.400000e+01 : f32
    %3 = vector.broadcast %cst_1 : f32 to vector<40x1xf32>
    %4 = arith.divf %2, %3 : vector<40x1xf32>
    %5 = vector.broadcast %4 : vector<40x1xf32> to vector<40x64xf32>
    %6 = arith.subf %0, %5 : vector<40x64xf32>
    %7 = arith.mulf %6, %6 : vector<40x64xf32>
    %cst_2 = arith.constant dense<0.000000e+00> : vector<40xf32>
    %8 = vector.multi_reduction <add>, %7, %cst_2 [1] : vector<40x64xf32> to vector<40xf32>
    %9 = vector.shape_cast %8 : vector<40xf32> to vector<40x1xf32>
    %cst_3 = arith.constant 6.400000e+01 : f32
    %10 = vector.broadcast %cst_3 : f32 to vector<40x1xf32>
    %11 = arith.divf %9, %10 : vector<40x1xf32>
    %12 = vector.broadcast %4 : vector<40x1xf32> to vector<40x64xf32>
    %13 = arith.subf %0, %12 : vector<40x64xf32>
    %cst_4 = arith.constant 9.99999974E-6 : f32
    %14 = vector.broadcast %cst_4 : f32 to vector<40x1xf32>
    %15 = arith.addf %11, %14 : vector<40x1xf32>
    %16 = math.rsqrt %15 : vector<40x1xf32>
    %17 = vector.broadcast %16 : vector<40x1xf32> to vector<40x64xf32>
    %18 = arith.mulf %13, %17 : vector<40x64xf32>
    %c0_5 = arith.constant 0 : index
    %c0_6 = arith.constant 0 : index
    %19 = vector.load %arg3[%c0_5, %c0_6] : memref<1x64xf32, #tpu.memory_space<vmem>>, vector<1x64xf32>
    %20 = vector.broadcast %19 : vector<1x64xf32> to vector<40x64xf32>
    %21 = arith.mulf %18, %20 : vector<40x64xf32>
    %c0_7 = arith.constant 0 : index
    %c0_8 = arith.constant 0 : index
    %22 = vector.load %arg4[%c0_7, %c0_8] : memref<1x64xf32, #tpu.memory_space<vmem>>, vector<1x64xf32>
    %23 = vector.broadcast %22 : vector<1x64xf32> to vector<40x64xf32>
    %24 = arith.addf %21, %23 : vector<40x64xf32>
    %25 = arith.truncf %24 : vector<40x64xf32> to vector<40x64xbf16>
    %c0_9 = arith.constant 0 : index
    %c0_10 = arith.constant 0 : index
    %26 = vector.load %arg5[%c0_9, %c0_10] : memref<64x256xbf16, #tpu.memory_space<vmem>>, vector<64x256xbf16>
    %cst_11 = arith.constant dense<0.000000e+00> : vector<40x256xf32>
    %27 = tpu.matmul %25, %26, %cst_11 {dimension_numbers = #tpu.dot_dimension_numbers<[1], [0], [0], [1], [0, 0, 1, 1], [], []>} : vector<40x64xbf16>, vector<64x256xbf16>, vector<40x256xf32> -> vector<40x256xf32>
    %c0_12 = arith.constant 0 : index
    %c0_13 = arith.constant 0 : index
    %28 = vector.load %arg6[%c0_12, %c0_13] : memref<1x256xf32, #tpu.memory_space<vmem>>, vector<1x256xf32>
    %29 = vector.broadcast %28 : vector<1x256xf32> to vector<40x256xf32>
    %30 = arith.addf %27, %29 : vector<40x256xf32>
    %cst_14 = arith.constant 1.702000e+00 : f32
    %31 = vector.broadcast %cst_14 : f32 to vector<40x256xf32>
    %32 = arith.mulf %31, %30 : vector<40x256xf32>
    %33 = arith.negf %32 : vector<40x256xf32>
    %34 = math.exp %33 : vector<40x256xf32>
    %cst_15 = arith.constant 1.000000e+00 : f32
    %35 = vector.broadcast %cst_15 : f32 to vector<40x256xf32>
    %36 = arith.addf %35, %34 : vector<40x256xf32>
    %37 = arith.divf %35, %36 : vector<40x256xf32>
    %38 = arith.mulf %30, %37 : vector<40x256xf32>
    %c0_16 = arith.constant 0 : index
    %c0_17 = arith.constant 0 : index
    %39 = vector.load %arg7[%c0_16, %c0_17] : memref<40x256xf32, #tpu.memory_space<vmem>>, vector<40x256xf32>
    tpu.vector_store %arg7[%c0_16, %c0_17], %38 {strides = array<i32>} : memref<40x256xf32, #tpu.memory_space<vmem>>, vector<40x256xf32>,
    return
  }
  func.func @transform_0(%arg0: i32, %arg1: i32) -> (i32, i32) {
    %c0_i32 = arith.constant 0 : i32
    %c0_i32_0 = arith.constant 0 : i32
    return %arg0, %c0_i32 : i32, i32
  }
  func.func @transform_1(%arg0: i32, %arg1: i32) -> (i32, i32) {
    %c0_i32 = arith.constant 0 : i32
    %c0_i32_0 = arith.constant 0 : i32
    %c0_i32_1 = arith.constant 0 : i32
    return %c0_i32, %c0_i32_0 : i32, i32
  }
  func.func @transform_2(%arg0: i32, %arg1: i32) -> (i32, i32) {
    %c0_i32 = arith.constant 0 : i32
    %c0_i32_0 = arith.constant 0 : i32
    %c0_i32_1 = arith.constant 0 : i32
    return %c0_i32, %c0_i32_0 : i32, i32
  }
  func.func @transform_3(%arg0: i32, %arg1: i32) -> (i32, i32) {
    %c0_i32 = arith.constant 0 : i32
    %c0_i32_0 = arith.constant 0 : i32
    return %c0_i32, %arg1 : i32, i32
  }
  func.func @transform_4(%arg0: i32, %arg1: i32) -> (i32, i32) {
    %c0_i32 = arith.constant 0 : i32
    %c0_i32_0 = arith.constant 0 : i32
    return %c0_i32, %arg1 : i32, i32
  }
  func.func @transform_5(%arg0: i32, %arg1: i32) -> (i32, i32) {
    %c0_i32 = arith.constant 0 : i32
    return %arg0, %arg1 : i32, i32
  }
}

module attributes {stable_mosaic.version = 11 : i64} {
  func.func @kernel(%arg0: i32, %arg1: i32, %arg2: i32, %arg3: memref<40x128xf32, #tpu.memory_space<vmem>>, %arg4: memref<128x128xbf16, #tpu.memory_space<vmem>>, %arg5: memref<1x128xf32, #tpu.memory_space<vmem>>, %arg6: memref<40x128xf32, #tpu.memory_space<vmem>>, %arg7: memref<40x128xf32, #tpu.memory_space<vmem>>, %arg8: memref<40x128xf32, #tpu.memory_space<vmem>>) attributes {dimension_semantics = [#tpu.dimension_semantics<parallel>, #tpu.dimension_semantics<parallel>, #tpu.dimension_semantics<arbitrary>], iteration_bounds = array<i64: 1, 1, 1>, scalar_prefetch = 0 : i64, scratch_operands = 1 : i64, tpu.core_type = #tpu.core_type<tc>, window_params = [{transform_indices = @transform_0, window_bounds = array<i64: 40, 128>}, {transform_indices = @transform_1, window_bounds = array<i64: 128, 128>}, {transform_indices = @transform_2, window_bounds = array<i64: 1, 128>}, {transform_indices = @transform_3, window_bounds = array<i64: 40, 128>}, {transform_indices = @transform_4, window_bounds = array<i64: 40, 128>}]} {
    %c0_i32 = arith.constant 0 : i32
    %0 = arith.cmpi eq, %arg2, %c0_i32 : i32
    %1 = arith.extui %0 : i1 to i32
    %c0_i32_0 = arith.constant 0 : i32
    %2 = arith.cmpi ne, %1, %c0_i32_0 : i32
    scf.if %2 {
      %cst_10 = arith.constant 0.000000e+00 : f32
      %13 = vector.broadcast %cst_10 : f32 to vector<40x128xf32>
      %c0_11 = arith.constant 0 : index
      %c0_12 = arith.constant 0 : index
      %14 = vector.load %arg8[%c0_11, %c0_12] : memref<40x128xf32, #tpu.memory_space<vmem>>, vector<40x128xf32>
      tpu.vector_store %arg8[%c0_11, %c0_12], %13 {strides = array<i32>} : memref<40x128xf32, #tpu.memory_space<vmem>>, vector<40x128xf32>,
    } else {
    }
    %c0 = arith.constant 0 : index
    %c0_1 = arith.constant 0 : index
    %3 = vector.load %arg8[%c0, %c0_1] : memref<40x128xf32, #tpu.memory_space<vmem>>, vector<40x128xf32>
    %c0_2 = arith.constant 0 : index
    %c0_3 = arith.constant 0 : index
    %4 = vector.load %arg3[%c0_2, %c0_3] : memref<40x128xf32, #tpu.memory_space<vmem>>, vector<40x128xf32>
    %5 = arith.truncf %4 : vector<40x128xf32> to vector<40x128xbf16>
    %c0_4 = arith.constant 0 : index
    %c0_5 = arith.constant 0 : index
    %6 = vector.load %arg4[%c0_4, %c0_5] : memref<128x128xbf16, #tpu.memory_space<vmem>>, vector<128x128xbf16>
    %cst = arith.constant dense<0.000000e+00> : vector<40x128xf32>
    %7 = tpu.matmul %5, %6, %cst {dimension_numbers = #tpu.dot_dimension_numbers<[1], [0], [0], [1], [0, 0, 1, 1], [], []>} : vector<40x128xbf16>, vector<128x128xbf16>, vector<40x128xf32> -> vector<40x128xf32>
    %8 = arith.addf %3, %7 : vector<40x128xf32>
    %c0_6 = arith.constant 0 : index
    %c0_7 = arith.constant 0 : index
    %9 = vector.load %arg8[%c0_6, %c0_7] : memref<40x128xf32, #tpu.memory_space<vmem>>, vector<40x128xf32>
    tpu.vector_store %arg8[%c0_6, %c0_7], %8 {strides = array<i32>} : memref<40x128xf32, #tpu.memory_space<vmem>>, vector<40x128xf32>,
    %c0_i32_8 = arith.constant 0 : i32
    %10 = arith.cmpi eq, %arg2, %c0_i32_8 : i32
    %11 = arith.extui %10 : i1 to i32
    %c0_i32_9 = arith.constant 0 : i32
    %12 = arith.cmpi ne, %11, %c0_i32_9 : i32
    scf.if %12 {
      %c0_10 = arith.constant 0 : index
      %c0_11 = arith.constant 0 : index
      %13 = vector.load %arg8[%c0_10, %c0_11] : memref<40x128xf32, #tpu.memory_space<vmem>>, vector<40x128xf32>
      %c0_12 = arith.constant 0 : index
      %c0_13 = arith.constant 0 : index
      %14 = vector.load %arg5[%c0_12, %c0_13] : memref<1x128xf32, #tpu.memory_space<vmem>>, vector<1x128xf32>
      %15 = vector.broadcast %14 : vector<1x128xf32> to vector<40x128xf32>
      %16 = arith.addf %13, %15 : vector<40x128xf32>
      %c0_14 = arith.constant 0 : index
      %c0_15 = arith.constant 0 : index
      %17 = vector.load %arg6[%c0_14, %c0_15] : memref<40x128xf32, #tpu.memory_space<vmem>>, vector<40x128xf32>
      %18 = arith.addf %16, %17 : vector<40x128xf32>
      %c0_16 = arith.constant 0 : index
      %c0_17 = arith.constant 0 : index
      %19 = vector.load %arg7[%c0_16, %c0_17] : memref<40x128xf32, #tpu.memory_space<vmem>>, vector<40x128xf32>
      tpu.vector_store %arg7[%c0_16, %c0_17], %18 {strides = array<i32>} : memref<40x128xf32, #tpu.memory_space<vmem>>, vector<40x128xf32>,
    } else {
    }
    return
  }
  func.func @transform_0(%arg0: i32, %arg1: i32, %arg2: i32) -> (i32, i32) {
    %c0_i32 = arith.constant 0 : i32
    return %arg0, %arg2 : i32, i32
  }
  func.func @transform_1(%arg0: i32, %arg1: i32, %arg2: i32) -> (i32, i32) {
    %c0_i32 = arith.constant 0 : i32
    return %arg2, %arg1 : i32, i32
  }
  func.func @transform_2(%arg0: i32, %arg1: i32, %arg2: i32) -> (i32, i32) {
    %c0_i32 = arith.constant 0 : i32
    %c0_i32_0 = arith.constant 0 : i32
    return %c0_i32, %arg1 : i32, i32
  }
  func.func @transform_3(%arg0: i32, %arg1: i32, %arg2: i32) -> (i32, i32) {
    %c0_i32 = arith.constant 0 : i32
    return %arg0, %arg1 : i32, i32
  }
  func.func @transform_4(%arg0: i32, %arg1: i32, %arg2: i32) -> (i32, i32) {
    %c0_i32 = arith.constant 0 : i32
    return %arg0, %arg1 : i32, i32
  }
}

module attributes {stable_mosaic.version = 11 : i64} {
  func.func @kernel(%arg0: i32, %arg1: i32, %arg2: i32, %arg3: memref<40x256xf32, #tpu.memory_space<vmem>>, %arg4: memref<256x128xbf16, #tpu.memory_space<vmem>>, %arg5: memref<1x128xf32, #tpu.memory_space<vmem>>, %arg6: memref<40x128xf32, #tpu.memory_space<vmem>>, %arg7: memref<40x128xf32, #tpu.memory_space<vmem>>, %arg8: memref<40x128xf32, #tpu.memory_space<vmem>>) attributes {dimension_semantics = [#tpu.dimension_semantics<parallel>, #tpu.dimension_semantics<parallel>, #tpu.dimension_semantics<arbitrary>], iteration_bounds = array<i64: 1, 1, 1>, scalar_prefetch = 0 : i64, scratch_operands = 1 : i64, tpu.core_type = #tpu.core_type<tc>, window_params = [{transform_indices = @transform_0, window_bounds = array<i64: 40, 256>}, {transform_indices = @transform_1, window_bounds = array<i64: 256, 128>}, {transform_indices = @transform_2, window_bounds = array<i64: 1, 128>}, {transform_indices = @transform_3, window_bounds = array<i64: 40, 128>}, {transform_indices = @transform_4, window_bounds = array<i64: 40, 128>}]} {
    %c0_i32 = arith.constant 0 : i32
    %0 = arith.cmpi eq, %arg2, %c0_i32 : i32
    %1 = arith.extui %0 : i1 to i32
    %c0_i32_0 = arith.constant 0 : i32
    %2 = arith.cmpi ne, %1, %c0_i32_0 : i32
    scf.if %2 {
      %cst_10 = arith.constant 0.000000e+00 : f32
      %13 = vector.broadcast %cst_10 : f32 to vector<40x128xf32>
      %c0_11 = arith.constant 0 : index
      %c0_12 = arith.constant 0 : index
      %14 = vector.load %arg8[%c0_11, %c0_12] : memref<40x128xf32, #tpu.memory_space<vmem>>, vector<40x128xf32>
      tpu.vector_store %arg8[%c0_11, %c0_12], %13 {strides = array<i32>} : memref<40x128xf32, #tpu.memory_space<vmem>>, vector<40x128xf32>,
    } else {
    }
    %c0 = arith.constant 0 : index
    %c0_1 = arith.constant 0 : index
    %3 = vector.load %arg8[%c0, %c0_1] : memref<40x128xf32, #tpu.memory_space<vmem>>, vector<40x128xf32>
    %c0_2 = arith.constant 0 : index
    %c0_3 = arith.constant 0 : index
    %4 = vector.load %arg3[%c0_2, %c0_3] : memref<40x256xf32, #tpu.memory_space<vmem>>, vector<40x256xf32>
    %5 = arith.truncf %4 : vector<40x256xf32> to vector<40x256xbf16>
    %c0_4 = arith.constant 0 : index
    %c0_5 = arith.constant 0 : index
    %6 = vector.load %arg4[%c0_4, %c0_5] : memref<256x128xbf16, #tpu.memory_space<vmem>>, vector<256x128xbf16>
    %cst = arith.constant dense<0.000000e+00> : vector<40x128xf32>
    %7 = tpu.matmul %5, %6, %cst {dimension_numbers = #tpu.dot_dimension_numbers<[1], [0], [0], [1], [0, 0, 1, 1], [], []>} : vector<40x256xbf16>, vector<256x128xbf16>, vector<40x128xf32> -> vector<40x128xf32>
    %8 = arith.addf %3, %7 : vector<40x128xf32>
    %c0_6 = arith.constant 0 : index
    %c0_7 = arith.constant 0 : index
    %9 = vector.load %arg8[%c0_6, %c0_7] : memref<40x128xf32, #tpu.memory_space<vmem>>, vector<40x128xf32>
    tpu.vector_store %arg8[%c0_6, %c0_7], %8 {strides = array<i32>} : memref<40x128xf32, #tpu.memory_space<vmem>>, vector<40x128xf32>,
    %c0_i32_8 = arith.constant 0 : i32
    %10 = arith.cmpi eq, %arg2, %c0_i32_8 : i32
    %11 = arith.extui %10 : i1 to i32
    %c0_i32_9 = arith.constant 0 : i32
    %12 = arith.cmpi ne, %11, %c0_i32_9 : i32
    scf.if %12 {
      %c0_10 = arith.constant 0 : index
      %c0_11 = arith.constant 0 : index
      %13 = vector.load %arg8[%c0_10, %c0_11] : memref<40x128xf32, #tpu.memory_space<vmem>>, vector<40x128xf32>
      %c0_12 = arith.constant 0 : index
      %c0_13 = arith.constant 0 : index
      %14 = vector.load %arg5[%c0_12, %c0_13] : memref<1x128xf32, #tpu.memory_space<vmem>>, vector<1x128xf32>
      %15 = vector.broadcast %14 : vector<1x128xf32> to vector<40x128xf32>
      %16 = arith.addf %13, %15 : vector<40x128xf32>
      %c0_14 = arith.constant 0 : index
      %c0_15 = arith.constant 0 : index
      %17 = vector.load %arg6[%c0_14, %c0_15] : memref<40x128xf32, #tpu.memory_space<vmem>>, vector<40x128xf32>
      %18 = arith.addf %16, %17 : vector<40x128xf32>
      %c0_16 = arith.constant 0 : index
      %c0_17 = arith.constant 0 : index
      %19 = vector.load %arg7[%c0_16, %c0_17] : memref<40x128xf32, #tpu.memory_space<vmem>>, vector<40x128xf32>
      tpu.vector_store %arg7[%c0_16, %c0_17], %18 {strides = array<i32>} : memref<40x128xf32, #tpu.memory_space<vmem>>, vector<40x128xf32>,
    } else {
    }
    return
  }
  func.func @transform_0(%arg0: i32, %arg1: i32, %arg2: i32) -> (i32, i32) {
    %c0_i32 = arith.constant 0 : i32
    return %arg0, %arg2 : i32, i32
  }
  func.func @transform_1(%arg0: i32, %arg1: i32, %arg2: i32) -> (i32, i32) {
    %c0_i32 = arith.constant 0 : i32
    return %arg2, %arg1 : i32, i32
  }
  func.func @transform_2(%arg0: i32, %arg1: i32, %arg2: i32) -> (i32, i32) {
    %c0_i32 = arith.constant 0 : i32
    %c0_i32_0 = arith.constant 0 : i32
    return %c0_i32, %arg1 : i32, i32
  }
  func.func @transform_3(%arg0: i32, %arg1: i32, %arg2: i32) -> (i32, i32) {
    %c0_i32 = arith.constant 0 : i32
    return %arg0, %arg1 : i32, i32
  }
  func.func @transform_4(%arg0: i32, %arg1: i32, %arg2: i32) -> (i32, i32) {
    %c0_i32 = arith.constant 0 : i32
    return %arg0, %arg1 : i32, i32
  }
}

module attributes {stable_mosaic.version = 11 : i64} {
  func.func @kernel(%arg0: i32, %arg1: i32, %arg2: memref<8x64xf32, #tpu.memory_space<vmem>>, %arg3: memref<1x64xf32, #tpu.memory_space<vmem>>, %arg4: memref<1x64xf32, #tpu.memory_space<vmem>>, %arg5: memref<64x128xbf16, #tpu.memory_space<vmem>>, %arg6: memref<8x128xf32, #tpu.memory_space<vmem>>) attributes {dimension_semantics = [#tpu.dimension_semantics<parallel>, #tpu.dimension_semantics<parallel>], iteration_bounds = array<i64: 1, 1>, scalar_prefetch = 0 : i64, scratch_operands = 0 : i64, tpu.core_type = #tpu.core_type<tc>, window_params = [{transform_indices = @transform_0, window_bounds = array<i64: 8, 64>}, {pipeline_mode = #tpu.pipeline_mode<synchronous>, transform_indices = @transform_1, window_bounds = array<i64: 1, 64>}, {pipeline_mode = #tpu.pipeline_mode<synchronous>, transform_indices = @transform_2, window_bounds = array<i64: 1, 64>}, {transform_indices = @transform_3, window_bounds = array<i64: 64, 128>}, {transform_indices = @transform_4, window_bounds = array<i64: 8, 128>}]} {
    %c0 = arith.constant 0 : index
    %c0_0 = arith.constant 0 : index
    %0 = vector.load %arg2[%c0, %c0_0] : memref<8x64xf32, #tpu.memory_space<vmem>>, vector<8x64xf32>
    %cst = arith.constant dense<0.000000e+00> : vector<8xf32>
    %1 = vector.multi_reduction <add>, %0, %cst [1] : vector<8x64xf32> to vector<8xf32>
    %2 = vector.shape_cast %1 : vector<8xf32> to vector<8x1xf32>
    %cst_1 = arith.constant 6.400000e+01 : f32
    %3 = vector.broadcast %cst_1 : f32 to vector<8x1xf32>
    %4 = arith.divf %2, %3 : vector<8x1xf32>
    %5 = vector.broadcast %4 : vector<8x1xf32> to vector<8x64xf32>
    %6 = arith.subf %0, %5 : vector<8x64xf32>
    %7 = arith.mulf %6, %6 : vector<8x64xf32>
    %cst_2 = arith.constant dense<0.000000e+00> : vector<8xf32>
    %8 = vector.multi_reduction <add>, %7, %cst_2 [1] : vector<8x64xf32> to vector<8xf32>
    %9 = vector.shape_cast %8 : vector<8xf32> to vector<8x1xf32>
    %cst_3 = arith.constant 6.400000e+01 : f32
    %10 = vector.broadcast %cst_3 : f32 to vector<8x1xf32>
    %11 = arith.divf %9, %10 : vector<8x1xf32>
    %12 = vector.broadcast %4 : vector<8x1xf32> to vector<8x64xf32>
    %13 = arith.subf %0, %12 : vector<8x64xf32>
    %cst_4 = arith.constant 9.99999974E-6 : f32
    %14 = vector.broadcast %cst_4 : f32 to vector<8x1xf32>
    %15 = arith.addf %11, %14 : vector<8x1xf32>
    %16 = math.rsqrt %15 : vector<8x1xf32>
    %17 = vector.broadcast %16 : vector<8x1xf32> to vector<8x64xf32>
    %18 = arith.mulf %13, %17 : vector<8x64xf32>
    %c0_5 = arith.constant 0 : index
    %c0_6 = arith.constant 0 : index
    %19 = vector.load %arg3[%c0_5, %c0_6] : memref<1x64xf32, #tpu.memory_space<vmem>>, vector<1x64xf32>
    %20 = vector.broadcast %19 : vector<1x64xf32> to vector<8x64xf32>
    %21 = arith.mulf %18, %20 : vector<8x64xf32>
    %c0_7 = arith.constant 0 : index
    %c0_8 = arith.constant 0 : index
    %22 = vector.load %arg4[%c0_7, %c0_8] : memref<1x64xf32, #tpu.memory_space<vmem>>, vector<1x64xf32>
    %23 = vector.broadcast %22 : vector<1x64xf32> to vector<8x64xf32>
    %24 = arith.addf %21, %23 : vector<8x64xf32>
    %25 = arith.truncf %24 : vector<8x64xf32> to vector<8x64xbf16>
    %c0_9 = arith.constant 0 : index
    %c0_10 = arith.constant 0 : index
    %26 = vector.load %arg5[%c0_9, %c0_10] : memref<64x128xbf16, #tpu.memory_space<vmem>>, vector<64x128xbf16>
    %cst_11 = arith.constant dense<0.000000e+00> : vector<8x128xf32>
    %27 = tpu.matmul %25, %26, %cst_11 {dimension_numbers = #tpu.dot_dimension_numbers<[1], [0], [0], [1], [0, 0, 1, 1], [], []>} : vector<8x64xbf16>, vector<64x128xbf16>, vector<8x128xf32> -> vector<8x128xf32>
    %c0_12 = arith.constant 0 : index
    %c0_13 = arith.constant 0 : index
    %28 = vector.load %arg6[%c0_12, %c0_13] : memref<8x128xf32, #tpu.memory_space<vmem>>, vector<8x128xf32>
    tpu.vector_store %arg6[%c0_12, %c0_13], %27 {strides = array<i32>} : memref<8x128xf32, #tpu.memory_space<vmem>>, vector<8x128xf32>,
    return
  }
  func.func @transform_0(%arg0: i32, %arg1: i32) -> (i32, i32) {
    %c0_i32 = arith.constant 0 : i32
    %c0_i32_0 = arith.constant 0 : i32
    return %arg0, %c0_i32 : i32, i32
  }
  func.func @transform_1(%arg0: i32, %arg1: i32) -> (i32, i32) {
    %c0_i32 = arith.constant 0 : i32
    %c0_i32_0 = arith.constant 0 : i32
    %c0_i32_1 = arith.constant 0 : i32
    return %c0_i32, %c0_i32_0 : i32, i32
  }
  func.func @transform_2(%arg0: i32, %arg1: i32) -> (i32, i32) {
    %c0_i32 = arith.constant 0 : i32
    %c0_i32_0 = arith.constant 0 : i32
    %c0_i32_1 = arith.constant 0 : i32
    return %c0_i32, %c0_i32_0 : i32, i32
  }
  func.func @transform_3(%arg0: i32, %arg1: i32) -> (i32, i32) {
    %c0_i32 = arith.constant 0 : i32
    %c0_i32_0 = arith.constant 0 : i32
    return %c0_i32, %arg1 : i32, i32
  }
  func.func @transform_4(%arg0: i32, %arg1: i32) -> (i32, i32) {
    %c0_i32 = arith.constant 0 : i32
    return %arg0, %arg1 : i32, i32
  }
}

module attributes {stable_mosaic.version = 11 : i64} {
  func.func @kernel(%arg0: i32, %arg1: i32, %arg2: memref<16x64xf32, #tpu.memory_space<vmem>>, %arg3: memref<1x64xf32, #tpu.memory_space<vmem>>, %arg4: memref<1x64xf32, #tpu.memory_space<vmem>>, %arg5: memref<64x256xbf16, #tpu.memory_space<vmem>>, %arg6: memref<1x256xf32, #tpu.memory_space<vmem>>, %arg7: memref<16x256xf32, #tpu.memory_space<vmem>>) attributes {dimension_semantics = [#tpu.dimension_semantics<parallel>, #tpu.dimension_semantics<parallel>], iteration_bounds = array<i64: 1, 1>, scalar_prefetch = 0 : i64, scratch_operands = 0 : i64, tpu.core_type = #tpu.core_type<tc>, window_params = [{transform_indices = @transform_0, window_bounds = array<i64: 16, 64>}, {pipeline_mode = #tpu.pipeline_mode<synchronous>, transform_indices = @transform_1, window_bounds = array<i64: 1, 64>}, {pipeline_mode = #tpu.pipeline_mode<synchronous>, transform_indices = @transform_2, window_bounds = array<i64: 1, 64>}, {transform_indices = @transform_3, window_bounds = array<i64: 64, 256>}, {transform_indices = @transform_4, window_bounds = array<i64: 1, 256>}, {transform_indices = @transform_5, window_bounds = array<i64: 16, 256>}]} {
    %c0 = arith.constant 0 : index
    %c0_0 = arith.constant 0 : index
    %0 = vector.load %arg2[%c0, %c0_0] : memref<16x64xf32, #tpu.memory_space<vmem>>, vector<16x64xf32>
    %cst = arith.constant dense<0.000000e+00> : vector<16xf32>
    %1 = vector.multi_reduction <add>, %0, %cst [1] : vector<16x64xf32> to vector<16xf32>
    %2 = vector.shape_cast %1 : vector<16xf32> to vector<16x1xf32>
    %cst_1 = arith.constant 6.400000e+01 : f32
    %3 = vector.broadcast %cst_1 : f32 to vector<16x1xf32>
    %4 = arith.divf %2, %3 : vector<16x1xf32>
    %5 = vector.broadcast %4 : vector<16x1xf32> to vector<16x64xf32>
    %6 = arith.subf %0, %5 : vector<16x64xf32>
    %7 = arith.mulf %6, %6 : vector<16x64xf32>
    %cst_2 = arith.constant dense<0.000000e+00> : vector<16xf32>
    %8 = vector.multi_reduction <add>, %7, %cst_2 [1] : vector<16x64xf32> to vector<16xf32>
    %9 = vector.shape_cast %8 : vector<16xf32> to vector<16x1xf32>
    %cst_3 = arith.constant 6.400000e+01 : f32
    %10 = vector.broadcast %cst_3 : f32 to vector<16x1xf32>
    %11 = arith.divf %9, %10 : vector<16x1xf32>
    %12 = vector.broadcast %4 : vector<16x1xf32> to vector<16x64xf32>
    %13 = arith.subf %0, %12 : vector<16x64xf32>
    %cst_4 = arith.constant 9.99999974E-6 : f32
    %14 = vector.broadcast %cst_4 : f32 to vector<16x1xf32>
    %15 = arith.addf %11, %14 : vector<16x1xf32>
    %16 = math.rsqrt %15 : vector<16x1xf32>
    %17 = vector.broadcast %16 : vector<16x1xf32> to vector<16x64xf32>
    %18 = arith.mulf %13, %17 : vector<16x64xf32>
    %c0_5 = arith.constant 0 : index
    %c0_6 = arith.constant 0 : index
    %19 = vector.load %arg3[%c0_5, %c0_6] : memref<1x64xf32, #tpu.memory_space<vmem>>, vector<1x64xf32>
    %20 = vector.broadcast %19 : vector<1x64xf32> to vector<16x64xf32>
    %21 = arith.mulf %18, %20 : vector<16x64xf32>
    %c0_7 = arith.constant 0 : index
    %c0_8 = arith.constant 0 : index
    %22 = vector.load %arg4[%c0_7, %c0_8] : memref<1x64xf32, #tpu.memory_space<vmem>>, vector<1x64xf32>
    %23 = vector.broadcast %22 : vector<1x64xf32> to vector<16x64xf32>
    %24 = arith.addf %21, %23 : vector<16x64xf32>
    %25 = arith.truncf %24 : vector<16x64xf32> to vector<16x64xbf16>
    %c0_9 = arith.constant 0 : index
    %c0_10 = arith.constant 0 : index
    %26 = vector.load %arg5[%c0_9, %c0_10] : memref<64x256xbf16, #tpu.memory_space<vmem>>, vector<64x256xbf16>
    %cst_11 = arith.constant dense<0.000000e+00> : vector<16x256xf32>
    %27 = tpu.matmul %25, %26, %cst_11 {dimension_numbers = #tpu.dot_dimension_numbers<[1], [0], [0], [1], [0, 0, 1, 1], [], []>} : vector<16x64xbf16>, vector<64x256xbf16>, vector<16x256xf32> -> vector<16x256xf32>
    %c0_12 = arith.constant 0 : index
    %c0_13 = arith.constant 0 : index
    %28 = vector.load %arg6[%c0_12, %c0_13] : memref<1x256xf32, #tpu.memory_space<vmem>>, vector<1x256xf32>
    %29 = vector.broadcast %28 : vector<1x256xf32> to vector<16x256xf32>
    %30 = arith.addf %27, %29 : vector<16x256xf32>
    %c0_14 = arith.constant 0 : index
    %c0_15 = arith.constant 0 : index
    %31 = vector.load %arg7[%c0_14, %c0_15] : memref<16x256xf32, #tpu.memory_space<vmem>>, vector<16x256xf32>
    tpu.vector_store %arg7[%c0_14, %c0_15], %30 {strides = array<i32>} : memref<16x256xf32, #tpu.memory_space<vmem>>, vector<16x256xf32>,
    return
  }
  func.func @transform_0(%arg0: i32, %arg1: i32) -> (i32, i32) {
    %c0_i32 = arith.constant 0 : i32
    %c0_i32_0 = arith.constant 0 : i32
    return %arg0, %c0_i32 : i32, i32
  }
  func.func @transform_1(%arg0: i32, %arg1: i32) -> (i32, i32) {
    %c0_i32 = arith.constant 0 : i32
    %c0_i32_0 = arith.constant 0 : i32
    %c0_i32_1 = arith.constant 0 : i32
    return %c0_i32, %c0_i32_0 : i32, i32
  }
  func.func @transform_2(%arg0: i32, %arg1: i32) -> (i32, i32) {
    %c0_i32 = arith.constant 0 : i32
    %c0_i32_0 = arith.constant 0 : i32
    %c0_i32_1 = arith.constant 0 : i32
    return %c0_i32, %c0_i32_0 : i32, i32
  }
  func.func @transform_3(%arg0: i32, %arg1: i32) -> (i32, i32) {
    %c0_i32 = arith.constant 0 : i32
    %c0_i32_0 = arith.constant 0 : i32
    return %c0_i32, %arg1 : i32, i32
  }
  func.func @transform_4(%arg0: i32, %arg1: i32) -> (i32, i32) {
    %c0_i32 = arith.constant 0 : i32
    %c0_i32_0 = arith.constant 0 : i32
    return %c0_i32, %arg1 : i32, i32
  }
  func.func @transform_5(%arg0: i32, %arg1: i32) -> (i32, i32) {
    %c0_i32 = arith.constant 0 : i32
    return %arg0, %arg1 : i32, i32
  }
}

module attributes {stable_mosaic.version = 11 : i64} {
  func.func @kernel(%arg0: i32, %arg1: memref<1x2x8x32xf32, #tpu.memory_space<vmem>>, %arg2: memref<1x2x8x32xf32, #tpu.memory_space<vmem>>, %arg3: memref<1x2x8x32xf32, #tpu.memory_space<vmem>>, %arg4: memref<1x2x8x32xf32, #tpu.memory_space<vmem>>) attributes {dimension_semantics = [#tpu.dimension_semantics<parallel>], iteration_bounds = array<i64: 2>, scalar_prefetch = 0 : i64, scratch_operands = 0 : i64, tpu.core_type = #tpu.core_type<tc>, window_params = [{transform_indices = @transform_0, window_bounds = array<i64: 1, 2, 8, 32>}, {transform_indices = @transform_1, window_bounds = array<i64: 1, 2, 8, 32>}, {transform_indices = @transform_2, window_bounds = array<i64: 1, 2, 8, 32>}, {transform_indices = @transform_3, window_bounds = array<i64: 1, 2, 8, 32>}]} {
    %c0 = arith.constant 0 : index
    %c0_0 = arith.constant 0 : index
    %c0_1 = arith.constant 0 : index
    %c0_2 = arith.constant 0 : index
    %0 = vector.load %arg1[%c0, %c0_0, %c0_1, %c0_2] : memref<1x2x8x32xf32, #tpu.memory_space<vmem>>, vector<1x2x8x32xf32>
    %1 = vector.shape_cast %0 : vector<1x2x8x32xf32> to vector<2x8x32xf32>
    %2 = arith.truncf %1 : vector<2x8x32xf32> to vector<2x8x32xbf16>
    %c0_3 = arith.constant 0 : index
    %c0_4 = arith.constant 0 : index
    %c0_5 = arith.constant 0 : index
    %c0_6 = arith.constant 0 : index
    %3 = vector.load %arg2[%c0_3, %c0_4, %c0_5, %c0_6] : memref<1x2x8x32xf32, #tpu.memory_space<vmem>>, vector<1x2x8x32xf32>
    %4 = vector.shape_cast %3 : vector<1x2x8x32xf32> to vector<2x8x32xf32>
    %5 = arith.truncf %4 : vector<2x8x32xf32> to vector<2x8x32xbf16>
    %c0_7 = arith.constant 0 : index
    %c0_8 = arith.constant 0 : index
    %c0_9 = arith.constant 0 : index
    %c0_10 = arith.constant 0 : index
    %6 = vector.load %arg3[%c0_7, %c0_8, %c0_9, %c0_10] : memref<1x2x8x32xf32, #tpu.memory_space<vmem>>, vector<1x2x8x32xf32>
    %7 = vector.shape_cast %6 : vector<1x2x8x32xf32> to vector<2x8x32xf32>
    %8 = arith.truncf %7 : vector<2x8x32xf32> to vector<2x8x32xbf16>
    "tpu.trace_start"() <{level = 10 : i32, message = "hqd,hkd->hqk"}> : () -> ()
    %cst = arith.constant dense<0.000000e+00> : vector<2x8x8xf32>
    %9 = tpu.matmul %2, %5, %cst {dimension_numbers = #tpu.dot_dimension_numbers<[2], [2], [1], [1], [0, 0, 0, 1, 1, 1], [0], [0]>} : vector<2x8x32xbf16>, vector<2x8x32xbf16>, vector<2x8x8xf32> -> vector<2x8x8xf32>
    "tpu.trace_stop"() : () -> ()
    %cst_11 = arith.constant 0.176776692 : f32
    %10 = vector.broadcast %cst_11 : f32 to vector<2x8x8xf32>
    %11 = arith.mulf %9, %10 : vector<2x8x8xf32>
    %12 = tpu.iota {dimensions = array<i32: 0>} : vector<8x8xi32>
    %13 = tpu.iota {dimensions = array<i32: 1>} : vector<8x8xi32>
    %14 = arith.cmpi sle, %13, %12 : vector<8x8xi32>
    %15 = vector.shape_cast %14 : vector<8x8xi1> to vector<1x8x8xi1>
    %cst_12 = arith.constant -1.000000e+30 : f32
    %16 = vector.shape_cast %15 : vector<1x8x8xi1> to vector<1x8x8xi1>
    %17 = vector.broadcast %16 : vector<1x8x8xi1> to vector<2x8x8xi1>
    %18 = vector.broadcast %cst_12 : f32 to vector<2x8x8xf32>
    %19 = arith.select %17, %11, %18 : vector<2x8x8xi1>, vector<2x8x8xf32>
    %cst_13 = arith.constant dense<0xFF800000> : vector<2x8xf32>
    %20 = vector.multi_reduction <maximumf>, %19, %cst_13 [2] : vector<2x8x8xf32> to vector<2x8xf32>
    %21 = vector.shape_cast %20 : vector<2x8xf32> to vector<2x8x1xf32>
    %22 = vector.broadcast %21 : vector<2x8x1xf32> to vector<2x8x8xf32>
    %23 = arith.subf %19, %22 : vector<2x8x8xf32>
    %24 = math.exp %23 : vector<2x8x8xf32>
    %cst_14 = arith.constant dense<0.000000e+00> : vector<2x8xf32>
    %25 = vector.multi_reduction <add>, %24, %cst_14 [2] : vector<2x8x8xf32> to vector<2x8xf32>
    %26 = vector.shape_cast %25 : vector<2x8xf32> to vector<2x8x1xf32>
    %27 = tpu.reciprocal %26 {approx = true} : vector<2x8x1xf32> -> vector<2x8x1xf32>
    %28 = vector.broadcast %27 : vector<2x8x1xf32> to vector<2x8x8xf32>
    %29 = arith.mulf %24, %28 : vector<2x8x8xf32>
    %30 = arith.truncf %29 : vector<2x8x8xf32> to vector<2x8x8xbf16>
    "tpu.trace_start"() <{level = 10 : i32, message = "hqk,hkd->hqd"}> : () -> ()
    %cst_15 = arith.constant dense<0.000000e+00> : vector<2x8x32xf32>
    %31 = tpu.matmul %30, %8, %cst_15 {dimension_numbers = #tpu.dot_dimension_numbers<[2], [1], [1], [2], [0, 0, 0, 1, 1, 2], [0], [0]>} : vector<2x8x8xbf16>, vector<2x8x32xbf16>, vector<2x8x32xf32> -> vector<2x8x32xf32>
    "tpu.trace_stop"() : () -> ()
    %c0_16 = arith.constant 0 : index
    %c0_17 = arith.constant 0 : index
    %c0_18 = arith.constant 0 : index
    %c0_19 = arith.constant 0 : index
    %32 = vector.load %arg4[%c0_16, %c0_17, %c0_18, %c0_19] : memref<1x2x8x32xf32, #tpu.memory_space<vmem>>, vector<1x2x8x32xf32>
    %33 = vector.shape_cast %32 : vector<1x2x8x32xf32> to vector<2x8x32xf32>
    %34 = vector.shape_cast %31 : vector<2x8x32xf32> to vector<1x2x8x32xf32>
    tpu.vector_store %arg4[%c0_16, %c0_17, %c0_18, %c0_19], %34 {strides = array<i32>} : memref<1x2x8x32xf32, #tpu.memory_space<vmem>>, vector<1x2x8x32xf32>,
    return
  }
  func.func @transform_0(%arg0: i32) -> (i32, i32, i32, i32) {
    %c0_i32 = arith.constant 0 : i32
    %c0_i32_0 = arith.constant 0 : i32
    %c0_i32_1 = arith.constant 0 : i32
    %c0_i32_2 = arith.constant 0 : i32
    return %arg0, %c0_i32, %c0_i32_0, %c0_i32_1 : i32, i32, i32, i32
  }
  func.func @transform_1(%arg0: i32) -> (i32, i32, i32, i32) {
    %c0_i32 = arith.constant 0 : i32
    %c0_i32_0 = arith.constant 0 : i32
    %c0_i32_1 = arith.constant 0 : i32
    %c0_i32_2 = arith.constant 0 : i32
    return %arg0, %c0_i32, %c0_i32_0, %c0_i32_1 : i32, i32, i32, i32
  }
  func.func @transform_2(%arg0: i32) -> (i32, i32, i32, i32) {
    %c0_i32 = arith.constant 0 : i32
    %c0_i32_0 = arith.constant 0 : i32
    %c0_i32_1 = arith.constant 0 : i32
    %c0_i32_2 = arith.constant 0 : i32
    return %arg0, %c0_i32, %c0_i32_0, %c0_i32_1 : i32, i32, i32, i32
  }
  func.func @transform_3(%arg0: i32) -> (i32, i32, i32, i32) {
    %c0_i32 = arith.constant 0 : i32
    %c0_i32_0 = arith.constant 0 : i32
    %c0_i32_1 = arith.constant 0 : i32
    %c0_i32_2 = arith.constant 0 : i32
    return %arg0, %c0_i32, %c0_i32_0, %c0_i32_1 : i32, i32, i32, i32
  }
}

module attributes {stable_mosaic.version = 11 : i64} {
  func.func @kernel(%arg0: i32, %arg1: i32, %arg2: i32, %arg3: memref<16x128xf32, #tpu.memory_space<vmem>>, %arg4: memref<128x128xbf16, #tpu.memory_space<vmem>>, %arg5: memref<1x128xf32, #tpu.memory_space<vmem>>, %arg6: memref<16x128xf32, #tpu.memory_space<vmem>>, %arg7: memref<16x128xf32, #tpu.memory_space<vmem>>, %arg8: memref<16x128xf32, #tpu.memory_space<vmem>>) attributes {dimension_semantics = [#tpu.dimension_semantics<parallel>, #tpu.dimension_semantics<parallel>, #tpu.dimension_semantics<arbitrary>], iteration_bounds = array<i64: 1, 1, 1>, scalar_prefetch = 0 : i64, scratch_operands = 1 : i64, tpu.core_type = #tpu.core_type<tc>, window_params = [{transform_indices = @transform_0, window_bounds = array<i64: 16, 128>}, {transform_indices = @transform_1, window_bounds = array<i64: 128, 128>}, {transform_indices = @transform_2, window_bounds = array<i64: 1, 128>}, {transform_indices = @transform_3, window_bounds = array<i64: 16, 128>}, {transform_indices = @transform_4, window_bounds = array<i64: 16, 128>}]} {
    %c0_i32 = arith.constant 0 : i32
    %0 = arith.cmpi eq, %arg2, %c0_i32 : i32
    %1 = arith.extui %0 : i1 to i32
    %c0_i32_0 = arith.constant 0 : i32
    %2 = arith.cmpi ne, %1, %c0_i32_0 : i32
    scf.if %2 {
      %cst_10 = arith.constant 0.000000e+00 : f32
      %13 = vector.broadcast %cst_10 : f32 to vector<16x128xf32>
      %c0_11 = arith.constant 0 : index
      %c0_12 = arith.constant 0 : index
      %14 = vector.load %arg8[%c0_11, %c0_12] : memref<16x128xf32, #tpu.memory_space<vmem>>, vector<16x128xf32>
      tpu.vector_store %arg8[%c0_11, %c0_12], %13 {strides = array<i32>} : memref<16x128xf32, #tpu.memory_space<vmem>>, vector<16x128xf32>,
    } else {
    }
    %c0 = arith.constant 0 : index
    %c0_1 = arith.constant 0 : index
    %3 = vector.load %arg8[%c0, %c0_1] : memref<16x128xf32, #tpu.memory_space<vmem>>, vector<16x128xf32>
    %c0_2 = arith.constant 0 : index
    %c0_3 = arith.constant 0 : index
    %4 = vector.load %arg3[%c0_2, %c0_3] : memref<16x128xf32, #tpu.memory_space<vmem>>, vector<16x128xf32>
    %5 = arith.truncf %4 : vector<16x128xf32> to vector<16x128xbf16>
    %c0_4 = arith.constant 0 : index
    %c0_5 = arith.constant 0 : index
    %6 = vector.load %arg4[%c0_4, %c0_5] : memref<128x128xbf16, #tpu.memory_space<vmem>>, vector<128x128xbf16>
    %cst = arith.constant dense<0.000000e+00> : vector<16x128xf32>
    %7 = tpu.matmul %5, %6, %cst {dimension_numbers = #tpu.dot_dimension_numbers<[1], [0], [0], [1], [0, 0, 1, 1], [], []>} : vector<16x128xbf16>, vector<128x128xbf16>, vector<16x128xf32> -> vector<16x128xf32>
    %8 = arith.addf %3, %7 : vector<16x128xf32>
    %c0_6 = arith.constant 0 : index
    %c0_7 = arith.constant 0 : index
    %9 = vector.load %arg8[%c0_6, %c0_7] : memref<16x128xf32, #tpu.memory_space<vmem>>, vector<16x128xf32>
    tpu.vector_store %arg8[%c0_6, %c0_7], %8 {strides = array<i32>} : memref<16x128xf32, #tpu.memory_space<vmem>>, vector<16x128xf32>,
    %c0_i32_8 = arith.constant 0 : i32
    %10 = arith.cmpi eq, %arg2, %c0_i32_8 : i32
    %11 = arith.extui %10 : i1 to i32
    %c0_i32_9 = arith.constant 0 : i32
    %12 = arith.cmpi ne, %11, %c0_i32_9 : i32
    scf.if %12 {
      %c0_10 = arith.constant 0 : index
      %c0_11 = arith.constant 0 : index
      %13 = vector.load %arg8[%c0_10, %c0_11] : memref<16x128xf32, #tpu.memory_space<vmem>>, vector<16x128xf32>
      %c0_12 = arith.constant 0 : index
      %c0_13 = arith.constant 0 : index
      %14 = vector.load %arg5[%c0_12, %c0_13] : memref<1x128xf32, #tpu.memory_space<vmem>>, vector<1x128xf32>
      %15 = vector.broadcast %14 : vector<1x128xf32> to vector<16x128xf32>
      %16 = arith.addf %13, %15 : vector<16x128xf32>
      %c0_14 = arith.constant 0 : index
      %c0_15 = arith.constant 0 : index
      %17 = vector.load %arg6[%c0_14, %c0_15] : memref<16x128xf32, #tpu.memory_space<vmem>>, vector<16x128xf32>
      %18 = arith.addf %16, %17 : vector<16x128xf32>
      %c0_16 = arith.constant 0 : index
      %c0_17 = arith.constant 0 : index
      %19 = vector.load %arg7[%c0_16, %c0_17] : memref<16x128xf32, #tpu.memory_space<vmem>>, vector<16x128xf32>
      tpu.vector_store %arg7[%c0_16, %c0_17], %18 {strides = array<i32>} : memref<16x128xf32, #tpu.memory_space<vmem>>, vector<16x128xf32>,
    } else {
    }
    return
  }
  func.func @transform_0(%arg0: i32, %arg1: i32, %arg2: i32) -> (i32, i32) {
    %c0_i32 = arith.constant 0 : i32
    return %arg0, %arg2 : i32, i32
  }
  func.func @transform_1(%arg0: i32, %arg1: i32, %arg2: i32) -> (i32, i32) {
    %c0_i32 = arith.constant 0 : i32
    return %arg2, %arg1 : i32, i32
  }
  func.func @transform_2(%arg0: i32, %arg1: i32, %arg2: i32) -> (i32, i32) {
    %c0_i32 = arith.constant 0 : i32
    %c0_i32_0 = arith.constant 0 : i32
    return %c0_i32, %arg1 : i32, i32
  }
  func.func @transform_3(%arg0: i32, %arg1: i32, %arg2: i32) -> (i32, i32) {
    %c0_i32 = arith.constant 0 : i32
    return %arg0, %arg1 : i32, i32
  }
  func.func @transform_4(%arg0: i32, %arg1: i32, %arg2: i32) -> (i32, i32) {
    %c0_i32 = arith.constant 0 : i32
    return %arg0, %arg1 : i32, i32
  }
}

module attributes {stable_mosaic.version = 11 : i64} {
  func.func @kernel(%arg0: i32, %arg1: i32, %arg2: memref<16x64xf32, #tpu.memory_space<vmem>>, %arg3: memref<1x64xf32, #tpu.memory_space<vmem>>, %arg4: memref<1x64xf32, #tpu.memory_space<vmem>>, %arg5: memref<64x256xbf16, #tpu.memory_space<vmem>>, %arg6: memref<1x256xf32, #tpu.memory_space<vmem>>, %arg7: memref<16x256xf32, #tpu.memory_space<vmem>>) attributes {dimension_semantics = [#tpu.dimension_semantics<parallel>, #tpu.dimension_semantics<parallel>], iteration_bounds = array<i64: 1, 1>, scalar_prefetch = 0 : i64, scratch_operands = 0 : i64, tpu.core_type = #tpu.core_type<tc>, window_params = [{transform_indices = @transform_0, window_bounds = array<i64: 16, 64>}, {pipeline_mode = #tpu.pipeline_mode<synchronous>, transform_indices = @transform_1, window_bounds = array<i64: 1, 64>}, {pipeline_mode = #tpu.pipeline_mode<synchronous>, transform_indices = @transform_2, window_bounds = array<i64: 1, 64>}, {transform_indices = @transform_3, window_bounds = array<i64: 64, 256>}, {transform_indices = @transform_4, window_bounds = array<i64: 1, 256>}, {transform_indices = @transform_5, window_bounds = array<i64: 16, 256>}]} {
    %c0 = arith.constant 0 : index
    %c0_0 = arith.constant 0 : index
    %0 = vector.load %arg2[%c0, %c0_0] : memref<16x64xf32, #tpu.memory_space<vmem>>, vector<16x64xf32>
    %cst = arith.constant dense<0.000000e+00> : vector<16xf32>
    %1 = vector.multi_reduction <add>, %0, %cst [1] : vector<16x64xf32> to vector<16xf32>
    %2 = vector.shape_cast %1 : vector<16xf32> to vector<16x1xf32>
    %cst_1 = arith.constant 6.400000e+01 : f32
    %3 = vector.broadcast %cst_1 : f32 to vector<16x1xf32>
    %4 = arith.divf %2, %3 : vector<16x1xf32>
    %5 = vector.broadcast %4 : vector<16x1xf32> to vector<16x64xf32>
    %6 = arith.subf %0, %5 : vector<16x64xf32>
    %7 = arith.mulf %6, %6 : vector<16x64xf32>
    %cst_2 = arith.constant dense<0.000000e+00> : vector<16xf32>
    %8 = vector.multi_reduction <add>, %7, %cst_2 [1] : vector<16x64xf32> to vector<16xf32>
    %9 = vector.shape_cast %8 : vector<16xf32> to vector<16x1xf32>
    %cst_3 = arith.constant 6.400000e+01 : f32
    %10 = vector.broadcast %cst_3 : f32 to vector<16x1xf32>
    %11 = arith.divf %9, %10 : vector<16x1xf32>
    %12 = vector.broadcast %4 : vector<16x1xf32> to vector<16x64xf32>
    %13 = arith.subf %0, %12 : vector<16x64xf32>
    %cst_4 = arith.constant 9.99999974E-6 : f32
    %14 = vector.broadcast %cst_4 : f32 to vector<16x1xf32>
    %15 = arith.addf %11, %14 : vector<16x1xf32>
    %16 = math.rsqrt %15 : vector<16x1xf32>
    %17 = vector.broadcast %16 : vector<16x1xf32> to vector<16x64xf32>
    %18 = arith.mulf %13, %17 : vector<16x64xf32>
    %c0_5 = arith.constant 0 : index
    %c0_6 = arith.constant 0 : index
    %19 = vector.load %arg3[%c0_5, %c0_6] : memref<1x64xf32, #tpu.memory_space<vmem>>, vector<1x64xf32>
    %20 = vector.broadcast %19 : vector<1x64xf32> to vector<16x64xf32>
    %21 = arith.mulf %18, %20 : vector<16x64xf32>
    %c0_7 = arith.constant 0 : index
    %c0_8 = arith.constant 0 : index
    %22 = vector.load %arg4[%c0_7, %c0_8] : memref<1x64xf32, #tpu.memory_space<vmem>>, vector<1x64xf32>
    %23 = vector.broadcast %22 : vector<1x64xf32> to vector<16x64xf32>
    %24 = arith.addf %21, %23 : vector<16x64xf32>
    %25 = arith.truncf %24 : vector<16x64xf32> to vector<16x64xbf16>
    %c0_9 = arith.constant 0 : index
    %c0_10 = arith.constant 0 : index
    %26 = vector.load %arg5[%c0_9, %c0_10] : memref<64x256xbf16, #tpu.memory_space<vmem>>, vector<64x256xbf16>
    %cst_11 = arith.constant dense<0.000000e+00> : vector<16x256xf32>
    %27 = tpu.matmul %25, %26, %cst_11 {dimension_numbers = #tpu.dot_dimension_numbers<[1], [0], [0], [1], [0, 0, 1, 1], [], []>} : vector<16x64xbf16>, vector<64x256xbf16>, vector<16x256xf32> -> vector<16x256xf32>
    %c0_12 = arith.constant 0 : index
    %c0_13 = arith.constant 0 : index
    %28 = vector.load %arg6[%c0_12, %c0_13] : memref<1x256xf32, #tpu.memory_space<vmem>>, vector<1x256xf32>
    %29 = vector.broadcast %28 : vector<1x256xf32> to vector<16x256xf32>
    %30 = arith.addf %27, %29 : vector<16x256xf32>
    %cst_14 = arith.constant 1.702000e+00 : f32
    %31 = vector.broadcast %cst_14 : f32 to vector<16x256xf32>
    %32 = arith.mulf %31, %30 : vector<16x256xf32>
    %33 = arith.negf %32 : vector<16x256xf32>
    %34 = math.exp %33 : vector<16x256xf32>
    %cst_15 = arith.constant 1.000000e+00 : f32
    %35 = vector.broadcast %cst_15 : f32 to vector<16x256xf32>
    %36 = arith.addf %35, %34 : vector<16x256xf32>
    %37 = arith.divf %35, %36 : vector<16x256xf32>
    %38 = arith.mulf %30, %37 : vector<16x256xf32>
    %c0_16 = arith.constant 0 : index
    %c0_17 = arith.constant 0 : index
    %39 = vector.load %arg7[%c0_16, %c0_17] : memref<16x256xf32, #tpu.memory_space<vmem>>, vector<16x256xf32>
    tpu.vector_store %arg7[%c0_16, %c0_17], %38 {strides = array<i32>} : memref<16x256xf32, #tpu.memory_space<vmem>>, vector<16x256xf32>,
    return
  }
  func.func @transform_0(%arg0: i32, %arg1: i32) -> (i32, i32) {
    %c0_i32 = arith.constant 0 : i32
    %c0_i32_0 = arith.constant 0 : i32
    return %arg0, %c0_i32 : i32, i32
  }
  func.func @transform_1(%arg0: i32, %arg1: i32) -> (i32, i32) {
    %c0_i32 = arith.constant 0 : i32
    %c0_i32_0 = arith.constant 0 : i32
    %c0_i32_1 = arith.constant 0 : i32
    return %c0_i32, %c0_i32_0 : i32, i32
  }
  func.func @transform_2(%arg0: i32, %arg1: i32) -> (i32, i32) {
    %c0_i32 = arith.constant 0 : i32
    %c0_i32_0 = arith.constant 0 : i32
    %c0_i32_1 = arith.constant 0 : i32
    return %c0_i32, %c0_i32_0 : i32, i32
  }
  func.func @transform_3(%arg0: i32, %arg1: i32) -> (i32, i32) {
    %c0_i32 = arith.constant 0 : i32
    %c0_i32_0 = arith.constant 0 : i32
    return %c0_i32, %arg1 : i32, i32
  }
  func.func @transform_4(%arg0: i32, %arg1: i32) -> (i32, i32) {
    %c0_i32 = arith.constant 0 : i32
    %c0_i32_0 = arith.constant 0 : i32
    return %c0_i32, %arg1 : i32, i32
  }
  func.func @transform_5(%arg0: i32, %arg1: i32) -> (i32, i32) {
    %c0_i32 = arith.constant 0 : i32
    return %arg0, %arg1 : i32, i32
  }
}

module attributes {stable_mosaic.version = 11 : i64} {
  func.func @kernel(%arg0: i32, %arg1: i32, %arg2: i32, %arg3: memref<16x256xf32, #tpu.memory_space<vmem>>, %arg4: memref<256x128xbf16, #tpu.memory_space<vmem>>, %arg5: memref<1x128xf32, #tpu.memory_space<vmem>>, %arg6: memref<16x128xf32, #tpu.memory_space<vmem>>, %arg7: memref<16x128xf32, #tpu.memory_space<vmem>>, %arg8: memref<16x128xf32, #tpu.memory_space<vmem>>) attributes {dimension_semantics = [#tpu.dimension_semantics<parallel>, #tpu.dimension_semantics<parallel>, #tpu.dimension_semantics<arbitrary>], iteration_bounds = array<i64: 1, 1, 1>, scalar_prefetch = 0 : i64, scratch_operands = 1 : i64, tpu.core_type = #tpu.core_type<tc>, window_params = [{transform_indices = @transform_0, window_bounds = array<i64: 16, 256>}, {transform_indices = @transform_1, window_bounds = array<i64: 256, 128>}, {transform_indices = @transform_2, window_bounds = array<i64: 1, 128>}, {transform_indices = @transform_3, window_bounds = array<i64: 16, 128>}, {transform_indices = @transform_4, window_bounds = array<i64: 16, 128>}]} {
    %c0_i32 = arith.constant 0 : i32
    %0 = arith.cmpi eq, %arg2, %c0_i32 : i32
    %1 = arith.extui %0 : i1 to i32
    %c0_i32_0 = arith.constant 0 : i32
    %2 = arith.cmpi ne, %1, %c0_i32_0 : i32
    scf.if %2 {
      %cst_10 = arith.constant 0.000000e+00 : f32
      %13 = vector.broadcast %cst_10 : f32 to vector<16x128xf32>
      %c0_11 = arith.constant 0 : index
      %c0_12 = arith.constant 0 : index
      %14 = vector.load %arg8[%c0_11, %c0_12] : memref<16x128xf32, #tpu.memory_space<vmem>>, vector<16x128xf32>
      tpu.vector_store %arg8[%c0_11, %c0_12], %13 {strides = array<i32>} : memref<16x128xf32, #tpu.memory_space<vmem>>, vector<16x128xf32>,
    } else {
    }
    %c0 = arith.constant 0 : index
    %c0_1 = arith.constant 0 : index
    %3 = vector.load %arg8[%c0, %c0_1] : memref<16x128xf32, #tpu.memory_space<vmem>>, vector<16x128xf32>
    %c0_2 = arith.constant 0 : index
    %c0_3 = arith.constant 0 : index
    %4 = vector.load %arg3[%c0_2, %c0_3] : memref<16x256xf32, #tpu.memory_space<vmem>>, vector<16x256xf32>
    %5 = arith.truncf %4 : vector<16x256xf32> to vector<16x256xbf16>
    %c0_4 = arith.constant 0 : index
    %c0_5 = arith.constant 0 : index
    %6 = vector.load %arg4[%c0_4, %c0_5] : memref<256x128xbf16, #tpu.memory_space<vmem>>, vector<256x128xbf16>
    %cst = arith.constant dense<0.000000e+00> : vector<16x128xf32>
    %7 = tpu.matmul %5, %6, %cst {dimension_numbers = #tpu.dot_dimension_numbers<[1], [0], [0], [1], [0, 0, 1, 1], [], []>} : vector<16x256xbf16>, vector<256x128xbf16>, vector<16x128xf32> -> vector<16x128xf32>
    %8 = arith.addf %3, %7 : vector<16x128xf32>
    %c0_6 = arith.constant 0 : index
    %c0_7 = arith.constant 0 : index
    %9 = vector.load %arg8[%c0_6, %c0_7] : memref<16x128xf32, #tpu.memory_space<vmem>>, vector<16x128xf32>
    tpu.vector_store %arg8[%c0_6, %c0_7], %8 {strides = array<i32>} : memref<16x128xf32, #tpu.memory_space<vmem>>, vector<16x128xf32>,
    %c0_i32_8 = arith.constant 0 : i32
    %10 = arith.cmpi eq, %arg2, %c0_i32_8 : i32
    %11 = arith.extui %10 : i1 to i32
    %c0_i32_9 = arith.constant 0 : i32
    %12 = arith.cmpi ne, %11, %c0_i32_9 : i32
    scf.if %12 {
      %c0_10 = arith.constant 0 : index
      %c0_11 = arith.constant 0 : index
      %13 = vector.load %arg8[%c0_10, %c0_11] : memref<16x128xf32, #tpu.memory_space<vmem>>, vector<16x128xf32>
      %c0_12 = arith.constant 0 : index
      %c0_13 = arith.constant 0 : index
      %14 = vector.load %arg5[%c0_12, %c0_13] : memref<1x128xf32, #tpu.memory_space<vmem>>, vector<1x128xf32>
      %15 = vector.broadcast %14 : vector<1x128xf32> to vector<16x128xf32>
      %16 = arith.addf %13, %15 : vector<16x128xf32>
      %c0_14 = arith.constant 0 : index
      %c0_15 = arith.constant 0 : index
      %17 = vector.load %arg6[%c0_14, %c0_15] : memref<16x128xf32, #tpu.memory_space<vmem>>, vector<16x128xf32>
      %18 = arith.addf %16, %17 : vector<16x128xf32>
      %c0_16 = arith.constant 0 : index
      %c0_17 = arith.constant 0 : index
      %19 = vector.load %arg7[%c0_16, %c0_17] : memref<16x128xf32, #tpu.memory_space<vmem>>, vector<16x128xf32>
      tpu.vector_store %arg7[%c0_16, %c0_17], %18 {strides = array<i32>} : memref<16x128xf32, #tpu.memory_space<vmem>>, vector<16x128xf32>,
    } else {
    }
    return
  }
  func.func @transform_0(%arg0: i32, %arg1: i32, %arg2: i32) -> (i32, i32) {
    %c0_i32 = arith.constant 0 : i32
    return %arg0, %arg2 : i32, i32
  }
  func.func @transform_1(%arg0: i32, %arg1: i32, %arg2: i32) -> (i32, i32) {
    %c0_i32 = arith.constant 0 : i32
    return %arg2, %arg1 : i32, i32
  }
  func.func @transform_2(%arg0: i32, %arg1: i32, %arg2: i32) -> (i32, i32) {
    %c0_i32 = arith.constant 0 : i32
    %c0_i32_0 = arith.constant 0 : i32
    return %c0_i32, %arg1 : i32, i32
  }
  func.func @transform_3(%arg0: i32, %arg1: i32, %arg2: i32) -> (i32, i32) {
    %c0_i32 = arith.constant 0 : i32
    return %arg0, %arg1 : i32, i32
  }
  func.func @transform_4(%arg0: i32, %arg1: i32, %arg2: i32) -> (i32, i32) {
    %c0_i32 = arith.constant 0 : i32
    return %arg0, %arg1 : i32, i32
  }
}

module attributes {stable_mosaic.version = 11 : i64} {
  func.func @kernel(%arg0: i32, %arg1: i32, %arg2: memref<8x64xf32, #tpu.memory_space<vmem>>, %arg3: memref<1x64xf32, #tpu.memory_space<vmem>>, %arg4: memref<1x64xf32, #tpu.memory_space<vmem>>, %arg5: memref<64x128xbf16, #tpu.memory_space<vmem>>, %arg6: memref<8x128xf32, #tpu.memory_space<vmem>>) attributes {dimension_semantics = [#tpu.dimension_semantics<parallel>, #tpu.dimension_semantics<parallel>], iteration_bounds = array<i64: 1, 1>, scalar_prefetch = 0 : i64, scratch_operands = 0 : i64, tpu.core_type = #tpu.core_type<tc>, window_params = [{transform_indices = @transform_0, window_bounds = array<i64: 8, 64>}, {pipeline_mode = #tpu.pipeline_mode<synchronous>, transform_indices = @transform_1, window_bounds = array<i64: 1, 64>}, {pipeline_mode = #tpu.pipeline_mode<synchronous>, transform_indices = @transform_2, window_bounds = array<i64: 1, 64>}, {transform_indices = @transform_3, window_bounds = array<i64: 64, 128>}, {transform_indices = @transform_4, window_bounds = array<i64: 8, 128>}]} {
    %c0 = arith.constant 0 : index
    %c0_0 = arith.constant 0 : index
    %0 = vector.load %arg2[%c0, %c0_0] : memref<8x64xf32, #tpu.memory_space<vmem>>, vector<8x64xf32>
    %cst = arith.constant dense<0.000000e+00> : vector<8xf32>
    %1 = vector.multi_reduction <add>, %0, %cst [1] : vector<8x64xf32> to vector<8xf32>
    %2 = vector.shape_cast %1 : vector<8xf32> to vector<8x1xf32>
    %cst_1 = arith.constant 6.400000e+01 : f32
    %3 = vector.broadcast %cst_1 : f32 to vector<8x1xf32>
    %4 = arith.divf %2, %3 : vector<8x1xf32>
    %5 = vector.broadcast %4 : vector<8x1xf32> to vector<8x64xf32>
    %6 = arith.subf %0, %5 : vector<8x64xf32>
    %7 = arith.mulf %6, %6 : vector<8x64xf32>
    %cst_2 = arith.constant dense<0.000000e+00> : vector<8xf32>
    %8 = vector.multi_reduction <add>, %7, %cst_2 [1] : vector<8x64xf32> to vector<8xf32>
    %9 = vector.shape_cast %8 : vector<8xf32> to vector<8x1xf32>
    %cst_3 = arith.constant 6.400000e+01 : f32
    %10 = vector.broadcast %cst_3 : f32 to vector<8x1xf32>
    %11 = arith.divf %9, %10 : vector<8x1xf32>
    %12 = vector.broadcast %4 : vector<8x1xf32> to vector<8x64xf32>
    %13 = arith.subf %0, %12 : vector<8x64xf32>
    %cst_4 = arith.constant 9.99999974E-6 : f32
    %14 = vector.broadcast %cst_4 : f32 to vector<8x1xf32>
    %15 = arith.addf %11, %14 : vector<8x1xf32>
    %16 = math.rsqrt %15 : vector<8x1xf32>
    %17 = vector.broadcast %16 : vector<8x1xf32> to vector<8x64xf32>
    %18 = arith.mulf %13, %17 : vector<8x64xf32>
    %c0_5 = arith.constant 0 : index
    %c0_6 = arith.constant 0 : index
    %19 = vector.load %arg3[%c0_5, %c0_6] : memref<1x64xf32, #tpu.memory_space<vmem>>, vector<1x64xf32>
    %20 = vector.broadcast %19 : vector<1x64xf32> to vector<8x64xf32>
    %21 = arith.mulf %18, %20 : vector<8x64xf32>
    %c0_7 = arith.constant 0 : index
    %c0_8 = arith.constant 0 : index
    %22 = vector.load %arg4[%c0_7, %c0_8] : memref<1x64xf32, #tpu.memory_space<vmem>>, vector<1x64xf32>
    %23 = vector.broadcast %22 : vector<1x64xf32> to vector<8x64xf32>
    %24 = arith.addf %21, %23 : vector<8x64xf32>
    %25 = arith.truncf %24 : vector<8x64xf32> to vector<8x64xbf16>
    %c0_9 = arith.constant 0 : index
    %c0_10 = arith.constant 0 : index
    %26 = vector.load %arg5[%c0_9, %c0_10] : memref<64x128xbf16, #tpu.memory_space<vmem>>, vector<64x128xbf16>
    %cst_11 = arith.constant dense<0.000000e+00> : vector<8x128xf32>
    %27 = tpu.matmul %25, %26, %cst_11 {dimension_numbers = #tpu.dot_dimension_numbers<[1], [0], [0], [1], [0, 0, 1, 1], [], []>} : vector<8x64xbf16>, vector<64x128xbf16>, vector<8x128xf32> -> vector<8x128xf32>
    %c0_12 = arith.constant 0 : index
    %c0_13 = arith.constant 0 : index
    %28 = vector.load %arg6[%c0_12, %c0_13] : memref<8x128xf32, #tpu.memory_space<vmem>>, vector<8x128xf32>
    tpu.vector_store %arg6[%c0_12, %c0_13], %27 {strides = array<i32>} : memref<8x128xf32, #tpu.memory_space<vmem>>, vector<8x128xf32>,
    return
  }
  func.func @transform_0(%arg0: i32, %arg1: i32) -> (i32, i32) {
    %c0_i32 = arith.constant 0 : i32
    %c0_i32_0 = arith.constant 0 : i32
    return %arg0, %c0_i32 : i32, i32
  }
  func.func @transform_1(%arg0: i32, %arg1: i32) -> (i32, i32) {
    %c0_i32 = arith.constant 0 : i32
    %c0_i32_0 = arith.constant 0 : i32
    %c0_i32_1 = arith.constant 0 : i32
    return %c0_i32, %c0_i32_0 : i32, i32
  }
  func.func @transform_2(%arg0: i32, %arg1: i32) -> (i32, i32) {
    %c0_i32 = arith.constant 0 : i32
    %c0_i32_0 = arith.constant 0 : i32
    %c0_i32_1 = arith.constant 0 : i32
    return %c0_i32, %c0_i32_0 : i32, i32
  }
  func.func @transform_3(%arg0: i32, %arg1: i32) -> (i32, i32) {
    %c0_i32 = arith.constant 0 : i32
    %c0_i32_0 = arith.constant 0 : i32
    return %c0_i32, %arg1 : i32, i32
  }
  func.func @transform_4(%arg0: i32, %arg1: i32) -> (i32, i32) {
    %c0_i32 = arith.constant 0 : i32
    return %arg0, %arg1 : i32, i32
  }
}

module attributes {stable_mosaic.version = 11 : i64} {
  func.func @_l2norm_kernel(%arg0: i32, %arg1: memref<8x32xf32, #tpu.memory_space<vmem>>, %arg2: memref<8x32xf32, #tpu.memory_space<vmem>>) attributes {dimension_semantics = [#tpu.dimension_semantics<parallel>], iteration_bounds = array<i64: 1>, scalar_prefetch = 0 : i64, scratch_operands = 0 : i64, tpu.core_type = #tpu.core_type<tc>, window_params = [{transform_indices = @transform_0, window_bounds = array<i64: 8, 32>}, {transform_indices = @transform_1, window_bounds = array<i64: 8, 32>}]} {
    %c0 = arith.constant 0 : index
    %c0_0 = arith.constant 0 : index
    %0 = vector.load %arg1[%c0, %c0_0] : memref<8x32xf32, #tpu.memory_space<vmem>>, vector<8x32xf32>
    %1 = arith.mulf %0, %0 : vector<8x32xf32>
    %cst = arith.constant dense<0.000000e+00> : vector<8xf32>
    %2 = vector.multi_reduction <add>, %1, %cst [1] : vector<8x32xf32> to vector<8xf32>
    %3 = vector.shape_cast %2 : vector<8xf32> to vector<8x1xf32>
    %4 = math.sqrt %3 : vector<8x1xf32>
    %5 = vector.broadcast %4 : vector<8x1xf32> to vector<8x32xf32>
    %6 = arith.divf %0, %5 : vector<8x32xf32>
    %c0_1 = arith.constant 0 : index
    %c0_2 = arith.constant 0 : index
    %7 = vector.load %arg2[%c0_1, %c0_2] : memref<8x32xf32, #tpu.memory_space<vmem>>, vector<8x32xf32>
    tpu.vector_store %arg2[%c0_1, %c0_2], %6 {strides = array<i32>} : memref<8x32xf32, #tpu.memory_space<vmem>>, vector<8x32xf32>,
    return
  }
  func.func @transform_0(%arg0: i32) -> (i32, i32) {
    %c0_i32 = arith.constant 0 : i32
    %c0_i32_0 = arith.constant 0 : i32
    return %arg0, %c0_i32 : i32, i32
  }
  func.func @transform_1(%arg0: i32) -> (i32, i32) {
    %c0_i32 = arith.constant 0 : i32
    %c0_i32_0 = arith.constant 0 : i32
    return %arg0, %c0_i32 : i32, i32
  }
}

</mosaic_0001>

<bundles_post_ra>
// kernel: _lambda_.15
= control target key start
LH: loop header
LB: loop body
LE: loop exit
PB: predicated region body
PF: predicated region fallthrough
CT: control target
= control target key end

     0   :  { %s757_s9 = smov 0   ;;  %s759_s10 = smov 0   ;;  %s864_s0 = inlined_call_operand.vmem [shape: f32[32,768], index: 0, kind: input, shape index: {}]   ;;  %s865_s1 = inlined_call_operand.vmem [shape: bf16[768,128], index: 1, kind: input, shape index: {}]   ;;  %s866_s2 = inlined_call_operand.vmem [shape: f32[32,128], index: 2, kind: output, shape index: {}]  }
   0x1   :  { %s761_s11 = smov 0   ;;  %s763_s12 = smov 0  }
   0x2   :  { %s765_s13 = smov 0  }
   0x3 LB: > { %s24_s14 = sadd.s32 1, %s735_s12  ;;  %p47_p1 = scmp.ne.s32.totalorder %s727_s10, %s723_s9  ;;  %s739_s13 = sphi %s765_s13, %s12_s13   ;;  %s735_s12 = sphi %s763_s12, %s870_s12   ;;  %s731_s11 = sphi %s761_s11, %s869_s11   ;;  %s727_s10 = sphi %s759_s10, %s868_s10   ;;  %s723_s9 = sphi %s757_s9, %s867_s9  }
   0x4   : > { %p25_p0 = scmp.ge.s32.totalorder %s24_s14, 3  ;;  %p48_p2 = scmp.eq.s32.totalorder %s739_s13, 0 }
   0x5   : > { %s40_s16 = sadd.s32 1, %s727_s10  ;;  %p569_p5 = scmp.ge.s32.totalorder %s739_s13, 3 }
   0x6   : > { %s872_s14 = smov (%p25_p0, %s24_s14), 0  ;;  %p49_p3 = por %p48_p2, %p47_p1 }
   0x7   : > { %s36_s15 = ssub.s32 %s735_s12, %s872_s14  ;;  %129 = sbr.rel (%p569_p5) target bundleno = 22 (0x16), region = 16 }
   0x8   : > { %p38_p4 = scmp.eq.s32.totalorder %s36_s15, 0 }
   0xa   : > { %s792_s17 = scalar_select %p38_p4, %s727_s10, %s40_s16  }
   0xe   : > { %132 = sbr.rel (!%p49_p3) target bundleno = 22 (0x16), region = 20  ;;  %s134_s18 = sand.u32 (%p49_p3), 1, %s727_s10  }
   0xf   : > { %s599_s19 = sshll.u32 (%p49_p3), %s735_s12, 4  ;;  %s570_s20 = sshll.u32 (%p49_p3), %s134_s18, 6 }
  0x10   : > { %s142_s23 = scalar_lea.vmem (%p49_p3), %s864_s0, %s599_s19  ;;  %s136_s24 = scalar_lea.vmem (%p49_p3), [#allocation3], %s570_s20 }
  0x11   : > { %v155_v0 = vld [vmem:[%s142_s23] sm:$0xff] (%p49_p3)  ;;  %v157_v1 = vld [vmem:[%s142_s23 + $0x8] sm:$0xff] (%p49_p3)  ;;  %v159_v2 = vld [vmem:[%s142_s23 + $0x30] sm:$0xff] (%p49_p3) }
  0x12   : > { %156 = vst [vmem:[%s136_s24] sm:$0xff] (%p49_p3), %v155_v0  ;;  %158 = vst [vmem:[%s136_s24 + $0x8] sm:$0xff] (%p49_p3), %v157_v1  ;;  %v161_v3 = vld [vmem:[%s142_s23 + $0x38] sm:$0xff] (%p49_p3)  ;;  %v163_v4 = vld [vmem:[%s142_s23 + $0x60] sm:$0xff] (%p49_p3) }
  0x13   : > { %160 = vst [vmem:[%s136_s24 + $0x10] sm:$0xff] (%p49_p3), %v159_v2  ;;  %v165_v5 = vld [vmem:[%s142_s23 + $0x68] sm:$0xff] (%p49_p3)  ;;  %162 = vst [vmem:[%s136_s24 + $0x18] sm:$0xff] (%p49_p3), %v161_v3  ;;  %v167_v6 = vld [vmem:[%s142_s23 + $0x90] sm:$0xff] (%p49_p3) }
  0x14   : > { %164 = vst [vmem:[%s136_s24 + $0x20] sm:$0xff] (%p49_p3), %v163_v4  ;;  %166 = vst [vmem:[%s136_s24 + $0x28] sm:$0xff] (%p49_p3), %v165_v5  ;;  %v169_v7 = vld [vmem:[%s142_s23 + $0x98] sm:$0xff] (%p49_p3) }
  0x15   : > { %168 = vst [vmem:[%s136_s24 + $0x30] sm:$0xff] %v167_v6  ;;  %170 = vst [vmem:[%s136_s24 + $0x38] sm:$0xff] %v169_v7 }
  0x16 PF: > { %p573_p6 = scmp.ge.s32.totalorder %s739_s13, 1  ;;  %p187_p7 = scmp.lt.s32.totalorder %s739_s13, 4 }
  0x18   : > { %p188_p8 = pnand %p573_p6, %p187_p7 }
  0x19   : > { %s194_s25 = sand.u32 (!%p188_p8), 1, %s723_s9   ;;  %s575_s26 = sshll.u32 (!%p188_p8), %s731_s11, 5 }
  0x1a   : > { %191 = sbr.rel (%p188_p8) target bundleno = 301 (0x12d), region = 47  ;;  %s574_s27 = sshll.u32 (!%p188_p8), %s194_s25, 6 }
  0x1b   : > { %p229_p9 = scmp.lt.s32.totalorder (!%p188_p8), %s575_s26, 95  ;;  %s809_s4 = scalar_lea.vmem (!%p188_p8), [#allocation3], %s574_s27 }
  0x1c   : > { %p577_p10 = scmp.ne.s32.totalorder (!%p188_p8), %s731_s11, 0 }
  0x21   : > { %s874_s26 = smov (!%p229_p9, %s575_s26), 95  ;;  %250 = sbr.rel (%p577_p10) target bundleno = 40 (0x28), region = 55 }
  0x22   : > { %s576_s28 = sshll.u32 %s874_s26, 2  ;;  %v741_v8 = vmov (!%p577_p10), 0.0  }
  0x23   : > { %s807_s3 = scalar_lea.vmem %s865_s1, %s576_s28  ;;  %251 = vst [vmem:[#allocation2] sm:$0xff] (!%p577_p10), %v741_v8  ;;  %252 = vst [vmem:[#allocation2 + $0x8] sm:$0xff] (!%p577_p10), %v741_v8 }
  0x24   : > { %253 = vst [vmem:[#allocation2 + $0x10] sm:$0xff] (!%p577_p10), %v741_v8  ;;  %254 = vst [vmem:[#allocation2 + $0x18] sm:$0xff] (!%p577_p10), %v741_v8 }
  0x28 PF: > { %v685_v9 = vld [vmem:[%s807_s3 + $0x40] sm:$0xff]   ;;  %v687_v11 = vld [vmem:[%s807_s3 + $0x48] sm:$0xff]   ;;  %v689_v13 = vld [vmem:[%s807_s3 + $0x50] sm:$0xff]   ;;  %p594_p11 = scmp.ne.s32.totalorder %s731_s11, 2 }
  0x29   : > { %v686_v10 = vld [vmem:[%s807_s3] sm:$0xff]   ;;  %600 = vmatprep.subr.bf16.mxu0 %v685_v9  ;;  %628 = vmatprep.subr.bf16.mxu1 %v685_v9  ;;  %v688_v12 = vld [vmem:[%s807_s3 + $0x8] sm:$0xff]   ;;  %v690_v14 = vld [vmem:[%s807_s3 + $0x10] sm:$0xff]  }
  0x2a   : > { %601 = vmatpush3.bf16.msra.mxu0 %v686_v10  ;;  %636 = vmatpush3.bf16.msra.mxu1 %v686_v10  ;;  %v691_v15 = vld [vmem:[%s807_s3 + $0x58] sm:$0xff]   ;;  %v693_v17 = vld [vmem:[%s807_s3 + $0x60] sm:$0xff]   ;;  %v695_v19 = vld [vmem:[%s807_s3 + $0x68] sm:$0xff]  }
  0x2b   : > { %602 = vmatprep.subr.bf16.mxu0 %v687_v11  ;;  %629 = vmatprep.subr.bf16.mxu1 %v687_v11  ;;  %v692_v16 = vld [vmem:[%s807_s3 + $0x18] sm:$0xff]   ;;  %v694_v18 = vld [vmem:[%s807_s3 + $0x20] sm:$0xff]   ;;  %v260_v20 = vld [vmem:[%s809_s4 + $0x8] sm:$0xff] }
  0x2c   : > { %v262_v21 = vld [vmem:[%s809_s4 + $0x18] sm:$0xff]  ;;  %v264_v22 = vld [vmem:[%s809_s4 + $0x28] sm:$0xff]  ;;  %v697_v27 = vld [vmem:[%s807_s3 + $0x70] sm:$0xff]  }
  0x2d   : > { %v268_v23 = vpack.c.bf16 %v262_v21, %v260_v20  ;;  %v266_v24 = vld [vmem:[%s809_s4 + $0x38] sm:$0xff]  ;;  %v696_v26 = vld [vmem:[%s807_s3 + $0x28] sm:$0xff]   ;;  %v698_v28 = vld [vmem:[%s807_s3 + $0x30] sm:$0xff]  }
  0x2e   : > { %603 = vmatpush3.bf16.msra.mxu0 %v688_v12  ;;  %637 = vmatpush3.bf16.msra.mxu1 %v688_v12  ;;  %v270_v25 = vpack.c.bf16 %v266_v24, %v264_v22  ;;  %v699_v29 = vld [vmem:[%s807_s3 + $0x78] sm:$0xff]   ;;  %v259_v31 = vld [vmem:[%s809_s4] sm:$0xff]  ;;  %v261_v32 = vld [vmem:[%s809_s4 + $0x10] sm:$0xff] }
  0x2f   : > { %604 = vmatprep.subr.bf16.mxu0 %v689_v13  ;;  %630 = vmatprep.subr.bf16.mxu1 %v689_v13  ;;  %v700_v30 = vld [vmem:[%s807_s3 + $0x38] sm:$0xff]   ;;  %v263_v33 = vld [vmem:[%s809_s4 + $0x20] sm:$0xff]  ;;  %v265_v34 = vld [vmem:[%s809_s4 + $0x30] sm:$0xff]  ;;  %v267_v35 = vpack.c.bf16 %v261_v32, %v259_v31 }
  0x30   : > { %431 = vmatprep.mubr.bf16.mxu0 %v268_v23  ;;  %439 = vmatprep.mubr.bf16.mxu1 %v270_v25  ;;  %v269_v36 = vpack.c.bf16 %v265_v34, %v263_v33  ;;  %v255_v39 = vld [vmem:[#allocation2] sm:$0xff]  ;;  %v257_v41 = vld [vmem:[#allocation2 + $0x10] sm:$0xff]  ;;  %v256_v47 = vld [vmem:[#allocation2 + $0x8] sm:$0xff] }
  0x31   : > { %v258_v49 = vld [vmem:[#allocation2 + $0x18] sm:$0xff] }
  0x32   : > { %605 = vmatpush3.bf16.msra.mxu0 %v690_v14  ;;  %638 = vmatpush3.bf16.msra.mxu1 %v690_v14 }
  0x33   : > { %606 = vmatprep.subr.bf16.mxu0 %v691_v15  ;;  %631 = vmatprep.subr.bf16.mxu1 %v691_v15 }
  0x36   : > { %607 = vmatpush3.bf16.msra.mxu0 %v692_v16  ;;  %639 = vmatpush3.bf16.msra.mxu1 %v692_v16 }
  0x37   : > { %608 = vmatprep.subr.bf16.mxu0 %v693_v17  ;;  %632 = vmatprep.subr.bf16.mxu1 %v693_v17 }
  0x3a   : > { %609 = vmatpush3.bf16.msra.mxu0 %v694_v18  ;;  %640 = vmatpush3.bf16.msra.mxu1 %v694_v18 }
  0x3b   : > { %610 = vmatprep.subr.bf16.mxu0 %v695_v19  ;;  %633 = vmatprep.subr.bf16.mxu1 %v695_v19 }
  0x3e   : > { %611 = vmatpush3.bf16.msra.mxu0 %v696_v26  ;;  %641 = vmatpush3.bf16.msra.mxu1 %v696_v26 }
  0x3f   : > { %612 = vmatprep.subr.bf16.mxu0 %v697_v27  ;;  %634 = vmatprep.subr.bf16.mxu1 %v697_v27 }
  0x42   : > { %613 = vmatpush3.bf16.msra.mxu0 %v698_v28  ;;  %642 = vmatpush3.bf16.msra.mxu1 %v698_v28 }
  0x43   : > { %614 = vmatprep.subr.bf16.mxu0 %v699_v29  ;;  %635 = vmatprep.subr.bf16.mxu1 %v699_v29 }
  0x46   : > { %615 = vmatpush3.bf16.msra.mxu0 %v700_v30  ;;  %643 = vmatpush3.bf16.msra.mxu1 %v700_v30 }
  0x49   : > { %432 = vmatmul.mubr.bf16.vlgmr.msra.gmra.mrb[0].mxu0 %v267_v35  ;;  %440 = vmatmul.mubr.bf16.vlgmr.msra.gmra.mrb[0].mxu1 %v269_v36 }
 0x11c   : > { %v616_v37 = vpop.f32.mrb[0].mxu0  ;;  %v622_v38 = vpop.f32.mrb[0].mxu1 }
 0x11d   : > { %v617_v40 = vpop.f32.mrb[1].mxu0  ;;  %v623_v42 = vpop.f32.mrb[1].mxu1 }
 0x11e   : > { %v618_v43 = vadd.f32 %v617_v40, %v616_v37  ;;  %v624_v44 = vadd.f32 %v623_v42, %v622_v38  ;;  %v619_v45 = vpop.f32.mrb[2].mxu0  ;;  %v625_v46 = vpop.f32.mrb[2].mxu1  ;;  %459 = sbr.rel (%p594_p11) target bundleno = 301 (0x12d), region = 59 }
 0x11f   : > { %v620_v48 = vpop.f32.mrb[3].mxu0  ;;  %v626_v50 = vpop.f32.mrb[3].mxu1 }
 0x120   : > { %v448_v51 = vadd.f32 %v618_v43, %v255_v39  ;;  %v450_v52 = vadd.f32 %v624_v44, %v257_v41  ;;  %v621_v53 = vadd.f32 %v620_v48, %v619_v45  ;;  %v627_v54 = vadd.f32 %v626_v50, %v625_v46 }
 0x122   : > { %452 = vst [vmem:[#allocation2] sm:$0xff] %v448_v51  ;;  %454 = vst [vmem:[#allocation2 + $0x10] sm:$0xff] %v450_v52  ;;  %v449_v55 = vadd.f32 %v621_v53, %v256_v47  ;;  %v451_v56 = vadd.f32 %v627_v54, %v258_v49 }
 0x124   : > { %453 = vst [vmem:[#allocation2 + $0x8] sm:$0xff] %v449_v55  ;;  %455 = vst [vmem:[#allocation2 + $0x18] sm:$0xff] %v451_v56 }
 0x129   : > { %v460_v57 = vld [vmem:[#allocation2] sm:$0xff]  ;;  %v462_v59 = vld [vmem:[#allocation2 + $0x10] sm:$0xff] }
 0x12a   : > { %464 = vst [vmem:[%s866_s2] sm:$0xff] %v460_v57  ;;  %466 = vst [vmem:[%s866_s2 + $0x10] sm:$0xff] %v462_v59 }
 0x12b   : > { %v461_v58 = vld [vmem:[#allocation2 + $0x8] sm:$0xff]  ;;  %v463_v60 = vld [vmem:[#allocation2 + $0x18] sm:$0xff] }
 0x12c   : > { %465 = vst [vmem:[%s866_s2 + $0x8] sm:$0xff] %v461_v58  ;;  %467 = vst [vmem:[%s866_s2 + $0x18] sm:$0xff] %v463_v60 }
 0x12d PF: > { %s12_s13 = sadd.s32 1, %s739_s13   ;;  %s867_s9 = smov %s727_s10 }
 0x12e   : > { %p9_p12 = scmp.ge.s32.totalorder %s12_s13, 5   ;;  %s868_s10 = smov %s792_s17 }
 0x12f   : > { %s869_s11 = smov %s735_s12  ;;  %s870_s12 = smov %s872_s14 }
 0x130   :  { %11 = sbr.rel (!%p9_p12) target bundleno = 3 (0x3), region = 97 }

// kernel: _lambda_.16
= control target key start
LH: loop header
LB: loop body
LE: loop exit
PB: predicated region body
PF: predicated region fallthrough
CT: control target
= control target key end

     0   :  { %vm19_vm0 = vcmask 523264   ;;  %s202_s0 = inlined_call_operand.vmem [shape: f32[40,64], index: 0, kind: input, shape index: {}]   ;;  %s203_s1 = inlined_call_operand.vmem [shape: f32[1,64], index: 1, kind: input, shape index: {}]   ;;  %s204_s2 = inlined_call_operand.vmem [shape: f32[1,64], index: 2, kind: input, shape index: {}]   ;;  %s205_s3 = inlined_call_operand.vmem [shape: f32[40,64], index: 3, kind: output, shape index: {}]  }
   0x1   :  { %v14_v0 = vld [vmem:[%s202_s0] sm:$0xff]  ;;  %v16_v1 = vld [vmem:[%s202_s0 + $0x10] sm:$0xff]  ;;  %v15_v2 = vld [vmem:[%s202_s0 + $0x8] sm:$0xff] }
   0x2   :  { %v20_v3 = vsel %vm19_vm0, %v14_v0, 0.0  ;;  %v26_v4 = vsel %vm19_vm0, %v16_v1, 0.0  ;;  %v17_v5 = vld [vmem:[%s202_s0 + $0x18] sm:$0xff]  ;;  %v23_v6 = vsel %vm19_vm0, %v15_v2, 0.0  ;;  %v18_v8 = vld [vmem:[%s202_s0 + $0x20] sm:$0xff] }
   0x3   :  { %21 = vadd.xlane.f32.xlu0 %v20_v3  ;;  %27 = vadd.xlane.f32.xlu1 %v26_v4  ;;  %v29_v7 = vsel %vm19_vm0, %v17_v5, 0.0  ;;  %v32_v9 = vsel %vm19_vm0, %v18_v8, 0.0  ;;  %v119_v51 = vld [vmem:[%s203_s1] ss:$0 sm:$0xff] }
   0x4   :  { %v120_v53 = vld [vmem:[%s204_s2] ss:$0 sm:$0xff] }
   0x7   :  { %24 = vadd.xlane.f32.xlu0 %v23_v6  ;;  %30 = vadd.xlane.f32.xlu1 %v29_v7 }
   0xb   :  { %33 = vadd.xlane.f32.xlu0 %v32_v9 }
  0x90   :  { %v22_v10 = vpop.xlane.xlu0 %21  ;;  %v28_v11 = vpop.xlane.xlu1 %27 }
  0x91   :  { %v36_v12 = vmul.f32 0.015625, %v22_v10  ;;  %v38_v13 = vmul.f32 0.015625, %v28_v11 }
  0x93   :  { %v41_v14 = vsub.f32 %v14_v0, %v36_v12  ;;  %v43_v15 = vsub.f32 %v16_v1, %v38_v13 }
  0x94   :  { %v25_v16 = vpop.xlane.xlu0 %24  ;;  %v31_v17 = vpop.xlane.xlu1 %30 }
  0x95   :  { %v37_v18 = vmul.f32 0.015625, %v25_v16  ;;  %v39_v19 = vmul.f32 0.015625, %v31_v17  ;;  %v46_v20 = vmul.f32 %v41_v14, %v41_v14  ;;  %v48_v21 = vmul.f32 %v43_v15, %v43_v15 }
  0x97   :  { %v42_v22 = vsub.f32 %v15_v2, %v37_v18  ;;  %v44_v23 = vsub.f32 %v17_v5, %v39_v19  ;;  %v51_v24 = vsel %vm19_vm0, %v46_v20, 0.0  ;;  %v57_v27 = vsel %vm19_vm0, %v48_v21, 0.0 }
  0x98   :  { %52 = vadd.xlane.f32.xlu1 %v51_v24  ;;  %v34_v25 = vpop.xlane.xlu0 %33 }
  0x99   :  { %v40_v26 = vmul.f32 0.015625, %v34_v25  ;;  %v47_v28 = vmul.f32 %v42_v22, %v42_v22  ;;  %v49_v29 = vmul.f32 %v44_v23, %v44_v23 }
  0x9b   :  { %v45_v30 = vsub.f32 %v18_v8, %v40_v26  ;;  %v54_v31 = vsel %vm19_vm0, %v47_v28, 0.0  ;;  %v60_v32 = vsel %vm19_vm0, %v49_v29, 0.0 }
  0x9c   :  { %58 = vadd.xlane.f32.xlu1 %v57_v27  ;;  %55 = vadd.xlane.f32.xlu0 %v54_v31 }
  0x9d   :  { %v50_v33 = vmul.f32 %v45_v30, %v45_v30 }
  0x9f   :  { %v63_v34 = vsel %vm19_vm0, %v50_v33, 0.0 }
  0xa0   :  { %61 = vadd.xlane.f32.xlu0 %v60_v32  ;;  %64 = vadd.xlane.f32.xlu1 %v63_v34 }
 0x125   :  { %v53_v35 = vpop.xlane.xlu1 %52 }
 0x126   :  { %v66_v36 = vmul.f32 0.015625, %v53_v35 }
 0x128   :  { %v71_v37 = vadd.f32 1e-05, %v66_v36 }
 0x129   :  { %v59_v38 = vpop.xlane.xlu1 %58  ;;  %v56_v39 = vpop.xlane.xlu0 %55 }
 0x12a   :  { %121 = vrsqrt.f32 %v71_v37  ;;  %v68_v40 = vmul.f32 0.015625, %v59_v38  ;;  %v67_v41 = vmul.f32 0.015625, %v56_v39 }
 0x12c   :  { %v73_v42 = vadd.f32 1e-05, %v68_v40  ;;  %v72_v43 = vadd.f32 1e-05, %v67_v41 }
 0x12d   :  { %v65_v44 = vpop.xlane.xlu1 %64  ;;  %v62_v45 = vpop.xlane.xlu0 %61 }
 0x12e   :  { %123 = vrsqrt.f32 %v73_v42  ;;  %v70_v46 = vmul.f32 0.015625, %v65_v44  ;;  %v69_v47 = vmul.f32 0.015625, %v62_v45 }
 0x12f   :  { %125 = vrsqrt.f32 %v72_v43 }
 0x130   :  { %v75_v48 = vadd.f32 1e-05, %v70_v46  ;;  %v74_v49 = vadd.f32 1e-05, %v69_v47 }
 0x132   :  { %127 = vrsqrt.f32 %v75_v48 }
 0x133   :  { %129 = vrsqrt.f32 %v74_v49 }
 0x134   :  { %v122_v50 = vpop.eup %121 }
 0x135   :  { %v81_v52 = vmul.f32 %v122_v50, %v41_v14 }
 0x137   :  { %v93_v54 = vmul.f32 %v119_v51, %v81_v52 }
 0x138   :  { %v124_v55 = vpop.eup %123 }
 0x139   :  { %v126_v56 = vpop.eup %125  ;;  %v105_v57 = vadd.f32 %v120_v53, %v93_v54  ;;  %v83_v58 = vmul.f32 %v124_v55, %v43_v15 }
 0x13a   :  { %v82_v59 = vmul.f32 %v126_v56, %v42_v22 }
 0x13b   :  { %110 = vst.msk [vmem:[%s205_s3] sm:$0xff] %vm19_vm0, %v105_v57  ;;  %v95_v60 = vmul.f32 %v119_v51, %v83_v58 }
 0x13c   :  { %v128_v61 = vpop.eup %127  ;;  %v94_v62 = vmul.f32 %v119_v51, %v82_v59 }
 0x13d   :  { %v130_v63 = vpop.eup %129  ;;  %v107_v0 = vadd.f32 %v120_v53, %v95_v60  ;;  %v85_v1 = vmul.f32 %v128_v61, %v45_v30 }
 0x13e   :  { %v106_v2 = vadd.f32 %v120_v53, %v94_v62  ;;  %v84_v3 = vmul.f32 %v130_v63, %v44_v23 }
 0x13f   :  { %112 = vst.msk [vmem:[%s205_s3 + $0x10] sm:$0xff] %vm19_vm0, %v107_v0  ;;  %v97_v4 = vmul.f32 %v119_v51, %v85_v1 }
 0x140   :  { %111 = vst.msk [vmem:[%s205_s3 + $0x8] sm:$0xff] %vm19_vm0, %v106_v2  ;;  %v96_v5 = vmul.f32 %v119_v51, %v84_v3 }
 0x141   :  { %v109_v6 = vadd.f32 %v120_v53, %v97_v4 }
 0x142   :  { %v108_v7 = vadd.f32 %v120_v53, %v96_v5 }
 0x143   :  { %114 = vst.msk [vmem:[%s205_s3 + $0x20] sm:$0xff] %vm19_vm0, %v109_v6 }
 0x144   :  { %113 = vst.msk [vmem:[%s205_s3 + $0x18] sm:$0xff] %vm19_vm0, %v108_v7 }

// kernel: _lambda_.17
= control target key start
LH: loop header
LB: loop body
LE: loop exit
PB: predicated region body
PF: predicated region fallthrough
CT: control target
= control target key end

     0   :  { %vm26_vm0 = vcmask 523264   ;;  %v308_v43 = vmov 0   ;;  %s455_s0 = inlined_call_operand.vmem [shape: f32[40,64], index: 0, kind: input, shape index: {}]   ;;  %s456_s3 = inlined_call_operand.vmem [shape: bf16[64,256], index: 3, kind: input, shape index: {}]   ;;  %s457_s1 = inlined_call_operand.vmem [shape: f32[1,64], index: 1, kind: input, shape index: {}]   ;;  %s458_s2 = inlined_call_operand.vmem [shape: f32[1,64], index: 2, kind: input, shape index: {}]   ;;  %s459_s4 = inlined_call_operand.vmem [shape: f32[1,256], index: 4, kind: input, shape index: {}]   ;;  %s460_s5 = inlined_call_operand.vmem [shape: f32[40,256], index: 5, kind: output, shape index: {}]  }
   0x1   :  { %v23_v0 = vld [vmem:[%s455_s0 + $0x10] sm:$0xff]  ;;  %v24_v1 = vld [vmem:[%s455_s0 + $0x18] sm:$0xff]  ;;  %v21_v2 = vld [vmem:[%s455_s0] sm:$0xff]  ;;  %231 = vmatprep.mubr.bf16.mxu1 %v308_v43  ;;  %221 = vmatprep.mubr.bf16.mxu0 %v308_v43 }
   0x2   :  { %v33_v3 = vsel %vm26_vm0, %v23_v0, 0.0  ;;  %v27_v4 = vsel %vm26_vm0, %v21_v2, 0.0  ;;  %v22_v5 = vld [vmem:[%s455_s0 + $0x8] sm:$0xff]  ;;  %v36_v6 = vsel %vm26_vm0, %v24_v1, 0.0  ;;  %v25_v8 = vld [vmem:[%s455_s0 + $0x20] sm:$0xff] }
   0x3   :  { %34 = vadd.xlane.f32.xlu0 %v33_v3  ;;  %28 = vadd.xlane.f32.xlu1 %v27_v4  ;;  %v30_v7 = vsel %vm26_vm0, %v22_v5, 0.0  ;;  %v39_v9 = vsel %vm26_vm0, %v25_v8, 0.0  ;;  %v286_v35 = vld [vmem:[%s456_s3 + $0x4] ss:$8 sps:$4 sm:$0xff]   ;;  %v288_v36 = vld [vmem:[%s456_s3] ss:$8 sps:$4 sm:$0xff]  }
   0x4   :  { %277 = vmatprep.subr.bf16.mxu1 %v286_v35  ;;  %189 = vmatprep.subr.bf16.mxu0 %v286_v35  ;;  %v289_v37 = vld [vmem:[%s456_s3 + $0x14] ss:$8 sps:$4 sm:$0xff]   ;;  %v291_v38 = vld [vmem:[%s456_s3 + $0x10] ss:$8 sps:$4 sm:$0xff]   ;;  %v292_v39 = vld [vmem:[%s456_s3 + $0x24] ss:$8 sps:$4 sm:$0xff]  }
   0x5   :  { %281 = vmatpush1.bf16.msra.mxu1 %v288_v36  ;;  %190 = vmatpush1.bf16.msra.mxu0 %v288_v36  ;;  %v294_v40 = vld [vmem:[%s456_s3 + $0x20] ss:$8 sps:$4 sm:$0xff]   ;;  %v295_v41 = vld [vmem:[%s456_s3 + $0x34] ss:$8 sps:$4 sm:$0xff]   ;;  %v297_v42 = vld [vmem:[%s456_s3 + $0x30] ss:$8 sps:$4 sm:$0xff]  }
   0x6   :  { %278 = vmatprep.subr.bf16.mxu1 %v289_v37  ;;  %191 = vmatprep.subr.bf16.mxu0 %v289_v37  ;;  %v264_v61 = vld [vmem:[%s457_s1] ss:$0 sm:$0xff] }
   0x7   :  { %37 = vadd.xlane.f32.xlu0 %v36_v6  ;;  %31 = vadd.xlane.f32.xlu1 %v30_v7  ;;  %v265_v3 = vld [vmem:[%s458_s2] ss:$0 sm:$0xff] }
   0x9   :  { %282 = vmatpush1.bf16.msra.mxu1 %v291_v38  ;;  %192 = vmatpush1.bf16.msra.mxu0 %v291_v38 }
   0xa   :  { %279 = vmatprep.subr.bf16.mxu1 %v292_v39  ;;  %193 = vmatprep.subr.bf16.mxu0 %v292_v39 }
   0xb   :  { %40 = vadd.xlane.f32.xlu0 %v39_v9 }
   0xd   :  { %283 = vmatpush1.bf16.msra.mxu1 %v294_v40  ;;  %194 = vmatpush1.bf16.msra.mxu0 %v294_v40 }
   0xe   :  { %280 = vmatprep.subr.bf16.mxu1 %v295_v41  ;;  %195 = vmatprep.subr.bf16.mxu0 %v295_v41 }
  0x11   :  { %284 = vmatpush1.bf16.msra.mxu1 %v297_v42  ;;  %196 = vmatpush1.bf16.msra.mxu0 %v297_v42 }
  0x90   :  { %v35_v10 = vpop.xlane.xlu0 %34  ;;  %v29_v11 = vpop.xlane.xlu1 %28 }
  0x91   :  { %v45_v12 = vmul.f32 0.015625, %v35_v10  ;;  %v43_v13 = vmul.f32 0.015625, %v29_v11 }
  0x93   :  { %v359_v14 = vsub.f32 %v23_v0, %v45_v12  ;;  %v361_v15 = vsub.f32 %v21_v2, %v43_v13 }
  0x94   :  { %v38_v16 = vpop.xlane.xlu0 %37  ;;  %v32_v17 = vpop.xlane.xlu1 %31 }
  0x95   :  { %v46_v18 = vmul.f32 0.015625, %v38_v16  ;;  %v55_v19 = vmul.f32 %v359_v14, %v359_v14  ;;  %v44_v20 = vmul.f32 0.015625, %v32_v17  ;;  %v53_v21 = vmul.f32 %v361_v15, %v361_v15 }
  0x97   :  { %v367_v22 = vsub.f32 %v24_v1, %v46_v18  ;;  %v64_v23 = vsel %vm26_vm0, %v55_v19, 0.0  ;;  %v370_v24 = vsub.f32 %v22_v5, %v44_v20  ;;  %v58_v28 = vsel %vm26_vm0, %v53_v21, 0.0 }
  0x98   :  { %v41_v25 = vpop.xlane.xlu0 %40  ;;  %65 = vadd.xlane.f32.xlu1 %v64_v23  ;;  %v130_v20 = vlaneseq  ;;  %v128_v23 = vld [vmem:[%s459_s4] sm:$0x3] }
  0x99   :  { %v47_v26 = vmul.f32 0.015625, %v41_v25  ;;  %v56_v27 = vmul.f32 %v367_v22, %v367_v22  ;;  %v54_v29 = vmul.f32 %v370_v24, %v370_v24 }
  0x9a   :  { %v131_v21 = vshrl.u32 %v130_v20, 7 }
  0x9b   :  { %v377_v30 = vsub.f32 %v25_v8, %v47_v26  ;;  %v67_v31 = vsel %vm26_vm0, %v56_v27, 0.0  ;;  %v61_v33 = vsel %vm26_vm0, %v54_v29, 0.0 }
  0x9c   :  { %68 = vadd.xlane.f32.xlu0 %v67_v31  ;;  %59 = vadd.xlane.f32.xlu1 %v58_v28 }
  0x9d   :  { %v57_v32 = vmul.f32 %v377_v30, %v377_v30 }
  0x9f   :  { %v70_v34 = vsel %vm26_vm0, %v57_v32, 0.0 }
  0xa0   :  { %71 = vadd.xlane.f32.xlu1 %v70_v34  ;;  %62 = vadd.xlane.f32.xlu0 %v61_v33 }
 0x125   :  { %v66_v44 = vpop.xlane.xlu1 %65 }
 0x126   :  { %v75_v45 = vmul.f32 0.015625, %v66_v44 }
 0x128   :  { %v80_v46 = vadd.f32 1e-05, %v75_v45 }
 0x129   :  { %v69_v47 = vpop.xlane.xlu0 %68  ;;  %v60_v48 = vpop.xlane.xlu1 %59 }
 0x12a   :  { %298 = vrsqrt.f32 %v80_v46  ;;  %v76_v49 = vmul.f32 0.015625, %v69_v47  ;;  %v73_v50 = vmul.f32 0.015625, %v60_v48 }
 0x12c   :  { %v81_v51 = vadd.f32 1e-05, %v76_v49  ;;  %v78_v52 = vadd.f32 1e-05, %v73_v50 }
 0x12d   :  { %v63_v53 = vpop.xlane.xlu0 %62  ;;  %v72_v54 = vpop.xlane.xlu1 %71 }
 0x12e   :  { %300 = vrsqrt.f32 %v81_v51  ;;  %v74_v55 = vmul.f32 0.015625, %v63_v53  ;;  %v77_v56 = vmul.f32 0.015625, %v72_v54 }
 0x12f   :  { %302 = vrsqrt.f32 %v78_v52 }
 0x130   :  { %v79_v57 = vadd.f32 1e-05, %v74_v55  ;;  %v82_v58 = vadd.f32 1e-05, %v77_v56 }
 0x132   :  { %304 = vrsqrt.f32 %v79_v57 }
 0x133   :  { %306 = vrsqrt.f32 %v82_v58 }
 0x134   :  { %v299_v59 = vpop.eup %298 }
 0x135   :  { %v90_v60 = vmul.f32 %v299_v59, %v359_v14 }
 0x137   :  { %v102_v1 = vmul.f32 %v264_v61, %v90_v60 }
 0x138   :  { %v301_v62 = vpop.eup %300 }
 0x139   :  { %v303_v63 = vpop.eup %302  ;;  %v91_v0 = vmul.f32 %v301_v62, %v367_v22  ;;  %v114_v8 = vadd.f32 %v265_v3, %v102_v1  ;;  %v132_v22 = vsub.s32 0, %v131_v21 }
 0x13a   :  { %v88_v2 = vmul.f32 %v303_v63, %v361_v15 }
 0x13b   :  { %v103_v4 = vmul.f32 %v264_v61, %v91_v0  ;;  %v133_v25 = vrot.slane %v128_v23, %v132_v22 }
 0x13c   :  { %v305_v5 = vpop.eup %304  ;;  %v100_v10 = vmul.f32 %v264_v61, %v88_v2 }
 0x13d   :  { %v307_v6 = vpop.eup %306  ;;  %v89_v7 = vmul.f32 %v305_v5, %v370_v24  ;;  %v115_v9 = vadd.f32 %v265_v3, %v103_v4  ;;  %v136_v24 = vsub.s32 1, %v131_v21 }
 0x13e   :  { %v92_v11 = vmul.f32 %v307_v6, %v377_v30  ;;  %v112_v15 = vadd.f32 %v265_v3, %v100_v10 }
 0x13f   :  { %v118_v12 = vpack.c.bf16 %v115_v9, %v114_v8  ;;  %v101_v13 = vmul.f32 %v264_v61, %v89_v7  ;;  %v137_v26 = vrot.slane %v128_v23, %v136_v24 }
 0x140   :  { %v104_v14 = vmul.f32 %v264_v61, %v92_v11 }
 0x141   :  { %275 = vmatmul.mubr.msk.bf16.vlgmr.msra.gmra.mrb[0].mxu1 %vm26_vm0, %v118_v12  ;;  %v113_v16 = vadd.f32 %v265_v3, %v101_v13 }
 0x142   :  { %241 = vmatprep.mubr.bf16.mxu1 %v308_v43  ;;  %v116_v18 = vadd.f32 %v265_v3, %v104_v14 }
 0x143   :  { %v117_v17 = vpack.c.bf16 %v113_v16, %v112_v15 }
 0x144   :  { %v119_v19 = vpack.c.bf16 %v116_v18, %v116_v18 }
 0x145   :  { %274 = vmatmul.mubr.msk.bf16.vlgmr.msra.gmra.mrb[0].mxu0 %vm26_vm0, %v117_v17 }
 0x149   :  { %276 = vmatmul.mubr.msk.bf16.gmra.mrb[4].mxu1 %vm26_vm0, %v119_v19 }
 0x214   :  { %v233_v27 = vpop.f32.mrb[0].mxu1 }
 0x215   :  { %v234_v28 = vadd.f32 %v233_v27, %v133_v25  ;;  %v235_v29 = vpop.f32.mrb[1].mxu1 }
 0x216   :  { %v236_v30 = vadd.f32 %v235_v29, %v137_v26  ;;  %v237_v31 = vpop.f32.mrb[2].mxu1 }
 0x217   :  { %254 = vst [vmem:[%s460_s5 + $0x20] sm:$0xff] %v234_v28  ;;  %v238_v32 = vadd.f32 %v237_v31, %v133_v25  ;;  %v239_v33 = vpop.f32.mrb[3].mxu1 }
 0x218   :  { %255 = vst [vmem:[%s460_s5 + $0x28] sm:$0xff] %v236_v30  ;;  %v240_v34 = vadd.f32 %v239_v33, %v137_v26  ;;  %v223_v35 = vpop.f32.mrb[0].mxu0 }
 0x219   :  { %256 = vst [vmem:[%s460_s5 + $0x30] sm:$0xff] %v238_v32  ;;  %v224_v36 = vadd.f32 %v223_v35, %v133_v25  ;;  %v225_v37 = vpop.f32.mrb[1].mxu0 }
 0x21a   :  { %257 = vst [vmem:[%s460_s5 + $0x38] sm:$0xff] %v240_v34  ;;  %v226_v38 = vadd.f32 %v225_v37, %v137_v26  ;;  %v227_v39 = vpop.f32.mrb[2].mxu0 }
 0x21b   :  { %250 = vst [vmem:[%s460_s5] sm:$0xff] %v224_v36  ;;  %v228_v40 = vadd.f32 %v227_v39, %v133_v25  ;;  %v229_v41 = vpop.f32.mrb[3].mxu0 }
 0x21c   :  { %251 = vst [vmem:[%s460_s5 + $0x8] sm:$0xff] %v226_v38  ;;  %v230_v42 = vadd.f32 %v229_v41, %v137_v26  ;;  %v243_v43 = vpop.f32.mrb[4].mxu1 }
 0x21d   :  { %252 = vst [vmem:[%s460_s5 + $0x10] sm:$0xff] %v228_v40  ;;  %v244_v44 = vadd.f32 %v243_v43, %v133_v25  ;;  %v245_v45 = vpop.f32.mrb[5].mxu1 }
 0x21e   :  { %253 = vst [vmem:[%s460_s5 + $0x18] sm:$0xff] %v230_v42  ;;  %v246_v46 = vadd.f32 %v245_v45, %v137_v26  ;;  %v247_v47 = vpop.f32.mrb[6].mxu1 }
 0x21f   :  { %258 = vst [vmem:[%s460_s5 + $0x40] sm:$0xff] %v244_v44  ;;  %v248_v48 = vpop.f32.mrb[7].mxu1 }
 0x220   :  { %259 = vst [vmem:[%s460_s5 + $0x48] sm:$0xff] %v246_v46 }

// kernel: _lambda_.18
= control target key start
LH: loop header
LB: loop body
LE: loop exit
PB: predicated region body
PF: predicated region fallthrough
CT: control target
= control target key end

     0   :  { %s628_s12 = smov 0   ;;  %s669_s0 = inlined_call_operand.vmem [shape: f32[8,2,5,32], index: 0, kind: input, shape index: {}]   ;;  %s670_s1 = inlined_call_operand.vmem [shape: f32[8,2,5,32], index: 1, kind: input, shape index: {}]   ;;  %s671_s2 = inlined_call_operand.vmem [shape: f32[8,2,5,32], index: 2, kind: input, shape index: {}]   ;;  %s672_s3 = inlined_call_operand.vmem [shape: f32[8,2,5,32], index: 3, kind: output, shape index: {}]  }
   0x1 LB: > { %s523_s13 = sadd.s32 4294967295, %s603_s12   ;;  %p527_p0 = scmp.ge.s32.totalorder %s603_s12, 1  ;;  %s603_s12 = sphi %s628_s12, %s13_s12  }
   0x2   : > { %p157_p1 = scmp.lt.s32.totalorder %s603_s12, 9 }
   0x4   : > { %p158_p2 = pnand %p527_p0, %p157_p1 }
   0x5   : > { %p191_p3 = scmp.lt.s32.totalorder (!%p158_p2), %s523_s13, 7  ;;  %v605_v0 = vmov (!%p158_p2), 0.0   ;;  %vm606_vm0 = vmmov (!%p158_p2), 0   ;;  %vm224_vm1 = vcmask (!%p158_p2), 261120   ;;  %vm319_vm2 = vcmask (!%p158_p2), 36864  }
   0x6   : > { %161 = sbr.rel (%p158_p2) target bundleno = 776 (0x308), region = 32  ;;  %554 = vmatprep.subr.bf16.mxu0 (!%p158_p2), %v605_v0  ;;  %560 = vmatprep.subr.bf16.mxu1 (!%p158_p2), %v605_v0  ;;  %vm348_vm3 = vcmask (!%p158_p2), 1041408   ;;  %vm349_vm4 = vcmask (!%p158_p2), 1042432   ;;  %v607_v35 = vmov (!%p158_p2), 65535   ;;  %vm344_vm5 = vcmask (!%p158_p2), 39936  }
   0x7   : > { %556 = vmatprep.mubr.msk.bf16.mxu0 (!%p158_p2), %vm606_vm0, %v605_v0  ;;  %562 = vmatprep.mubr.msk.bf16.mxu1 (!%p158_p2), %vm606_vm0, %v605_v0  ;;  %v350_v36 = vsel (!%p158_p2), %vm348_vm3, 4294967295, %v607_v35  ;;  %vm441_vm6 = vcmask (!%p158_p2), 258048  }
   0x8   : > { %v351_v37 = vsel (!%p158_p2), %vm349_vm4, %v350_v36, 0 }
   0xd   : > { %s674_s13 = smov (!%p191_p3, %s523_s13), 7 }
   0xe   : > { %s638_s14 = sshll.u32 %s674_s13, 4 }
   0xf   : > { %s200_s17 = scalar_lea.vmem %s670_s1, %s638_s14  ;;  %s195_s20 = scalar_lea.vmem %s669_s0, %s638_s14 }
  0x10   : > { %v216_v1 = vld [vmem:[%s200_s17] sm:$0x1f]  ;;  %v217_v2 = vld [vmem:[%s200_s17 + $0x8] sm:$0x1f]  ;;  %s205_s23 = scalar_lea.vmem %s671_s2, %s638_s14  ;;  %s210_s26 = scalar_lea.vmem %s672_s3, %s638_s14 }
  0x11   : > { %v218_v3 = vpack.c.bf16 %v216_v1, %v216_v1  ;;  %v219_v4 = vpack.c.bf16 %v217_v2, %v217_v2  ;;  %v212_v7 = vld [vmem:[%s195_s20] sm:$0x1f]  ;;  %v213_v8 = vld [vmem:[%s195_s20 + $0x8] sm:$0x1f] }
  0x12   : > { %v214_v9 = vpack.c.bf16 %v212_v7, %v212_v7  ;;  %v215_v10 = vpack.c.bf16 %v213_v8, %v213_v8  ;;  %v220_v33 = vld [vmem:[%s205_s23] sm:$0x1f]  ;;  %v221_v39 = vld [vmem:[%s205_s23 + $0x8] sm:$0x1f] }
  0x13   : > { %v229_v5 = vsel %vm224_vm1, %v218_v3, 0  ;;  %v275_v6 = vsel %vm224_vm1, %v219_v4, 0  ;;  %v222_v34 = vpack.c.bf16 %v220_v33, %v220_v33  ;;  %v223_v40 = vpack.c.bf16 %v221_v39, %v221_v39 }
  0x14   : > { %555 = vmatpush3.bf16.xpose.msra.mxu0 %v229_v5  ;;  %561 = vmatpush3.bf16.xpose.msra.mxu1 %v275_v6 }
  0x15   : > { %566 = vmatprep.subr.bf16.mxu0 %v605_v0  ;;  %572 = vmatprep.subr.bf16.mxu1 %v605_v0  ;;  %v353_v38 = vand.u32 %v351_v37, %v222_v34  ;;  %v399_v41 = vand.u32 %v351_v37, %v223_v40 }
  0x1b   : > { %557 = vmatmul.mubr.msk.bf16.vlgmr.msra.gmra.mrb[0].mxu0 %vm224_vm1, %v214_v9  ;;  %563 = vmatmul.mubr.msk.bf16.vlgmr.msra.gmra.mrb[0].mxu1 %vm224_vm1, %v215_v10 }
  0x1c   : > { %568 = vmatprep.mubr.msk.bf16.mxu0 %vm606_vm0, %v605_v0  ;;  %574 = vmatprep.mubr.msk.bf16.mxu1 %vm606_vm0, %v605_v0 }
  0x1d   : > { %567 = vmatpush3.bf16.msra.mxu0 %v353_v38  ;;  %573 = vmatpush3.bf16.msra.mxu1 %v399_v41 }
  0xee   : > { %v265_v11 = vpop.f32.mrb[0].mxu0  ;;  %v311_v12 = vpop.f32.mrb[0].mxu1 }
  0xef   : > { %v317_v13 = vmul.f32 0.17677669, %v265_v11  ;;  %v558_v14 = vpop.f32.mrb[1].mxu0  ;;  %v318_v15 = vmul.f32 0.17677669, %v311_v12  ;;  %v564_v16 = vpop.f32.mrb[1].mxu1 }
  0xf0   : > { %v268_v17 = vpop.f32.mrb[2].mxu0  ;;  %v314_v18 = vpop.f32.mrb[2].mxu1 }
  0xf1   : > { %v559_v19 = vpop.f32.mrb[3].mxu0  ;;  %v565_v20 = vpop.f32.mrb[3].mxu1  ;;  %v320_v21 = vsel %vm319_vm2, %v317_v13, -inf  ;;  %v323_v22 = vsel %vm319_vm2, %v318_v15, -inf }
  0xf2   : > { %321 = vmax.xlane.f32.xlu0 %v320_v21 }
  0xf6   : > { %324 = vmax.xlane.f32.xlu0 %v323_v22 }
 0x17f   : > { %v322_v23 = vpop.xlane.xlu0 %321 }
 0x180   : > { %v326_v24 = vsub.f32 %v317_v13, %v322_v23 }
 0x182   : > { %v328_v25 = vmul.f32 1.442695, %v326_v24 }
 0x183   : > { %v325_v26 = vpop.xlane.xlu0 %324 }
 0x184   : > { %589 = vpow2.f32 %v328_v25  ;;  %v327_v27 = vsub.f32 %v318_v15, %v325_v26 }
 0x186   : > { %v330_v28 = vmul.f32 1.442695, %v327_v27 }
 0x188   : > { %591 = vpow2.f32 %v330_v28 }
 0x18e   : > { %v590_v29 = vpop.eup %589 }
 0x18f   : > { %v332_v30 = vsel %vm319_vm2, %v590_v29, 0.0 }
 0x190   : > { %333 = vadd.xlane.f32.xlu1 %v332_v30 }
 0x192   : > { %v592_v31 = vpop.eup %591 }
 0x193   : > { %v335_v32 = vsel %vm319_vm2, %v592_v31, 0.0 }
 0x194   : > { %336 = vadd.xlane.f32.xlu1 %v335_v32 }
 0x21d   : > { %v334_v42 = vpop.xlane.xlu1 %333 }
 0x21e   : > { %593 = vrcp.f32 %v334_v42 }
 0x221   : > { %v337_v43 = vpop.xlane.xlu1 %336 }
 0x222   : > { %595 = vrcp.f32 %v337_v43 }
 0x228   : > { %v594_v44 = vpop.eup %593 }
 0x229   : > { %v340_v45 = vmul.f32 %v594_v44, %v590_v29 }
 0x22b   : > { %v342_v46 = vpack.c.bf16 %v340_v45, %v340_v45 }
 0x22c   : > { %v596_v47 = vpop.eup %595 }
 0x22d   : > { %v341_v48 = vmul.f32 %v596_v47, %v592_v31  ;;  %569 = vmatmul.mubr.msk.bf16.vlgmr.msra.gmra.mrb[4].mxu0 %vm344_vm5, %v342_v46 }
 0x22f   : > { %v343_v49 = vpack.c.bf16 %v341_v48, %v341_v48 }
 0x231   : > { %575 = vmatmul.mubr.msk.bf16.vlgmr.msra.gmra.mrb[4].mxu1 %vm344_vm5, %v343_v49 }
 0x300   : > { %v389_v50 = vpop.f32.mrb[4].mxu0 }
 0x301   : > { %442 = vst.msk [vmem:[%s210_s26] sm:$0x1f] %vm441_vm6, %v389_v50  ;;  %v570_v51 = vpop.f32.mrb[5].mxu0 }
 0x302   : > { %v392_v52 = vpop.f32.mrb[6].mxu0 }
 0x303   : > { %v571_v53 = vpop.f32.mrb[7].mxu0 }
 0x304   : > { %v435_v54 = vpop.f32.mrb[4].mxu1 }
 0x305   : > { %443 = vst.msk [vmem:[%s210_s26 + $0x8] sm:$0x1f] %vm441_vm6, %v435_v54  ;;  %v576_v55 = vpop.f32.mrb[5].mxu1 }
 0x306   : > { %v438_v56 = vpop.f32.mrb[6].mxu1 }
 0x307   : > { %v577_v57 = vpop.f32.mrb[7].mxu1 }
 0x308 PF: > { %s13_s12 = sadd.s32 1, %s603_s12  }
 0x309   : > { %p10_p4 = scmp.ge.s32.totalorder %s13_s12, 10  }
 0x30b   :  { %12 = sbr.rel (!%p10_p4) target bundleno = 1 (0x1), region = 68 }

// kernel: _lambda_.20
= control target key start
LH: loop header
LB: loop body
LE: loop exit
PB: predicated region body
PF: predicated region fallthrough
CT: control target
= control target key end

     0   :  { %vm26_vm0 = vcmask 523264   ;;  %v438_v43 = vmov 0   ;;  %s625_s0 = inlined_call_operand.vmem [shape: f32[40,64], index: 0, kind: input, shape index: {}]   ;;  %s626_s3 = inlined_call_operand.vmem [shape: bf16[64,256], index: 3, kind: input, shape index: {}]   ;;  %s627_s1 = inlined_call_operand.vmem [shape: f32[1,64], index: 1, kind: input, shape index: {}]   ;;  %s628_s2 = inlined_call_operand.vmem [shape: f32[1,64], index: 2, kind: input, shape index: {}]   ;;  %s629_s4 = inlined_call_operand.vmem [shape: f32[1,256], index: 4, kind: input, shape index: {}]   ;;  %s630_s5 = inlined_call_operand.vmem [shape: f32[40,256], index: 5, kind: output, shape index: {}]  }
   0x1   :  { %v23_v0 = vld [vmem:[%s625_s0 + $0x10] sm:$0xff]  ;;  %v24_v1 = vld [vmem:[%s625_s0 + $0x18] sm:$0xff]  ;;  %v21_v2 = vld [vmem:[%s625_s0] sm:$0xff]  ;;  %231 = vmatprep.mubr.bf16.mxu1 %v438_v43  ;;  %221 = vmatprep.mubr.bf16.mxu0 %v438_v43 }
   0x2   :  { %v33_v3 = vsel %vm26_vm0, %v23_v0, 0.0  ;;  %v27_v4 = vsel %vm26_vm0, %v21_v2, 0.0  ;;  %v22_v5 = vld [vmem:[%s625_s0 + $0x8] sm:$0xff]  ;;  %v36_v6 = vsel %vm26_vm0, %v24_v1, 0.0  ;;  %v25_v8 = vld [vmem:[%s625_s0 + $0x20] sm:$0xff] }
   0x3   :  { %34 = vadd.xlane.f32.xlu0 %v33_v3  ;;  %28 = vadd.xlane.f32.xlu1 %v27_v4  ;;  %v30_v7 = vsel %vm26_vm0, %v22_v5, 0.0  ;;  %v39_v9 = vsel %vm26_vm0, %v25_v8, 0.0  ;;  %v376_v35 = vld [vmem:[%s626_s3 + $0x4] ss:$8 sps:$4 sm:$0xff]   ;;  %v378_v36 = vld [vmem:[%s626_s3] ss:$8 sps:$4 sm:$0xff]  }
   0x4   :  { %367 = vmatprep.subr.bf16.mxu1 %v376_v35  ;;  %189 = vmatprep.subr.bf16.mxu0 %v376_v35  ;;  %v379_v37 = vld [vmem:[%s626_s3 + $0x14] ss:$8 sps:$4 sm:$0xff]   ;;  %v381_v38 = vld [vmem:[%s626_s3 + $0x10] ss:$8 sps:$4 sm:$0xff]   ;;  %v382_v39 = vld [vmem:[%s626_s3 + $0x24] ss:$8 sps:$4 sm:$0xff]  }
   0x5   :  { %371 = vmatpush1.bf16.msra.mxu1 %v378_v36  ;;  %190 = vmatpush1.bf16.msra.mxu0 %v378_v36  ;;  %v384_v40 = vld [vmem:[%s626_s3 + $0x20] ss:$8 sps:$4 sm:$0xff]   ;;  %v385_v41 = vld [vmem:[%s626_s3 + $0x34] ss:$8 sps:$4 sm:$0xff]   ;;  %v387_v42 = vld [vmem:[%s626_s3 + $0x30] ss:$8 sps:$4 sm:$0xff]  }
   0x6   :  { %368 = vmatprep.subr.bf16.mxu1 %v379_v37  ;;  %191 = vmatprep.subr.bf16.mxu0 %v379_v37  ;;  %v344_v61 = vld [vmem:[%s627_s1] ss:$0 sm:$0xff] }
   0x7   :  { %37 = vadd.xlane.f32.xlu0 %v36_v6  ;;  %31 = vadd.xlane.f32.xlu1 %v30_v7  ;;  %v345_v3 = vld [vmem:[%s628_s2] ss:$0 sm:$0xff] }
   0x9   :  { %372 = vmatpush1.bf16.msra.mxu1 %v381_v38  ;;  %192 = vmatpush1.bf16.msra.mxu0 %v381_v38 }
   0xa   :  { %369 = vmatprep.subr.bf16.mxu1 %v382_v39  ;;  %193 = vmatprep.subr.bf16.mxu0 %v382_v39 }
   0xb   :  { %40 = vadd.xlane.f32.xlu0 %v39_v9 }
   0xd   :  { %373 = vmatpush1.bf16.msra.mxu1 %v384_v40  ;;  %194 = vmatpush1.bf16.msra.mxu0 %v384_v40 }
   0xe   :  { %370 = vmatprep.subr.bf16.mxu1 %v385_v41  ;;  %195 = vmatprep.subr.bf16.mxu0 %v385_v41 }
  0x11   :  { %374 = vmatpush1.bf16.msra.mxu1 %v387_v42  ;;  %196 = vmatpush1.bf16.msra.mxu0 %v387_v42 }
  0x90   :  { %v35_v10 = vpop.xlane.xlu0 %34  ;;  %v29_v11 = vpop.xlane.xlu1 %28 }
  0x91   :  { %v45_v12 = vmul.f32 0.015625, %v35_v10  ;;  %v43_v13 = vmul.f32 0.015625, %v29_v11 }
  0x93   :  { %v489_v14 = vsub.f32 %v23_v0, %v45_v12  ;;  %v491_v15 = vsub.f32 %v21_v2, %v43_v13 }
  0x94   :  { %v38_v16 = vpop.xlane.xlu0 %37  ;;  %v32_v17 = vpop.xlane.xlu1 %31 }
  0x95   :  { %v46_v18 = vmul.f32 0.015625, %v38_v16  ;;  %v55_v19 = vmul.f32 %v489_v14, %v489_v14  ;;  %v44_v20 = vmul.f32 0.015625, %v32_v17  ;;  %v53_v21 = vmul.f32 %v491_v15, %v491_v15 }
  0x97   :  { %v497_v22 = vsub.f32 %v24_v1, %v46_v18  ;;  %v64_v23 = vsel %vm26_vm0, %v55_v19, 0.0  ;;  %v500_v24 = vsub.f32 %v22_v5, %v44_v20  ;;  %v58_v28 = vsel %vm26_vm0, %v53_v21, 0.0 }
  0x98   :  { %v41_v25 = vpop.xlane.xlu0 %40  ;;  %65 = vadd.xlane.f32.xlu1 %v64_v23  ;;  %v130_v20 = vlaneseq  ;;  %v128_v23 = vld [vmem:[%s629_s4] sm:$0x3] }
  0x99   :  { %v47_v26 = vmul.f32 0.015625, %v41_v25  ;;  %v56_v27 = vmul.f32 %v497_v22, %v497_v22  ;;  %v54_v29 = vmul.f32 %v500_v24, %v500_v24 }
  0x9a   :  { %v131_v21 = vshrl.u32 %v130_v20, 7 }
  0x9b   :  { %v507_v30 = vsub.f32 %v25_v8, %v47_v26  ;;  %v67_v31 = vsel %vm26_vm0, %v56_v27, 0.0  ;;  %v61_v33 = vsel %vm26_vm0, %v54_v29, 0.0 }
  0x9c   :  { %68 = vadd.xlane.f32.xlu0 %v67_v31  ;;  %59 = vadd.xlane.f32.xlu1 %v58_v28 }
  0x9d   :  { %v57_v32 = vmul.f32 %v507_v30, %v507_v30 }
  0x9f   :  { %v70_v34 = vsel %vm26_vm0, %v57_v32, 0.0 }
  0xa0   :  { %71 = vadd.xlane.f32.xlu1 %v70_v34  ;;  %62 = vadd.xlane.f32.xlu0 %v61_v33 }
 0x125   :  { %v66_v44 = vpop.xlane.xlu1 %65 }
 0x126   :  { %v75_v45 = vmul.f32 0.015625, %v66_v44 }
 0x128   :  { %v80_v46 = vadd.f32 1e-05, %v75_v45 }
 0x129   :  { %v69_v47 = vpop.xlane.xlu0 %68  ;;  %v60_v48 = vpop.xlane.xlu1 %59 }
 0x12a   :  { %388 = vrsqrt.f32 %v80_v46  ;;  %v76_v49 = vmul.f32 0.015625, %v69_v47  ;;  %v73_v50 = vmul.f32 0.015625, %v60_v48 }
 0x12c   :  { %v81_v51 = vadd.f32 1e-05, %v76_v49  ;;  %v78_v52 = vadd.f32 1e-05, %v73_v50 }
 0x12d   :  { %v63_v53 = vpop.xlane.xlu0 %62  ;;  %v72_v54 = vpop.xlane.xlu1 %71 }
 0x12e   :  { %390 = vrsqrt.f32 %v81_v51  ;;  %v74_v55 = vmul.f32 0.015625, %v63_v53  ;;  %v77_v56 = vmul.f32 0.015625, %v72_v54 }
 0x12f   :  { %392 = vrsqrt.f32 %v78_v52 }
 0x130   :  { %v79_v57 = vadd.f32 1e-05, %v74_v55  ;;  %v82_v58 = vadd.f32 1e-05, %v77_v56 }
 0x132   :  { %394 = vrsqrt.f32 %v79_v57 }
 0x133   :  { %396 = vrsqrt.f32 %v82_v58 }
 0x134   :  { %v389_v59 = vpop.eup %388 }
 0x135   :  { %v90_v60 = vmul.f32 %v389_v59, %v489_v14 }
 0x137   :  { %v102_v1 = vmul.f32 %v344_v61, %v90_v60 }
 0x138   :  { %v391_v62 = vpop.eup %390 }
 0x139   :  { %v393_v63 = vpop.eup %392  ;;  %v91_v0 = vmul.f32 %v391_v62, %v497_v22  ;;  %v114_v8 = vadd.f32 %v345_v3, %v102_v1  ;;  %v132_v22 = vsub.s32 0, %v131_v21 }
 0x13a   :  { %v88_v2 = vmul.f32 %v393_v63, %v491_v15 }
 0x13b   :  { %v103_v4 = vmul.f32 %v344_v61, %v91_v0  ;;  %v133_v25 = vrot.slane %v128_v23, %v132_v22 }
 0x13c   :  { %v395_v5 = vpop.eup %394  ;;  %v100_v10 = vmul.f32 %v344_v61, %v88_v2 }
 0x13d   :  { %v397_v6 = vpop.eup %396  ;;  %v89_v7 = vmul.f32 %v395_v5, %v500_v24  ;;  %v115_v9 = vadd.f32 %v345_v3, %v103_v4  ;;  %v136_v24 = vsub.s32 1, %v131_v21 }
 0x13e   :  { %v92_v11 = vmul.f32 %v397_v6, %v507_v30  ;;  %v112_v15 = vadd.f32 %v345_v3, %v100_v10 }
 0x13f   :  { %v118_v12 = vpack.c.bf16 %v115_v9, %v114_v8  ;;  %v101_v13 = vmul.f32 %v344_v61, %v89_v7  ;;  %v137_v26 = vrot.slane %v128_v23, %v136_v24 }
 0x140   :  { %v104_v14 = vmul.f32 %v344_v61, %v92_v11 }
 0x141   :  { %355 = vmatmul.mubr.msk.bf16.vlgmr.msra.gmra.mrb[0].mxu1 %vm26_vm0, %v118_v12  ;;  %v113_v16 = vadd.f32 %v345_v3, %v101_v13 }
 0x142   :  { %241 = vmatprep.mubr.bf16.mxu1 %v438_v43  ;;  %v116_v18 = vadd.f32 %v345_v3, %v104_v14 }
 0x143   :  { %v117_v17 = vpack.c.bf16 %v113_v16, %v112_v15 }
 0x144   :  { %v119_v19 = vpack.c.bf16 %v116_v18, %v116_v18 }
 0x145   :  { %354 = vmatmul.mubr.msk.bf16.vlgmr.msra.gmra.mrb[0].mxu0 %vm26_vm0, %v117_v17 }
 0x149   :  { %356 = vmatmul.mubr.msk.bf16.gmra.mrb[4].mxu1 %vm26_vm0, %v119_v19 }
 0x214   :  { %v233_v27 = vpop.f32.mrb[0].mxu1 }
 0x215   :  { %v555_v28 = vadd.f32 %v233_v27, %v133_v25  ;;  %v235_v29 = vpop.f32.mrb[1].mxu1 }
 0x216   :  { %v557_v30 = vadd.f32 %v235_v29, %v137_v26  ;;  %v237_v31 = vpop.f32.mrb[2].mxu1 }
 0x217   :  { %v361_v32 = vmul.f32 -1.702, %v555_v28  ;;  %v560_v33 = vadd.f32 %v237_v31, %v133_v25  ;;  %v239_v34 = vpop.f32.mrb[3].mxu1 }
 0x218   :  { %v362_v35 = vmul.f32 -1.702, %v557_v30  ;;  %v563_v36 = vadd.f32 %v239_v34, %v137_v26  ;;  %v223_v37 = vpop.f32.mrb[0].mxu0 }
 0x219   :  { %v278_v38 = vmul.f32 1.442695, %v361_v32  ;;  %v363_v39 = vmul.f32 -1.702, %v560_v33  ;;  %v566_v40 = vadd.f32 %v223_v37, %v133_v25  ;;  %v225_v41 = vpop.f32.mrb[1].mxu0 }
 0x21a   :  { %v280_v42 = vmul.f32 1.442695, %v362_v35  ;;  %v364_v43 = vmul.f32 -1.702, %v563_v36  ;;  %v569_v44 = vadd.f32 %v225_v41, %v137_v26  ;;  %v227_v45 = vpop.f32.mrb[2].mxu0 }
 0x21b   :  { %398 = vpow2.f32 %v278_v38  ;;  %v282_v46 = vmul.f32 1.442695, %v363_v39  ;;  %v357_v47 = vmul.f32 -1.702, %v566_v40  ;;  %v572_v48 = vadd.f32 %v227_v45, %v133_v25  ;;  %v229_v49 = vpop.f32.mrb[3].mxu0 }
 0x21c   :  { %400 = vpow2.f32 %v280_v42  ;;  %v284_v50 = vmul.f32 1.442695, %v364_v43  ;;  %v358_v51 = vmul.f32 -1.702, %v569_v44  ;;  %v575_v52 = vadd.f32 %v229_v49, %v137_v26  ;;  %v243_v53 = vpop.f32.mrb[4].mxu1 }
 0x21d   :  { %402 = vpow2.f32 %v282_v46  ;;  %v270_v54 = vmul.f32 1.442695, %v357_v47  ;;  %v359_v55 = vmul.f32 -1.702, %v572_v48  ;;  %v578_v56 = vadd.f32 %v243_v53, %v133_v25  ;;  %v245_v57 = vpop.f32.mrb[5].mxu1 }
 0x21e   :  { %404 = vpow2.f32 %v284_v50  ;;  %v272_v58 = vmul.f32 1.442695, %v358_v51  ;;  %v360_v59 = vmul.f32 -1.702, %v575_v52  ;;  %v581_v60 = vadd.f32 %v245_v57, %v137_v26  ;;  %v247_v61 = vpop.f32.mrb[6].mxu1 }
 0x21f   :  { %406 = vpow2.f32 %v270_v54  ;;  %v274_v62 = vmul.f32 1.442695, %v359_v55  ;;  %v365_v63 = vmul.f32 -1.702, %v578_v56  ;;  %v248_v0 = vpop.f32.mrb[7].mxu1 }
 0x220   :  { %408 = vpow2.f32 %v272_v58  ;;  %v276_v1 = vmul.f32 1.442695, %v360_v59  ;;  %v366_v2 = vmul.f32 -1.702, %v581_v60 }
 0x221   :  { %410 = vpow2.f32 %v274_v62  ;;  %v286_v3 = vmul.f32 1.442695, %v365_v63 }
 0x222   :  { %412 = vpow2.f32 %v276_v1  ;;  %v288_v4 = vmul.f32 1.442695, %v366_v2 }
 0x223   :  { %414 = vpow2.f32 %v286_v3 }
 0x224   :  { %416 = vpow2.f32 %v288_v4 }
 0x225   :  { %v399_v5 = vpop.eup %398 }
 0x226   :  { %v401_v6 = vpop.eup %400  ;;  %v294_v7 = vadd.f32 1.0, %v399_v5 }
 0x227   :  { %v403_v8 = vpop.eup %402  ;;  %v295_v9 = vadd.f32 1.0, %v401_v6 }
 0x228   :  { %v405_v10 = vpop.eup %404  ;;  %418 = vrcp.f32 %v294_v7  ;;  %v296_v11 = vadd.f32 1.0, %v403_v8 }
 0x229   :  { %v407_v12 = vpop.eup %406  ;;  %420 = vrcp.f32 %v295_v9  ;;  %v297_v13 = vadd.f32 1.0, %v405_v10 }
 0x22a   :  { %v409_v14 = vpop.eup %408  ;;  %422 = vrcp.f32 %v296_v11  ;;  %v290_v15 = vadd.f32 1.0, %v407_v12 }
 0x22b   :  { %v411_v16 = vpop.eup %410  ;;  %424 = vrcp.f32 %v297_v13  ;;  %v291_v17 = vadd.f32 1.0, %v409_v14 }
 0x22c   :  { %v413_v18 = vpop.eup %412  ;;  %426 = vrcp.f32 %v290_v15  ;;  %v292_v19 = vadd.f32 1.0, %v411_v16 }
 0x22d   :  { %v415_v20 = vpop.eup %414  ;;  %428 = vrcp.f32 %v291_v17  ;;  %v293_v21 = vadd.f32 1.0, %v413_v18 }
 0x22e   :  { %v417_v22 = vpop.eup %416  ;;  %430 = vrcp.f32 %v292_v19  ;;  %v298_v23 = vadd.f32 1.0, %v415_v20 }
 0x22f   :  { %432 = vrcp.f32 %v293_v21  ;;  %v299_v24 = vadd.f32 1.0, %v417_v22 }
 0x230   :  { %434 = vrcp.f32 %v298_v23 }
 0x231   :  { %436 = vrcp.f32 %v299_v24 }
 0x232   :  { %v419_v25 = vpop.eup %418 }
 0x233   :  { %v421_v26 = vpop.eup %420  ;;  %v324_v27 = vmul.f32 %v419_v25, %v555_v28 }
 0x234   :  { %v423_v29 = vpop.eup %422  ;;  %v325_v31 = vmul.f32 %v421_v26, %v557_v30 }
 0x235   :  { %v425_v32 = vpop.eup %424  ;;  %334 = vst [vmem:[%s630_s5 + $0x20] sm:$0xff] %v324_v27  ;;  %v326_v34 = vmul.f32 %v423_v29, %v560_v33 }
 0x236   :  { %v427_v35 = vpop.eup %426  ;;  %335 = vst [vmem:[%s630_s5 + $0x28] sm:$0xff] %v325_v31  ;;  %v327_v37 = vmul.f32 %v425_v32, %v563_v36 }
 0x237   :  { %v429_v38 = vpop.eup %428  ;;  %336 = vst [vmem:[%s630_s5 + $0x30] sm:$0xff] %v326_v34  ;;  %v320_v28 = vmul.f32 %v427_v35, %v566_v40 }
 0x238   :  { %v431_v30 = vpop.eup %430  ;;  %337 = vst [vmem:[%s630_s5 + $0x38] sm:$0xff] %v327_v37  ;;  %v321_v33 = vmul.f32 %v429_v38, %v569_v44 }
 0x239   :  { %v433_v39 = vpop.eup %432  ;;  %330 = vst [vmem:[%s630_s5] sm:$0xff] %v320_v28  ;;  %v322_v36 = vmul.f32 %v431_v30, %v572_v48 }
 0x23a   :  { %v435_v41 = vpop.eup %434  ;;  %331 = vst [vmem:[%s630_s5 + $0x8] sm:$0xff] %v321_v33  ;;  %v323_v40 = vmul.f32 %v433_v39, %v575_v52 }
 0x23b   :  { %v437_v42 = vpop.eup %436  ;;  %332 = vst [vmem:[%s630_s5 + $0x10] sm:$0xff] %v322_v36  ;;  %v328_v43 = vmul.f32 %v435_v41, %v578_v56 }
 0x23c   :  { %333 = vst [vmem:[%s630_s5 + $0x18] sm:$0xff] %v323_v40  ;;  %v329_v44 = vmul.f32 %v437_v42, %v581_v60 }
 0x23d   :  { %338 = vst [vmem:[%s630_s5 + $0x40] sm:$0xff] %v328_v43 }
 0x23e   :  { %339 = vst [vmem:[%s630_s5 + $0x48] sm:$0xff] %v329_v44 }

// kernel: _lambda_.19
= control target key start
LH: loop header
LB: loop body
LE: loop exit
PB: predicated region body
PF: predicated region fallthrough
CT: control target
= control target key end

     0   :  { %v283_v0 = vmov 0.0   ;;  %vm284_vm0 = vmmov 0   ;;  %s385_s1 = inlined_call_operand.vmem [shape: bf16[128,128], index: 1, kind: input, shape index: {}]   ;;  %s386_s0 = inlined_call_operand.vmem [shape: f32[40,128], index: 0, kind: input, shape index: {}]   ;;  %s387_s2 = inlined_call_operand.vmem [shape: f32[1,128], index: 2, kind: input, shape index: {}]   ;;  %s388_s3 = inlined_call_operand.vmem [shape: f32[40,128], index: 3, kind: input, shape index: {}]   ;;  %s389_s4 = inlined_call_operand.vmem [shape: f32[40,128], index: 4, kind: output, shape index: {}]  }
   0x1   :  { %257 = vmatprep.subr.bf16.mxu1 %v283_v0  ;;  %v275_v1 = vld [vmem:[%s385_s1] sm:$0xff]   ;;  %229 = vmatprep.subr.bf16.mxu0 %v283_v0  ;;  %v276_v2 = vld [vmem:[%s385_s1 + $0x8] sm:$0xff]   ;;  %v277_v3 = vld [vmem:[%s385_s1 + $0x10] sm:$0xff]  }
   0x2   :  { %249 = vmatprep.mubr.msk.bf16.mxu1 %vm284_vm0, %v283_v0  ;;  %245 = vmatprep.mubr.msk.bf16.mxu0 %vm284_vm0, %v283_v0  ;;  %v278_v4 = vld [vmem:[%s385_s1 + $0x18] sm:$0xff]   ;;  %v279_v5 = vld [vmem:[%s385_s1 + $0x20] sm:$0xff]   ;;  %v280_v6 = vld [vmem:[%s385_s1 + $0x28] sm:$0xff]  }
   0x3   :  { %265 = vmatpush3.bf16.msra.mxu1 %v275_v1  ;;  %230 = vmatpush3.bf16.msra.mxu0 %v275_v1  ;;  %v281_v7 = vld [vmem:[%s385_s1 + $0x30] sm:$0xff]   ;;  %v282_v8 = vld [vmem:[%s385_s1 + $0x38] sm:$0xff]   ;;  %v32_v11 = vld [vmem:[%s386_s0] sm:$0xff] }
   0x4   :  { %258 = vmatprep.subr.bf16.mxu1 %v283_v0  ;;  %231 = vmatprep.subr.bf16.mxu0 %v283_v0  ;;  %v34_v9 = vld [vmem:[%s386_s0 + $0x10] sm:$0xff]  ;;  %v35_v10 = vld [vmem:[%s386_s0 + $0x18] sm:$0xff]  ;;  %v33_v12 = vld [vmem:[%s386_s0 + $0x8] sm:$0xff] }
   0x5   :  { %v38_v13 = vpack.c.bf16 %v35_v10, %v34_v9  ;;  %v37_v14 = vpack.c.bf16 %v33_v12, %v32_v11  ;;  %v36_v15 = vld [vmem:[%s386_s0 + $0x20] sm:$0xff]  ;;  %v192_v19 = vld [vmem:[%s388_s3 + $0x10] sm:$0xff]  ;;  %v193_v27 = vld [vmem:[%s388_s3 + $0x18] sm:$0xff] }
   0x6   :  { %v39_v16 = vpack.c.bf16 %v36_v15, %v36_v15  ;;  %v217_v17 = vld [vmem:[%s387_s2] ss:$0 sm:$0xff]  ;;  %v191_v29 = vld [vmem:[%s388_s3 + $0x8] sm:$0xff] }
   0x7   :  { %266 = vmatpush3.bf16.msra.mxu1 %v276_v2  ;;  %232 = vmatpush3.bf16.msra.mxu0 %v276_v2  ;;  %v190_v21 = vld [vmem:[%s388_s3] sm:$0xff] }
   0x8   :  { %259 = vmatprep.subr.bf16.mxu1 %v283_v0  ;;  %233 = vmatprep.subr.bf16.mxu0 %v283_v0  ;;  %v194_v39 = vld [vmem:[%s388_s3 + $0x20] sm:$0xff] }
   0xb   :  { %267 = vmatpush3.bf16.msra.mxu1 %v277_v3  ;;  %234 = vmatpush3.bf16.msra.mxu0 %v277_v3 }
   0xc   :  { %260 = vmatprep.subr.bf16.mxu1 %v283_v0  ;;  %235 = vmatprep.subr.bf16.mxu0 %v283_v0 }
   0xf   :  { %268 = vmatpush3.bf16.msra.mxu1 %v278_v4  ;;  %236 = vmatpush3.bf16.msra.mxu0 %v278_v4 }
  0x10   :  { %261 = vmatprep.subr.bf16.mxu1 %v283_v0  ;;  %237 = vmatprep.subr.bf16.mxu0 %v283_v0 }
  0x13   :  { %269 = vmatpush3.bf16.msra.mxu1 %v279_v5  ;;  %238 = vmatpush3.bf16.msra.mxu0 %v279_v5 }
  0x14   :  { %262 = vmatprep.subr.bf16.mxu1 %v283_v0  ;;  %239 = vmatprep.subr.bf16.mxu0 %v283_v0 }
  0x17   :  { %270 = vmatpush3.bf16.msra.mxu1 %v280_v6  ;;  %240 = vmatpush3.bf16.msra.mxu0 %v280_v6 }
  0x18   :  { %263 = vmatprep.subr.bf16.mxu1 %v283_v0  ;;  %241 = vmatprep.subr.bf16.mxu0 %v283_v0 }
  0x1b   :  { %271 = vmatpush3.bf16.msra.mxu1 %v281_v7  ;;  %242 = vmatpush3.bf16.msra.mxu0 %v281_v7 }
  0x1c   :  { %264 = vmatprep.subr.bf16.mxu1 %v283_v0  ;;  %243 = vmatprep.subr.bf16.mxu0 %v283_v0 }
  0x1f   :  { %272 = vmatpush3.bf16.msra.mxu1 %v282_v8  ;;  %244 = vmatpush3.bf16.msra.mxu0 %v282_v8 }
  0x22   :  { %250 = vmatmul.mubr.bf16.vlgmr.msra.gmra.mrb[0].mxu1 %v38_v13  ;;  %246 = vmatmul.mubr.bf16.vlgmr.msra.gmra.mrb[0].mxu0 %v37_v14 }
  0x23   :  { %253 = vmatprep.mubr.msk.bf16.mxu1 %vm284_vm0, %v283_v0 }
  0x2a   :  { %254 = vmatmul.mubr.bf16.gmra.mrb[4].mxu1 %v39_v16 }
  0xf5   :  { %v146_v18 = vpop.f32.mrb[0].mxu1  ;;  %v138_v20 = vpop.f32.mrb[0].mxu0 }
  0xf6   :  { %v187_v22 = vadd.f32 %v217_v17, %v146_v18  ;;  %v251_v23 = vpop.f32.mrb[1].mxu1  ;;  %v185_v24 = vadd.f32 %v217_v17, %v138_v20  ;;  %v247_v25 = vpop.f32.mrb[1].mxu0 }
  0xf7   :  { %v149_v26 = vpop.f32.mrb[2].mxu1  ;;  %v141_v28 = vpop.f32.mrb[2].mxu0 }
  0xf8   :  { %v197_v30 = vadd.f32 %v192_v19, %v187_v22  ;;  %v188_v31 = vadd.f32 %v217_v17, %v149_v26  ;;  %v195_v32 = vadd.f32 %v190_v21, %v185_v24  ;;  %v252_v33 = vpop.f32.mrb[3].mxu1  ;;  %v186_v34 = vadd.f32 %v217_v17, %v141_v28  ;;  %v248_v35 = vpop.f32.mrb[3].mxu0 }
  0xfa   :  { %202 = vst [vmem:[%s389_s4 + $0x10] sm:$0xff] %v197_v30  ;;  %v198_v36 = vadd.f32 %v193_v27, %v188_v31  ;;  %200 = vst [vmem:[%s389_s4] sm:$0xff] %v195_v32  ;;  %v196_v37 = vadd.f32 %v191_v29, %v186_v34 }
  0xfc   :  { %203 = vst [vmem:[%s389_s4 + $0x18] sm:$0xff] %v198_v36  ;;  %201 = vst [vmem:[%s389_s4 + $0x8] sm:$0xff] %v196_v37 }
  0xfd   :  { %v154_v38 = vpop.f32.mrb[4].mxu1 }
  0xfe   :  { %v189_v40 = vadd.f32 %v217_v17, %v154_v38  ;;  %v255_v41 = vpop.f32.mrb[5].mxu1 }
  0xff   :  { %v157_v42 = vpop.f32.mrb[6].mxu1 }
 0x100   :  { %v199_v43 = vadd.f32 %v194_v39, %v189_v40  ;;  %v256_v44 = vpop.f32.mrb[7].mxu1 }
 0x102   :  { %204 = vst [vmem:[%s389_s4 + $0x20] sm:$0xff] %v199_v43 }

// kernel: _lambda_.21
= control target key start
LH: loop header
LB: loop body
LE: loop exit
PB: predicated region body
PF: predicated region fallthrough
CT: control target
= control target key end

     0   :  { %s500_s1 = inlined_call_operand.vmem [shape: bf16[256,128], index: 1, kind: input, shape index: {}]   ;;  %s501_s0 = inlined_call_operand.vmem [shape: f32[40,256], index: 0, kind: input, shape index: {}]   ;;  %s502_s2 = inlined_call_operand.vmem [shape: f32[1,128], index: 2, kind: input, shape index: {}]   ;;  %s503_s3 = inlined_call_operand.vmem [shape: f32[40,128], index: 3, kind: input, shape index: {}]   ;;  %s504_s4 = inlined_call_operand.vmem [shape: f32[40,128], index: 4, kind: output, shape index: {}]  }
   0x1   :  { %v348_v0 = vld [vmem:[%s500_s1 + $0x40] sm:$0xff]   ;;  %v350_v2 = vld [vmem:[%s500_s1 + $0x48] sm:$0xff]   ;;  %v352_v4 = vld [vmem:[%s500_s1 + $0x50] sm:$0xff]  }
   0x2   :  { %v349_v1 = vld [vmem:[%s500_s1] sm:$0xff]   ;;  %332 = vmatprep.subr.bf16.mxu1 %v348_v0  ;;  %298 = vmatprep.subr.bf16.mxu0 %v348_v0  ;;  %v351_v3 = vld [vmem:[%s500_s1 + $0x8] sm:$0xff]   ;;  %v353_v5 = vld [vmem:[%s500_s1 + $0x10] sm:$0xff]  }
   0x3   :  { %340 = vmatpush3.bf16.msra.mxu1 %v349_v1  ;;  %299 = vmatpush3.bf16.msra.mxu0 %v349_v1  ;;  %v354_v6 = vld [vmem:[%s500_s1 + $0x58] sm:$0xff]   ;;  %v356_v8 = vld [vmem:[%s500_s1 + $0x60] sm:$0xff]   ;;  %v358_v10 = vld [vmem:[%s500_s1 + $0x68] sm:$0xff]  }
   0x4   :  { %333 = vmatprep.subr.bf16.mxu1 %v350_v2  ;;  %300 = vmatprep.subr.bf16.mxu0 %v350_v2  ;;  %v355_v7 = vld [vmem:[%s500_s1 + $0x18] sm:$0xff]   ;;  %v357_v9 = vld [vmem:[%s500_s1 + $0x20] sm:$0xff]   ;;  %v37_v11 = vld [vmem:[%s501_s0 + $0x28] sm:$0xff] }
   0x5   :  { %v39_v12 = vld [vmem:[%s501_s0 + $0x38] sm:$0xff]  ;;  %v33_v14 = vld [vmem:[%s501_s0 + $0x8] sm:$0xff]  ;;  %v360_v18 = vld [vmem:[%s500_s1 + $0x70] sm:$0xff]  }
   0x6   :  { %v45_v13 = vpack.c.bf16 %v39_v12, %v37_v11  ;;  %v35_v15 = vld [vmem:[%s501_s0 + $0x18] sm:$0xff]  ;;  %v359_v17 = vld [vmem:[%s500_s1 + $0x28] sm:$0xff]   ;;  %v361_v19 = vld [vmem:[%s500_s1 + $0x30] sm:$0xff]  }
   0x7   :  { %341 = vmatpush3.bf16.msra.mxu1 %v351_v3  ;;  %301 = vmatpush3.bf16.msra.mxu0 %v351_v3  ;;  %v43_v16 = vpack.c.bf16 %v35_v15, %v33_v14  ;;  %v362_v20 = vld [vmem:[%s500_s1 + $0x78] sm:$0xff]   ;;  %v36_v22 = vld [vmem:[%s501_s0 + $0x20] sm:$0xff]  ;;  %v38_v23 = vld [vmem:[%s501_s0 + $0x30] sm:$0xff] }
   0x8   :  { %334 = vmatprep.subr.bf16.mxu1 %v352_v4  ;;  %302 = vmatprep.subr.bf16.mxu0 %v352_v4  ;;  %v363_v21 = vld [vmem:[%s500_s1 + $0x38] sm:$0xff]   ;;  %v32_v24 = vld [vmem:[%s501_s0] sm:$0xff]  ;;  %v34_v25 = vld [vmem:[%s501_s0 + $0x10] sm:$0xff]  ;;  %v44_v27 = vpack.c.bf16 %v38_v23, %v36_v22 }
   0x9   :  { %216 = vmatprep.mubr.bf16.mxu1 %v45_v13  ;;  %208 = vmatprep.mubr.bf16.mxu0 %v43_v16  ;;  %v41_v26 = vld [vmem:[%s501_s0 + $0x48] sm:$0xff]  ;;  %v42_v28 = vpack.c.bf16 %v34_v25, %v32_v24  ;;  %v40_v30 = vld [vmem:[%s501_s0 + $0x40] sm:$0xff]  ;;  %v264_v41 = vld [vmem:[%s503_s3 + $0x10] sm:$0xff] }
   0xa   :  { %v47_v29 = vpack.c.bf16 %v41_v26, %v41_v26  ;;  %v46_v31 = vpack.c.bf16 %v40_v30, %v40_v30  ;;  %v297_v35 = vld [vmem:[%s502_s2] ss:$0 sm:$0xff]  ;;  %v265_v49 = vld [vmem:[%s503_s3 + $0x18] sm:$0xff]  ;;  %v263_v50 = vld [vmem:[%s503_s3 + $0x8] sm:$0xff] }
   0xb   :  { %342 = vmatpush3.bf16.msra.mxu1 %v353_v5  ;;  %303 = vmatpush3.bf16.msra.mxu0 %v353_v5  ;;  %v262_v43 = vld [vmem:[%s503_s3] sm:$0xff] }
   0xc   :  { %335 = vmatprep.subr.bf16.mxu1 %v354_v6  ;;  %304 = vmatprep.subr.bf16.mxu0 %v354_v6  ;;  %v266_v61 = vld [vmem:[%s503_s3 + $0x20] sm:$0xff] }
   0xf   :  { %343 = vmatpush3.bf16.msra.mxu1 %v355_v7  ;;  %305 = vmatpush3.bf16.msra.mxu0 %v355_v7 }
  0x10   :  { %336 = vmatprep.subr.bf16.mxu1 %v356_v8  ;;  %306 = vmatprep.subr.bf16.mxu0 %v356_v8 }
  0x13   :  { %344 = vmatpush3.bf16.msra.mxu1 %v357_v9  ;;  %307 = vmatpush3.bf16.msra.mxu0 %v357_v9 }
  0x14   :  { %337 = vmatprep.subr.bf16.mxu1 %v358_v10  ;;  %308 = vmatprep.subr.bf16.mxu0 %v358_v10 }
  0x17   :  { %345 = vmatpush3.bf16.msra.mxu1 %v359_v17  ;;  %309 = vmatpush3.bf16.msra.mxu0 %v359_v17 }
  0x18   :  { %338 = vmatprep.subr.bf16.mxu1 %v360_v18  ;;  %310 = vmatprep.subr.bf16.mxu0 %v360_v18 }
  0x1b   :  { %346 = vmatpush3.bf16.msra.mxu1 %v361_v19  ;;  %311 = vmatpush3.bf16.msra.mxu0 %v361_v19 }
  0x1c   :  { %339 = vmatprep.subr.bf16.mxu1 %v362_v20  ;;  %312 = vmatprep.subr.bf16.mxu0 %v362_v20 }
  0x1f   :  { %347 = vmatpush3.bf16.msra.mxu1 %v363_v21  ;;  %313 = vmatpush3.bf16.msra.mxu0 %v363_v21 }
  0x22   :  { %217 = vmatmul.mubr.bf16.vlgmr.msra.gmra.mrb[0].mxu1 %v44_v27  ;;  %209 = vmatmul.mubr.bf16.vlgmr.msra.gmra.mrb[0].mxu0 %v42_v28 }
  0x23   :  { %224 = vmatprep.mubr.bf16.mxu1 %v47_v29 }
  0x2a   :  { %225 = vmatmul.mubr.bf16.gmra.mrb[4].mxu1 %v46_v31 }
  0xf5   :  { %v320_v32 = vpop.f32.mrb[0].mxu1  ;;  %v314_v33 = vpop.f32.mrb[0].mxu0 }
  0xf6   :  { %v321_v34 = vpop.f32.mrb[1].mxu1  ;;  %v315_v36 = vpop.f32.mrb[1].mxu0 }
  0xf7   :  { %v322_v37 = vadd.f32 %v321_v34, %v320_v32  ;;  %v323_v38 = vpop.f32.mrb[2].mxu1  ;;  %v316_v39 = vadd.f32 %v315_v36, %v314_v33  ;;  %v317_v40 = vpop.f32.mrb[2].mxu0 }
  0xf8   :  { %v324_v42 = vpop.f32.mrb[3].mxu1  ;;  %v318_v44 = vpop.f32.mrb[3].mxu0 }
  0xf9   :  { %v259_v45 = vadd.f32 %v322_v37, %v297_v35  ;;  %v325_v46 = vadd.f32 %v324_v42, %v323_v38  ;;  %v257_v47 = vadd.f32 %v316_v39, %v297_v35  ;;  %v319_v48 = vadd.f32 %v318_v44, %v317_v40 }
  0xfb   :  { %v269_v51 = vadd.f32 %v264_v41, %v259_v45  ;;  %v260_v52 = vadd.f32 %v325_v46, %v297_v35  ;;  %v267_v53 = vadd.f32 %v262_v43, %v257_v47  ;;  %v258_v54 = vadd.f32 %v319_v48, %v297_v35 }
  0xfd   :  { %274 = vst [vmem:[%s504_s4 + $0x10] sm:$0xff] %v269_v51  ;;  %v270_v55 = vadd.f32 %v265_v49, %v260_v52  ;;  %272 = vst [vmem:[%s504_s4] sm:$0xff] %v267_v53  ;;  %v268_v56 = vadd.f32 %v263_v50, %v258_v54  ;;  %v326_v57 = vpop.f32.mrb[4].mxu1 }
  0xfe   :  { %v327_v58 = vpop.f32.mrb[5].mxu1 }
  0xff   :  { %275 = vst [vmem:[%s504_s4 + $0x18] sm:$0xff] %v270_v55  ;;  %273 = vst [vmem:[%s504_s4 + $0x8] sm:$0xff] %v268_v56  ;;  %v328_v59 = vadd.f32 %v327_v58, %v326_v57  ;;  %v329_v60 = vpop.f32.mrb[6].mxu1 }
 0x100   :  { %v330_v62 = vpop.f32.mrb[7].mxu1 }
 0x101   :  { %v261_v63 = vadd.f32 %v328_v59, %v297_v35 }
 0x103   :  { %v271_v0 = vadd.f32 %v266_v61, %v261_v63 }
 0x105   :  { %276 = vst [vmem:[%s504_s4 + $0x20] sm:$0xff] %v271_v0 }

// kernel: _lambda_.22
= control target key start
LH: loop header
LB: loop body
LE: loop exit
PB: predicated region body
PF: predicated region fallthrough
CT: control target
= control target key end

     0   :  { %vm20_vm0 = vcmask 523264   ;;  %s263_s0 = inlined_call_operand.vmem [shape: f32[8,64], index: 0, kind: input, shape index: {}]   ;;  %s264_s1 = inlined_call_operand.vmem [shape: f32[1,64], index: 1, kind: input, shape index: {}]   ;;  %s265_s2 = inlined_call_operand.vmem [shape: f32[1,64], index: 2, kind: input, shape index: {}]   ;;  %s266_s3 = inlined_call_operand.vmem [shape: bf16[64,128], index: 3, kind: input, shape index: {}]   ;;  %s267_s4 = inlined_call_operand.hbm [shape: f32[8,128], index: 4, kind: output, shape index: {}]  }
   0x1   :  { %v19_v0 = vld [vmem:[%s263_s0] sm:$0xff] }
   0x2   :  { %v21_v1 = vsel %vm20_vm0, %v19_v0, 0.0 }
   0x3   :  { %22 = vadd.xlane.f32.xlu0 %v21_v1 }
   0x4   :  { %9 = vsyncpa [#allocation3], 0  ;;  %v169_v7 = vld [vmem:[%s266_s3] sm:$0xff]   ;;  %v199_v8 = vmov 0.0   ;;  %v170_v9 = vld [vmem:[%s266_s3 + $0x8] sm:$0xff]   ;;  %vm200_vm1 = vmmov 0  }
   0x5   :  { %154 = vmatprep.subr.bf16.mxu0 %v199_v8  ;;  %v171_v10 = vld [vmem:[%s266_s3 + $0x10] sm:$0xff]   ;;  %v172_v11 = vld [vmem:[%s266_s3 + $0x18] sm:$0xff]   ;;  %162 = vmatprep.mubr.msk.bf16.mxu0 %vm200_vm1, %v199_v8  ;;  %v142_v16 = vld [vmem:[%s264_s1] ss:$0 sm:$0xff]  ;;  %s201_s3 = smov [#allocation2]  }
   0x6   :  { %155 = vmatpush3.bf16.msra.mxu0 %v169_v7  ;;  %v143_v18 = vld [vmem:[%s265_s2] ss:$0 sm:$0xff]  ;;  %s134_s28 = sshll.u32 %s201_s3, 4  ;;  %s135_s28 = int_to_ptr.vmem [resolvable:$true] %s134_s28 }
   0x7   :  { %156 = vmatprep.subr.bf16.mxu0 %v199_v8  ;;  %s175_s29 = scalar_lea.vmem %s135_s28, 128  ;;  %p180_p1 = scmp.lt.s32.totalorder %s135_s28, %s135_s28 }
   0x8   :  { %p176_p0 = scmp.ne.s32.totalorder %s135_s28, %s175_s29  ;;  %p181_p2 = scmp.lt.s32.totalorder %s175_s29, %s175_s29 }
   0xa   :  { %157 = vmatpush3.bf16.msra.mxu0 %v170_v9  ;;  %p182_p3 = por %p181_p2, %p180_p1 }
   0xb   :  { %158 = vmatprep.subr.bf16.mxu0 %v199_v8 }
   0xc   :  { %p183_p4 = pnand %p182_p3, %p176_p0 }
   0xe   :  { %159 = vmatpush3.bf16.msra.mxu0 %v171_v10 }
   0xf   :  { %160 = vmatprep.subr.bf16.mxu0 %v199_v8 }
  0x12   :  { %161 = vmatpush3.bf16.msra.mxu0 %v172_v11 }
  0x90   :  { %v23_v2 = vpop.xlane.xlu0 %22 }
  0x91   :  { %v25_v3 = vmul.f32 0.015625, %v23_v2 }
  0x93   :  { %v26_v4 = vsub.f32 %v19_v0, %v25_v3 }
  0x95   :  { %v27_v5 = vmul.f32 %v26_v4, %v26_v4 }
  0x97   :  { %v28_v6 = vsel %vm20_vm0, %v27_v5, 0.0 }
  0x98   :  { %29 = vadd.xlane.f32.xlu0 %v28_v6 }
 0x125   :  { %v30_v12 = vpop.xlane.xlu0 %29 }
 0x126   :  { %v31_v13 = vmul.f32 0.015625, %v30_v12 }
 0x128   :  { %v32_v14 = vadd.f32 1e-05, %v31_v13 }
 0x12a   :  { %173 = vrsqrt.f32 %v32_v14 }
 0x134   :  { %v174_v15 = vpop.eup %173 }
 0x135   :  { %v34_v17 = vmul.f32 %v174_v15, %v26_v4 }
 0x137   :  { %v42_v19 = vmul.f32 %v142_v16, %v34_v17 }
 0x139   :  { %v50_v20 = vadd.f32 %v143_v18, %v42_v19 }
 0x13b   :  { %v51_v21 = vpack.c.bf16 %v50_v20, %v50_v20 }
 0x13d   :  { %163 = vmatmul.mubr.msk.bf16.vlgmr.msra.gmra.mrb[0].mxu0 %vm20_vm0, %v51_v21 }
 0x210   :  { %v121_v22 = vpop.f32.mrb[0].mxu0 }
 0x211   :  { %127 = vst [vmem:[#allocation2] sm:$0xff] %v121_v22  ;;  %v164_v23 = vpop.f32.mrb[1].mxu0 }
 0x212   :  { %v124_v24 = vpop.f32.mrb[2].mxu0 }
 0x213   :  { %186 = shalt.err (!%p183_p4)
}
 0x214   :  { %s187_s30 = scalar_lea.hbm %s267_s4, 128 }
 0x215   :  { %p188_p5 = scmp.ne.s32.totalorder %s267_s4, %s187_s30  ;;  %p191_p6 = scmp.lt.u32.totalorder %s187_s30, %s267_s4 }
 0x217   :  { %p193_p7 = pnand %p191_p6, %p188_p5 }
 0x219   :  { %196 = shalt.err (!%p193_p7)
}
 0x21a   :  { %137 = dma.vmem_to_hbm [thread:$0]  %s135_s28, 128, %s267_s4, [#allocation3]   ;;  %v165_v25 = vpop.f32.mrb[3].mxu0 }
 0x21b   :  { %197 = dma.done.wait [#allocation3], 128  }
 0x21c   :  { %198 = vsyncadd [#allocation3], 4294967168 }
 0x21d   :  { %141 = vsyncpa [#allocation3], 1 }

// kernel: _lambda_.23
= control target key start
LH: loop header
LB: loop body
LE: loop exit
PB: predicated region body
PF: predicated region fallthrough
CT: control target
= control target key end

     0   :  { %vm23_vm0 = vcmask 523264   ;;  %v212_v22 = vmov 0   ;;  %v80_v40 = vlaneseq  ;;  %s299_s0 = inlined_call_operand.vmem [shape: f32[16,64], index: 0, kind: input, shape index: {}]   ;;  %s300_s3 = inlined_call_operand.vmem [shape: bf16[64,256], index: 3, kind: input, shape index: {}]   ;;  %s301_s1 = inlined_call_operand.vmem [shape: f32[1,64], index: 1, kind: input, shape index: {}]   ;;  %s302_s2 = inlined_call_operand.vmem [shape: f32[1,64], index: 2, kind: input, shape index: {}]   ;;  %s303_s4 = inlined_call_operand.vmem [shape: f32[1,256], index: 4, kind: input, shape index: {}]   ;;  %s304_s5 = inlined_call_operand.vmem [shape: f32[16,256], index: 5, kind: output, shape index: {}]  }
   0x1   :  { %v21_v0 = vld [vmem:[%s299_s0] sm:$0xff]  ;;  %v22_v1 = vld [vmem:[%s299_s0 + $0x8] sm:$0xff]  ;;  %v199_v16 = vld [vmem:[%s300_s3 + $0x14] ss:$8 sps:$4 sm:$0xff]   ;;  %165 = vmatprep.mubr.bf16.mxu0 %v212_v22 }
   0x2   :  { %v24_v2 = vsel %vm23_vm0, %v21_v0, 0.0  ;;  %v27_v3 = vsel %vm23_vm0, %v22_v1, 0.0  ;;  %v196_v14 = vld [vmem:[%s300_s3 + $0x4] ss:$8 sps:$4 sm:$0xff]   ;;  %v198_v15 = vld [vmem:[%s300_s3] ss:$8 sps:$4 sm:$0xff]  }
   0x3   :  { %25 = vadd.xlane.f32.xlu0 %v24_v2  ;;  %133 = vmatprep.subr.bf16.mxu0 %v196_v14  ;;  %v201_v17 = vld [vmem:[%s300_s3 + $0x10] ss:$8 sps:$4 sm:$0xff]   ;;  %v202_v18 = vld [vmem:[%s300_s3 + $0x24] ss:$8 sps:$4 sm:$0xff]   ;;  %v204_v19 = vld [vmem:[%s300_s3 + $0x20] ss:$8 sps:$4 sm:$0xff]  }
   0x4   :  { %134 = vmatpush1.bf16.msra.mxu0 %v198_v15  ;;  %v205_v20 = vld [vmem:[%s300_s3 + $0x34] ss:$8 sps:$4 sm:$0xff]   ;;  %v207_v21 = vld [vmem:[%s300_s3 + $0x30] ss:$8 sps:$4 sm:$0xff]   ;;  %v184_v31 = vld [vmem:[%s301_s1] ss:$0 sm:$0xff] }
   0x5   :  { %135 = vmatprep.subr.bf16.mxu0 %v199_v16  ;;  %v185_v35 = vld [vmem:[%s302_s2] ss:$0 sm:$0xff]  ;;  %v81_v41 = vshrl.u32 %v80_v40, 7 }
   0x6   :  { %v78_v43 = vld [vmem:[%s303_s4] sm:$0x3] }
   0x7   :  { %28 = vadd.xlane.f32.xlu0 %v27_v3  ;;  %v82_v42 = vsub.s32 0, %v81_v41  ;;  %v86_v44 = vsub.s32 1, %v81_v41 }
   0x8   :  { %136 = vmatpush1.bf16.msra.mxu0 %v201_v17 }
   0x9   :  { %137 = vmatprep.subr.bf16.mxu0 %v202_v18  ;;  %v83_v45 = vrot.slane %v78_v43, %v82_v42  ;;  %v87_v46 = vrot.slane %v78_v43, %v86_v44 }
   0xc   :  { %138 = vmatpush1.bf16.msra.mxu0 %v204_v19 }
   0xd   :  { %139 = vmatprep.subr.bf16.mxu0 %v205_v20 }
  0x10   :  { %140 = vmatpush1.bf16.msra.mxu0 %v207_v21 }
  0x90   :  { %v26_v4 = vpop.xlane.xlu0 %25 }
  0x91   :  { %v31_v5 = vmul.f32 0.015625, %v26_v4 }
  0x93   :  { %v33_v6 = vsub.f32 %v21_v0, %v31_v5 }
  0x94   :  { %v29_v7 = vpop.xlane.xlu0 %28 }
  0x95   :  { %v32_v8 = vmul.f32 0.015625, %v29_v7  ;;  %v35_v9 = vmul.f32 %v33_v6, %v33_v6 }
  0x97   :  { %v34_v10 = vsub.f32 %v22_v1, %v32_v8  ;;  %v37_v11 = vsel %vm23_vm0, %v35_v9, 0.0 }
  0x98   :  { %38 = vadd.xlane.f32.xlu1 %v37_v11 }
  0x99   :  { %v36_v12 = vmul.f32 %v34_v10, %v34_v10 }
  0x9b   :  { %v40_v13 = vsel %vm23_vm0, %v36_v12, 0.0 }
  0x9c   :  { %41 = vadd.xlane.f32.xlu1 %v40_v13 }
 0x125   :  { %v39_v23 = vpop.xlane.xlu1 %38 }
 0x126   :  { %v43_v24 = vmul.f32 0.015625, %v39_v23 }
 0x128   :  { %v45_v25 = vadd.f32 1e-05, %v43_v24 }
 0x129   :  { %v42_v26 = vpop.xlane.xlu1 %41 }
 0x12a   :  { %208 = vrsqrt.f32 %v45_v25  ;;  %v44_v27 = vmul.f32 0.015625, %v42_v26 }
 0x12c   :  { %v46_v28 = vadd.f32 1e-05, %v44_v27 }
 0x12e   :  { %210 = vrsqrt.f32 %v46_v28 }
 0x134   :  { %v209_v29 = vpop.eup %208 }
 0x135   :  { %v49_v30 = vmul.f32 %v209_v29, %v33_v6 }
 0x137   :  { %v58_v34 = vmul.f32 %v184_v31, %v49_v30 }
 0x138   :  { %v211_v32 = vpop.eup %210 }
 0x139   :  { %v50_v33 = vmul.f32 %v211_v32, %v34_v10  ;;  %v67_v37 = vadd.f32 %v185_v35, %v58_v34 }
 0x13b   :  { %v59_v36 = vmul.f32 %v184_v31, %v50_v33 }
 0x13d   :  { %v68_v38 = vadd.f32 %v185_v35, %v59_v36 }
 0x13f   :  { %v69_v39 = vpack.c.bf16 %v68_v38, %v67_v37 }
 0x141   :  { %194 = vmatmul.mubr.msk.bf16.vlgmr.msra.gmra.mrb[0].mxu0 %vm23_vm0, %v69_v39 }
 0x214   :  { %v167_v47 = vpop.f32.mrb[0].mxu0 }
 0x215   :  { %v168_v48 = vadd.f32 %v167_v47, %v83_v45  ;;  %v169_v49 = vpop.f32.mrb[1].mxu0 }
 0x216   :  { %v170_v50 = vadd.f32 %v169_v49, %v87_v46  ;;  %v171_v51 = vpop.f32.mrb[2].mxu0 }
 0x217   :  { %176 = vst [vmem:[%s304_s5] sm:$0xff] %v168_v48  ;;  %v172_v52 = vadd.f32 %v171_v51, %v83_v45  ;;  %v173_v53 = vpop.f32.mrb[3].mxu0 }
 0x218   :  { %177 = vst [vmem:[%s304_s5 + $0x8] sm:$0xff] %v170_v50  ;;  %v174_v54 = vadd.f32 %v173_v53, %v87_v46 }
 0x219   :  { %178 = vst [vmem:[%s304_s5 + $0x10] sm:$0xff] %v172_v52 }
 0x21a   :  { %179 = vst [vmem:[%s304_s5 + $0x18] sm:$0xff] %v174_v54 }

// kernel: _lambda_.24
= control target key start
LH: loop header
LB: loop body
LE: loop exit
PB: predicated region body
PF: predicated region fallthrough
CT: control target
= control target key end

     0   :  { %s630_s12 = smov 0   ;;  %s675_s0 = inlined_call_operand.vmem [shape: f32[2,2,8,32], index: 0, kind: input, shape index: {}]   ;;  %s676_s1 = inlined_call_operand.vmem [shape: f32[2,2,8,32], index: 1, kind: input, shape index: {}]   ;;  %s677_s2 = inlined_call_operand.vmem [shape: f32[2,2,8,32], index: 2, kind: input, shape index: {}]   ;;  %s678_s3 = inlined_call_operand.vmem [shape: f32[2,2,8,32], index: 3, kind: output, shape index: {}]  }
   0x1 LB: > { %s527_s13 = sadd.s32 4294967295, %s606_s12   ;;  %p531_p0 = scmp.ge.s32.totalorder %s606_s12, 1  ;;  %s606_s12 = sphi %s630_s12, %s13_s12  }
   0x2   : > { %p157_p1 = scmp.lt.s32.totalorder %s606_s12, 3 }
   0x4   : > { %p158_p2 = pnand %p531_p0, %p157_p1 }
   0x5   : > { %p191_p3 = scmp.lt.s32.totalorder (!%p158_p2), %s527_s13, 1  ;;  %v608_v0 = vmov (!%p158_p2), 0.0   ;;  %vm609_vm0 = vmmov (!%p158_p2), 0   ;;  %vm224_vm1 = vcmask (!%p158_p2), 261120   ;;  %v319_v11 = vlaneseq (!%p158_p2) }
   0x6   : > { %161 = sbr.rel (%p158_p2) target bundleno = 777 (0x309), region = 32  ;;  %558 = vmatprep.subr.bf16.mxu0 (!%p158_p2), %v608_v0  ;;  %564 = vmatprep.subr.bf16.mxu1 (!%p158_p2), %v608_v0  ;;  %vm328_vm3 = vcmask (!%p158_p2), 64512   ;;  %vm356_vm4 = vcmask (!%p158_p2), 1043456  }
   0x7   : > { %560 = vmatprep.mubr.msk.bf16.mxu0 (!%p158_p2), %vm609_vm0, %v608_v0  ;;  %566 = vmatprep.mubr.msk.bf16.mxu1 (!%p158_p2), %vm609_vm0, %v608_v0  ;;  %v320_v12 = vshrl.u32 (!%p158_p2), %v319_v11, 7  ;;  %v322_v13 = vand.u32 (!%p158_p2), 127, %v319_v11 }
   0x9   : > { %vm323_vm2 = vcmp.le.s32.totalorder (!%p158_p2), %v322_v13, %v320_v12 }
   0xd   : > { %s680_s13 = smov (!%p191_p3, %s527_s13), 1 }
   0xe   : > { %s640_s14 = sshll.u32 %s680_s13, 4 }
   0xf   : > { %s200_s17 = scalar_lea.vmem %s676_s1, %s640_s14  ;;  %s195_s20 = scalar_lea.vmem %s675_s0, %s640_s14 }
  0x10   : > { %v216_v1 = vld [vmem:[%s200_s17] sm:$0xff]  ;;  %v217_v2 = vld [vmem:[%s200_s17 + $0x8] sm:$0xff]  ;;  %s205_s23 = scalar_lea.vmem %s677_s2, %s640_s14  ;;  %s210_s26 = scalar_lea.vmem %s678_s3, %s640_s14 }
  0x11   : > { %v218_v3 = vpack.c.bf16 %v216_v1, %v216_v1  ;;  %v219_v4 = vpack.c.bf16 %v217_v2, %v217_v2  ;;  %v212_v7 = vld [vmem:[%s195_s20] sm:$0xff]  ;;  %v213_v8 = vld [vmem:[%s195_s20 + $0x8] sm:$0xff] }
  0x12   : > { %v214_v9 = vpack.c.bf16 %v212_v7, %v212_v7  ;;  %v215_v10 = vpack.c.bf16 %v213_v8, %v213_v8  ;;  %v220_v38 = vld [vmem:[%s205_s23] sm:$0xff]  ;;  %v221_v41 = vld [vmem:[%s205_s23 + $0x8] sm:$0xff] }
  0x13   : > { %v229_v5 = vsel %vm224_vm1, %v218_v3, 0  ;;  %v275_v6 = vsel %vm224_vm1, %v219_v4, 0  ;;  %v222_v39 = vpack.c.bf16 %v220_v38, %v220_v38  ;;  %v223_v42 = vpack.c.bf16 %v221_v41, %v221_v41 }
  0x14   : > { %559 = vmatpush3.bf16.xpose.msra.mxu0 %v229_v5  ;;  %565 = vmatpush3.bf16.xpose.msra.mxu1 %v275_v6 }
  0x15   : > { %570 = vmatprep.subr.bf16.mxu0 %v608_v0  ;;  %576 = vmatprep.subr.bf16.mxu1 %v608_v0  ;;  %v358_v40 = vsel %vm356_vm4, %v222_v39, 0  ;;  %v404_v43 = vsel %vm356_vm4, %v223_v42, 0 }
  0x1b   : > { %561 = vmatmul.mubr.msk.bf16.vlgmr.msra.gmra.mrb[0].mxu0 %vm224_vm1, %v214_v9  ;;  %567 = vmatmul.mubr.msk.bf16.vlgmr.msra.gmra.mrb[0].mxu1 %vm224_vm1, %v215_v10 }
  0x1c   : > { %572 = vmatprep.mubr.msk.bf16.mxu0 %vm609_vm0, %v608_v0  ;;  %578 = vmatprep.mubr.msk.bf16.mxu1 %vm609_vm0, %v608_v0 }
  0x1d   : > { %571 = vmatpush3.bf16.msra.mxu0 %v358_v40  ;;  %577 = vmatpush3.bf16.msra.mxu1 %v404_v43 }
  0xee   : > { %v265_v14 = vpop.f32.mrb[0].mxu0  ;;  %v311_v15 = vpop.f32.mrb[0].mxu1 }
  0xef   : > { %v317_v16 = vmul.f32 0.17677669, %v265_v14  ;;  %v562_v17 = vpop.f32.mrb[1].mxu0  ;;  %v318_v18 = vmul.f32 0.17677669, %v311_v15  ;;  %v568_v19 = vpop.f32.mrb[1].mxu1 }
  0xf0   : > { %v268_v20 = vpop.f32.mrb[2].mxu0  ;;  %v314_v21 = vpop.f32.mrb[2].mxu1 }
  0xf1   : > { %v563_v22 = vpop.f32.mrb[3].mxu0  ;;  %v569_v23 = vpop.f32.mrb[3].mxu1  ;;  %v326_v24 = vsel %vm323_vm2, %v317_v16, -1e+30  ;;  %v327_v25 = vsel %vm323_vm2, %v318_v18, -1e+30 }
  0xf2   : > { %v329_v26 = vsel %vm328_vm3, %v326_v24, -inf  ;;  %v332_v27 = vsel %vm328_vm3, %v327_v25, -inf }
  0xf3   : > { %330 = vmax.xlane.f32.xlu0 %v329_v26 }
  0xf7   : > { %333 = vmax.xlane.f32.xlu0 %v332_v27 }
 0x180   : > { %v331_v28 = vpop.xlane.xlu0 %330 }
 0x181   : > { %v335_v29 = vsub.f32 %v326_v24, %v331_v28 }
 0x183   : > { %v337_v30 = vmul.f32 1.442695, %v335_v29 }
 0x184   : > { %v334_v31 = vpop.xlane.xlu0 %333 }
 0x185   : > { %592 = vpow2.f32 %v337_v30  ;;  %v336_v32 = vsub.f32 %v327_v25, %v334_v31 }
 0x187   : > { %v339_v33 = vmul.f32 1.442695, %v336_v32 }
 0x189   : > { %594 = vpow2.f32 %v339_v33 }
 0x18f   : > { %v593_v34 = vpop.eup %592 }
 0x190   : > { %v341_v35 = vsel %vm328_vm3, %v593_v34, 0.0 }
 0x191   : > { %342 = vadd.xlane.f32.xlu1 %v341_v35 }
 0x193   : > { %v595_v36 = vpop.eup %594 }
 0x194   : > { %v344_v37 = vsel %vm328_vm3, %v595_v36, 0.0 }
 0x195   : > { %345 = vadd.xlane.f32.xlu1 %v344_v37 }
 0x21e   : > { %v343_v44 = vpop.xlane.xlu1 %342 }
 0x21f   : > { %596 = vrcp.f32 %v343_v44 }
 0x222   : > { %v346_v45 = vpop.xlane.xlu1 %345 }
 0x223   : > { %598 = vrcp.f32 %v346_v45 }
 0x229   : > { %v597_v46 = vpop.eup %596 }
 0x22a   : > { %v349_v47 = vmul.f32 %v597_v46, %v593_v34 }
 0x22c   : > { %v351_v48 = vpack.c.bf16 %v349_v47, %v349_v47 }
 0x22d   : > { %v599_v49 = vpop.eup %598 }
 0x22e   : > { %v350_v50 = vmul.f32 %v599_v49, %v595_v36  ;;  %573 = vmatmul.mubr.msk.bf16.vlgmr.msra.gmra.mrb[4].mxu0 %vm328_vm3, %v351_v48 }
 0x230   : > { %v352_v51 = vpack.c.bf16 %v350_v50, %v350_v50 }
 0x232   : > { %579 = vmatmul.mubr.msk.bf16.vlgmr.msra.gmra.mrb[4].mxu1 %vm328_vm3, %v352_v51 }
 0x301   : > { %v394_v52 = vpop.f32.mrb[4].mxu0 }
 0x302   : > { %446 = vst.msk [vmem:[%s210_s26] sm:$0xff] %vm224_vm1, %v394_v52  ;;  %v574_v53 = vpop.f32.mrb[5].mxu0 }
 0x303   : > { %v397_v54 = vpop.f32.mrb[6].mxu0 }
 0x304   : > { %v575_v55 = vpop.f32.mrb[7].mxu0 }
 0x305   : > { %v440_v56 = vpop.f32.mrb[4].mxu1 }
 0x306   : > { %447 = vst.msk [vmem:[%s210_s26 + $0x8] sm:$0xff] %vm224_vm1, %v440_v56  ;;  %v580_v57 = vpop.f32.mrb[5].mxu1 }
 0x307   : > { %v443_v58 = vpop.f32.mrb[6].mxu1 }
 0x308   : > { %v581_v59 = vpop.f32.mrb[7].mxu1 }
 0x309 PF: > { %s13_s12 = sadd.s32 1, %s606_s12  }
 0x30a   : > { %p10_p4 = scmp.ge.s32.totalorder %s13_s12, 4  }
 0x30c   :  { %12 = sbr.rel (!%p10_p4) target bundleno = 1 (0x1), region = 68 }

// kernel: _lambda_.25
= control target key start
LH: loop header
LB: loop body
LE: loop exit
PB: predicated region body
PF: predicated region fallthrough
CT: control target
= control target key end

     0   :  { %v210_v0 = vmov 0.0   ;;  %vm211_vm0 = vmmov 0   ;;  %s282_s1 = inlined_call_operand.vmem [shape: bf16[128,128], index: 1, kind: input, shape index: {}]   ;;  %s283_s0 = inlined_call_operand.vmem [shape: f32[16,128], index: 0, kind: input, shape index: {}]   ;;  %s284_s2 = inlined_call_operand.vmem [shape: f32[1,128], index: 2, kind: input, shape index: {}]   ;;  %s285_s3 = inlined_call_operand.vmem [shape: f32[16,128], index: 3, kind: input, shape index: {}]   ;;  %s286_s4 = inlined_call_operand.vmem [shape: f32[16,128], index: 4, kind: output, shape index: {}]  }
   0x1   :  { %180 = vmatprep.subr.bf16.mxu0 %v210_v0  ;;  %v202_v1 = vld [vmem:[%s282_s1] sm:$0xff]   ;;  %196 = vmatprep.mubr.msk.bf16.mxu0 %vm211_vm0, %v210_v0  ;;  %v203_v2 = vld [vmem:[%s282_s1 + $0x8] sm:$0xff]   ;;  %v204_v3 = vld [vmem:[%s282_s1 + $0x10] sm:$0xff]  }
   0x2   :  { %181 = vmatpush3.bf16.msra.mxu0 %v202_v1  ;;  %v205_v4 = vld [vmem:[%s282_s1 + $0x18] sm:$0xff]   ;;  %v206_v5 = vld [vmem:[%s282_s1 + $0x20] sm:$0xff]   ;;  %v207_v6 = vld [vmem:[%s282_s1 + $0x28] sm:$0xff]  }
   0x3   :  { %182 = vmatprep.subr.bf16.mxu0 %v210_v0  ;;  %v208_v7 = vld [vmem:[%s282_s1 + $0x30] sm:$0xff]   ;;  %v209_v8 = vld [vmem:[%s282_s1 + $0x38] sm:$0xff]   ;;  %v26_v9 = vld [vmem:[%s283_s0] sm:$0xff] }
   0x4   :  { %v27_v10 = vld [vmem:[%s283_s0 + $0x8] sm:$0xff]  ;;  %v170_v12 = vld [vmem:[%s284_s2] ss:$0 sm:$0xff] }
   0x5   :  { %v28_v11 = vpack.c.bf16 %v27_v10, %v26_v9  ;;  %v152_v14 = vld [vmem:[%s285_s3] sm:$0xff]  ;;  %v153_v18 = vld [vmem:[%s285_s3 + $0x8] sm:$0xff] }
   0x6   :  { %183 = vmatpush3.bf16.msra.mxu0 %v203_v2 }
   0x7   :  { %184 = vmatprep.subr.bf16.mxu0 %v210_v0 }
   0xa   :  { %185 = vmatpush3.bf16.msra.mxu0 %v204_v3 }
   0xb   :  { %186 = vmatprep.subr.bf16.mxu0 %v210_v0 }
   0xe   :  { %187 = vmatpush3.bf16.msra.mxu0 %v205_v4 }
   0xf   :  { %188 = vmatprep.subr.bf16.mxu0 %v210_v0 }
  0x12   :  { %189 = vmatpush3.bf16.msra.mxu0 %v206_v5 }
  0x13   :  { %190 = vmatprep.subr.bf16.mxu0 %v210_v0 }
  0x16   :  { %191 = vmatpush3.bf16.msra.mxu0 %v207_v6 }
  0x17   :  { %192 = vmatprep.subr.bf16.mxu0 %v210_v0 }
  0x1a   :  { %193 = vmatpush3.bf16.msra.mxu0 %v208_v7 }
  0x1b   :  { %194 = vmatprep.subr.bf16.mxu0 %v210_v0 }
  0x1e   :  { %195 = vmatpush3.bf16.msra.mxu0 %v209_v8 }
  0x21   :  { %197 = vmatmul.mubr.bf16.vlgmr.msra.gmra.mrb[0].mxu0 %v28_v11 }
  0xf4   :  { %v127_v13 = vpop.f32.mrb[0].mxu0 }
  0xf5   :  { %v150_v15 = vadd.f32 %v170_v12, %v127_v13  ;;  %v198_v16 = vpop.f32.mrb[1].mxu0 }
  0xf6   :  { %v130_v17 = vpop.f32.mrb[2].mxu0 }
  0xf7   :  { %v154_v19 = vadd.f32 %v152_v14, %v150_v15  ;;  %v151_v20 = vadd.f32 %v170_v12, %v130_v17  ;;  %v199_v21 = vpop.f32.mrb[3].mxu0 }
  0xf9   :  { %156 = vst [vmem:[%s286_s4] sm:$0xff] %v154_v19  ;;  %v155_v22 = vadd.f32 %v153_v18, %v151_v20 }
  0xfb   :  { %157 = vst [vmem:[%s286_s4 + $0x8] sm:$0xff] %v155_v22 }

// kernel: _lambda_.26
= control target key start
LH: loop header
LB: loop body
LE: loop exit
PB: predicated region body
PF: predicated region fallthrough
CT: control target
= control target key end

     0   :  { %vm23_vm0 = vcmask 523264   ;;  %v264_v22 = vmov 0   ;;  %v80_v40 = vlaneseq  ;;  %s351_s0 = inlined_call_operand.vmem [shape: f32[16,64], index: 0, kind: input, shape index: {}]   ;;  %s352_s3 = inlined_call_operand.vmem [shape: bf16[64,256], index: 3, kind: input, shape index: {}]   ;;  %s353_s1 = inlined_call_operand.vmem [shape: f32[1,64], index: 1, kind: input, shape index: {}]   ;;  %s354_s2 = inlined_call_operand.vmem [shape: f32[1,64], index: 2, kind: input, shape index: {}]   ;;  %s355_s4 = inlined_call_operand.vmem [shape: f32[1,256], index: 4, kind: input, shape index: {}]   ;;  %s356_s5 = inlined_call_operand.vmem [shape: f32[16,256], index: 5, kind: output, shape index: {}]  }
   0x1   :  { %v21_v0 = vld [vmem:[%s351_s0] sm:$0xff]  ;;  %v22_v1 = vld [vmem:[%s351_s0 + $0x8] sm:$0xff]  ;;  %v235_v16 = vld [vmem:[%s352_s3 + $0x14] ss:$8 sps:$4 sm:$0xff]   ;;  %165 = vmatprep.mubr.bf16.mxu0 %v264_v22 }
   0x2   :  { %v24_v2 = vsel %vm23_vm0, %v21_v0, 0.0  ;;  %v27_v3 = vsel %vm23_vm0, %v22_v1, 0.0  ;;  %v232_v14 = vld [vmem:[%s352_s3 + $0x4] ss:$8 sps:$4 sm:$0xff]   ;;  %v234_v15 = vld [vmem:[%s352_s3] ss:$8 sps:$4 sm:$0xff]  }
   0x3   :  { %25 = vadd.xlane.f32.xlu0 %v24_v2  ;;  %133 = vmatprep.subr.bf16.mxu0 %v232_v14  ;;  %v237_v17 = vld [vmem:[%s352_s3 + $0x10] ss:$8 sps:$4 sm:$0xff]   ;;  %v238_v18 = vld [vmem:[%s352_s3 + $0x24] ss:$8 sps:$4 sm:$0xff]   ;;  %v240_v19 = vld [vmem:[%s352_s3 + $0x20] ss:$8 sps:$4 sm:$0xff]  }
   0x4   :  { %134 = vmatpush1.bf16.msra.mxu0 %v234_v15  ;;  %v241_v20 = vld [vmem:[%s352_s3 + $0x34] ss:$8 sps:$4 sm:$0xff]   ;;  %v243_v21 = vld [vmem:[%s352_s3 + $0x30] ss:$8 sps:$4 sm:$0xff]   ;;  %v216_v31 = vld [vmem:[%s353_s1] ss:$0 sm:$0xff] }
   0x5   :  { %135 = vmatprep.subr.bf16.mxu0 %v235_v16  ;;  %v217_v35 = vld [vmem:[%s354_s2] ss:$0 sm:$0xff]  ;;  %v81_v41 = vshrl.u32 %v80_v40, 7 }
   0x6   :  { %v78_v43 = vld [vmem:[%s355_s4] sm:$0x3] }
   0x7   :  { %28 = vadd.xlane.f32.xlu0 %v27_v3  ;;  %v82_v42 = vsub.s32 0, %v81_v41  ;;  %v86_v44 = vsub.s32 1, %v81_v41 }
   0x8   :  { %136 = vmatpush1.bf16.msra.mxu0 %v237_v17 }
   0x9   :  { %137 = vmatprep.subr.bf16.mxu0 %v238_v18  ;;  %v83_v45 = vrot.slane %v78_v43, %v82_v42  ;;  %v87_v46 = vrot.slane %v78_v43, %v86_v44 }
   0xc   :  { %138 = vmatpush1.bf16.msra.mxu0 %v240_v19 }
   0xd   :  { %139 = vmatprep.subr.bf16.mxu0 %v241_v20 }
  0x10   :  { %140 = vmatpush1.bf16.msra.mxu0 %v243_v21 }
  0x90   :  { %v26_v4 = vpop.xlane.xlu0 %25 }
  0x91   :  { %v31_v5 = vmul.f32 0.015625, %v26_v4 }
  0x93   :  { %v33_v6 = vsub.f32 %v21_v0, %v31_v5 }
  0x94   :  { %v29_v7 = vpop.xlane.xlu0 %28 }
  0x95   :  { %v32_v8 = vmul.f32 0.015625, %v29_v7  ;;  %v35_v9 = vmul.f32 %v33_v6, %v33_v6 }
  0x97   :  { %v34_v10 = vsub.f32 %v22_v1, %v32_v8  ;;  %v37_v11 = vsel %vm23_vm0, %v35_v9, 0.0 }
  0x98   :  { %38 = vadd.xlane.f32.xlu1 %v37_v11 }
  0x99   :  { %v36_v12 = vmul.f32 %v34_v10, %v34_v10 }
  0x9b   :  { %v40_v13 = vsel %vm23_vm0, %v36_v12, 0.0 }
  0x9c   :  { %41 = vadd.xlane.f32.xlu1 %v40_v13 }
 0x125   :  { %v39_v23 = vpop.xlane.xlu1 %38 }
 0x126   :  { %v43_v24 = vmul.f32 0.015625, %v39_v23 }
 0x128   :  { %v45_v25 = vadd.f32 1e-05, %v43_v24 }
 0x129   :  { %v42_v26 = vpop.xlane.xlu1 %41 }
 0x12a   :  { %244 = vrsqrt.f32 %v45_v25  ;;  %v44_v27 = vmul.f32 0.015625, %v42_v26 }
 0x12c   :  { %v46_v28 = vadd.f32 1e-05, %v44_v27 }
 0x12e   :  { %246 = vrsqrt.f32 %v46_v28 }
 0x134   :  { %v245_v29 = vpop.eup %244 }
 0x135   :  { %v49_v30 = vmul.f32 %v245_v29, %v33_v6 }
 0x137   :  { %v58_v34 = vmul.f32 %v216_v31, %v49_v30 }
 0x138   :  { %v247_v32 = vpop.eup %246 }
 0x139   :  { %v50_v33 = vmul.f32 %v247_v32, %v34_v10  ;;  %v67_v37 = vadd.f32 %v217_v35, %v58_v34 }
 0x13b   :  { %v59_v36 = vmul.f32 %v216_v31, %v50_v33 }
 0x13d   :  { %v68_v38 = vadd.f32 %v217_v35, %v59_v36 }
 0x13f   :  { %v69_v39 = vpack.c.bf16 %v68_v38, %v67_v37 }
 0x141   :  { %226 = vmatmul.mubr.msk.bf16.vlgmr.msra.gmra.mrb[0].mxu0 %vm23_vm0, %v69_v39 }
 0x214   :  { %v167_v47 = vpop.f32.mrb[0].mxu0 }
 0x215   :  { %v168_v48 = vadd.f32 %v167_v47, %v83_v45  ;;  %v169_v49 = vpop.f32.mrb[1].mxu0 }
 0x216   :  { %v170_v50 = vadd.f32 %v169_v49, %v87_v46  ;;  %v171_v51 = vpop.f32.mrb[2].mxu0 }
 0x217   :  { %v227_v52 = vmul.f32 -1.702, %v168_v48  ;;  %v172_v53 = vadd.f32 %v171_v51, %v83_v45  ;;  %v173_v54 = vpop.f32.mrb[3].mxu0 }
 0x218   :  { %v228_v55 = vmul.f32 -1.702, %v170_v50  ;;  %v174_v56 = vadd.f32 %v173_v54, %v87_v46 }
 0x219   :  { %v184_v57 = vmul.f32 1.442695, %v227_v52  ;;  %v229_v58 = vmul.f32 -1.702, %v172_v53 }
 0x21a   :  { %v186_v59 = vmul.f32 1.442695, %v228_v55  ;;  %v230_v60 = vmul.f32 -1.702, %v174_v56 }
 0x21b   :  { %248 = vpow2.f32 %v184_v57  ;;  %v188_v61 = vmul.f32 1.442695, %v229_v58 }
 0x21c   :  { %250 = vpow2.f32 %v186_v59  ;;  %v190_v62 = vmul.f32 1.442695, %v230_v60 }
 0x21d   :  { %252 = vpow2.f32 %v188_v61 }
 0x21e   :  { %254 = vpow2.f32 %v190_v62 }
 0x225   :  { %v249_v63 = vpop.eup %248 }
 0x226   :  { %v251_v0 = vpop.eup %250  ;;  %v192_v1 = vadd.f32 1.0, %v249_v63 }
 0x227   :  { %v253_v2 = vpop.eup %252  ;;  %v193_v3 = vadd.f32 1.0, %v251_v0 }
 0x228   :  { %v255_v4 = vpop.eup %254  ;;  %256 = vrcp.f32 %v192_v1  ;;  %v194_v5 = vadd.f32 1.0, %v253_v2 }
 0x229   :  { %258 = vrcp.f32 %v193_v3  ;;  %v195_v6 = vadd.f32 1.0, %v255_v4 }
 0x22a   :  { %260 = vrcp.f32 %v194_v5 }
 0x22b   :  { %262 = vrcp.f32 %v195_v6 }
 0x232   :  { %v257_v7 = vpop.eup %256 }
 0x233   :  { %v259_v8 = vpop.eup %258  ;;  %v204_v9 = vmul.f32 %v257_v7, %v168_v48 }
 0x234   :  { %v261_v10 = vpop.eup %260  ;;  %v205_v11 = vmul.f32 %v259_v8, %v170_v50 }
 0x235   :  { %v263_v12 = vpop.eup %262  ;;  %208 = vst [vmem:[%s356_s5] sm:$0xff] %v204_v9  ;;  %v206_v13 = vmul.f32 %v261_v10, %v172_v53 }
 0x236   :  { %209 = vst [vmem:[%s356_s5 + $0x8] sm:$0xff] %v205_v11  ;;  %v207_v14 = vmul.f32 %v263_v12, %v174_v56 }
 0x237   :  { %210 = vst [vmem:[%s356_s5 + $0x10] sm:$0xff] %v206_v13 }
 0x238   :  { %211 = vst [vmem:[%s356_s5 + $0x18] sm:$0xff] %v207_v14 }

// kernel: _lambda_.28
= control target key start
LH: loop header
LB: loop body
LE: loop exit
PB: predicated region body
PF: predicated region fallthrough
CT: control target
= control target key end

     0   :  { %vm19_vm0 = vcmask 523264   ;;  %v163_v8 = vmov 0.0   ;;  %vm164_vm1 = vmmov 0   ;;  %s217_s0 = inlined_call_operand.vmem [shape: f32[8,64], index: 0, kind: input, shape index: {}]   ;;  %s218_s3 = inlined_call_operand.vmem [shape: bf16[64,128], index: 3, kind: input, shape index: {}]   ;;  %s219_s1 = inlined_call_operand.vmem [shape: f32[1,64], index: 1, kind: input, shape index: {}]   ;;  %s220_s2 = inlined_call_operand.vmem [shape: f32[1,64], index: 2, kind: input, shape index: {}]   ;;  %s221_s4 = inlined_call_operand.vmem [shape: f32[8,128], index: 4, kind: output, shape index: {}]  }
   0x1   :  { %v18_v0 = vld [vmem:[%s217_s0] sm:$0xff]  ;;  %143 = vmatprep.subr.bf16.mxu0 %v163_v8  ;;  %v158_v9 = vld [vmem:[%s218_s3 + $0x8] sm:$0xff]   ;;  %v159_v10 = vld [vmem:[%s218_s3 + $0x10] sm:$0xff]   ;;  %151 = vmatprep.mubr.msk.bf16.mxu0 %vm164_vm1, %v163_v8 }
   0x2   :  { %v20_v1 = vsel %vm19_vm0, %v18_v0, 0.0  ;;  %v157_v7 = vld [vmem:[%s218_s3] sm:$0xff]   ;;  %v160_v11 = vld [vmem:[%s218_s3 + $0x18] sm:$0xff]  }
   0x3   :  { %21 = vadd.xlane.f32.xlu0 %v20_v1  ;;  %144 = vmatpush3.bf16.msra.mxu0 %v157_v7  ;;  %v131_v16 = vld [vmem:[%s219_s1] ss:$0 sm:$0xff] }
   0x4   :  { %145 = vmatprep.subr.bf16.mxu0 %v163_v8  ;;  %v132_v18 = vld [vmem:[%s220_s2] ss:$0 sm:$0xff] }
   0x7   :  { %146 = vmatpush3.bf16.msra.mxu0 %v158_v9 }
   0x8   :  { %147 = vmatprep.subr.bf16.mxu0 %v163_v8 }
   0xb   :  { %148 = vmatpush3.bf16.msra.mxu0 %v159_v10 }
   0xc   :  { %149 = vmatprep.subr.bf16.mxu0 %v163_v8 }
   0xf   :  { %150 = vmatpush3.bf16.msra.mxu0 %v160_v11 }
  0x90   :  { %v22_v2 = vpop.xlane.xlu0 %21 }
  0x91   :  { %v24_v3 = vmul.f32 0.015625, %v22_v2 }
  0x93   :  { %v25_v4 = vsub.f32 %v18_v0, %v24_v3 }
  0x95   :  { %v26_v5 = vmul.f32 %v25_v4, %v25_v4 }
  0x97   :  { %v27_v6 = vsel %vm19_vm0, %v26_v5, 0.0 }
  0x98   :  { %28 = vadd.xlane.f32.xlu0 %v27_v6 }
 0x125   :  { %v29_v12 = vpop.xlane.xlu0 %28 }
 0x126   :  { %v30_v13 = vmul.f32 0.015625, %v29_v12 }
 0x128   :  { %v31_v14 = vadd.f32 1e-05, %v30_v13 }
 0x12a   :  { %161 = vrsqrt.f32 %v31_v14 }
 0x134   :  { %v162_v15 = vpop.eup %161 }
 0x135   :  { %v33_v17 = vmul.f32 %v162_v15, %v25_v4 }
 0x137   :  { %v41_v19 = vmul.f32 %v131_v16, %v33_v17 }
 0x139   :  { %v49_v20 = vadd.f32 %v132_v18, %v41_v19 }
 0x13b   :  { %v50_v21 = vpack.c.bf16 %v49_v20, %v49_v20 }
 0x13d   :  { %152 = vmatmul.mubr.msk.bf16.vlgmr.msra.gmra.mrb[0].mxu0 %vm19_vm0, %v50_v21 }
 0x210   :  { %v120_v22 = vpop.f32.mrb[0].mxu0 }
 0x211   :  { %126 = vst [vmem:[%s221_s4] sm:$0xff] %v120_v22  ;;  %v153_v23 = vpop.f32.mrb[1].mxu0 }
 0x212   :  { %v123_v24 = vpop.f32.mrb[2].mxu0 }
 0x213   :  { %v154_v25 = vpop.f32.mrb[3].mxu0 }

// kernel: _lambda_.27
= control target key start
LH: loop header
LB: loop body
LE: loop exit
PB: predicated region body
PF: predicated region fallthrough
CT: control target
= control target key end

     0   :  { %s384_s1 = inlined_call_operand.vmem [shape: bf16[256,128], index: 1, kind: input, shape index: {}]   ;;  %s385_s0 = inlined_call_operand.vmem [shape: f32[16,256], index: 0, kind: input, shape index: {}]   ;;  %s386_s2 = inlined_call_operand.vmem [shape: f32[1,128], index: 2, kind: input, shape index: {}]   ;;  %s387_s3 = inlined_call_operand.vmem [shape: f32[16,128], index: 3, kind: input, shape index: {}]   ;;  %s388_s4 = inlined_call_operand.vmem [shape: f32[16,128], index: 4, kind: output, shape index: {}]  }
   0x1   :  { %v268_v0 = vld [vmem:[%s384_s1 + $0x40] sm:$0xff]   ;;  %v270_v2 = vld [vmem:[%s384_s1 + $0x48] sm:$0xff]   ;;  %v272_v4 = vld [vmem:[%s384_s1 + $0x50] sm:$0xff]  }
   0x2   :  { %v269_v1 = vld [vmem:[%s384_s1] sm:$0xff]   ;;  %246 = vmatprep.subr.bf16.mxu0 %v268_v0  ;;  %v271_v3 = vld [vmem:[%s384_s1 + $0x8] sm:$0xff]   ;;  %v273_v5 = vld [vmem:[%s384_s1 + $0x10] sm:$0xff]  }
   0x3   :  { %247 = vmatpush3.bf16.msra.mxu0 %v269_v1  ;;  %v274_v6 = vld [vmem:[%s384_s1 + $0x58] sm:$0xff]   ;;  %v276_v8 = vld [vmem:[%s384_s1 + $0x60] sm:$0xff]   ;;  %v278_v10 = vld [vmem:[%s384_s1 + $0x68] sm:$0xff]  }
   0x4   :  { %248 = vmatprep.subr.bf16.mxu0 %v270_v2  ;;  %v275_v7 = vld [vmem:[%s384_s1 + $0x18] sm:$0xff]   ;;  %v277_v9 = vld [vmem:[%s384_s1 + $0x20] sm:$0xff]   ;;  %v27_v11 = vld [vmem:[%s385_s0 + $0x8] sm:$0xff] }
   0x5   :  { %v29_v12 = vld [vmem:[%s385_s0 + $0x18] sm:$0xff]  ;;  %v279_v14 = vld [vmem:[%s384_s1 + $0x28] sm:$0xff]   ;;  %v280_v15 = vld [vmem:[%s384_s1 + $0x70] sm:$0xff]  }
   0x6   :  { %v31_v13 = vpack.c.bf16 %v29_v12, %v27_v11  ;;  %v281_v16 = vld [vmem:[%s384_s1 + $0x30] sm:$0xff]   ;;  %v282_v17 = vld [vmem:[%s384_s1 + $0x78] sm:$0xff]   ;;  %v26_v19 = vld [vmem:[%s385_s0] sm:$0xff] }
   0x7   :  { %249 = vmatpush3.bf16.msra.mxu0 %v271_v3  ;;  %v283_v18 = vld [vmem:[%s384_s1 + $0x38] sm:$0xff]   ;;  %v28_v20 = vld [vmem:[%s385_s0 + $0x10] sm:$0xff]  ;;  %v245_v24 = vld [vmem:[%s386_s2] ss:$0 sm:$0xff] }
   0x8   :  { %250 = vmatprep.subr.bf16.mxu0 %v272_v4  ;;  %192 = vmatprep.mubr.bf16.mxu0 %v31_v13  ;;  %v30_v21 = vpack.c.bf16 %v28_v20, %v26_v19  ;;  %v219_v27 = vld [vmem:[%s387_s3] sm:$0xff]  ;;  %v220_v31 = vld [vmem:[%s387_s3 + $0x8] sm:$0xff] }
   0xb   :  { %251 = vmatpush3.bf16.msra.mxu0 %v273_v5 }
   0xc   :  { %252 = vmatprep.subr.bf16.mxu0 %v274_v6 }
   0xf   :  { %253 = vmatpush3.bf16.msra.mxu0 %v275_v7 }
  0x10   :  { %254 = vmatprep.subr.bf16.mxu0 %v276_v8 }
  0x13   :  { %255 = vmatpush3.bf16.msra.mxu0 %v277_v9 }
  0x14   :  { %256 = vmatprep.subr.bf16.mxu0 %v278_v10 }
  0x17   :  { %257 = vmatpush3.bf16.msra.mxu0 %v279_v14 }
  0x18   :  { %258 = vmatprep.subr.bf16.mxu0 %v280_v15 }
  0x1b   :  { %259 = vmatpush3.bf16.msra.mxu0 %v281_v16 }
  0x1c   :  { %260 = vmatprep.subr.bf16.mxu0 %v282_v17 }
  0x1f   :  { %261 = vmatpush3.bf16.msra.mxu0 %v283_v18 }
  0x22   :  { %193 = vmatmul.mubr.bf16.vlgmr.msra.gmra.mrb[0].mxu0 %v30_v21 }
  0xf5   :  { %v262_v22 = vpop.f32.mrb[0].mxu0 }
  0xf6   :  { %v263_v23 = vpop.f32.mrb[1].mxu0 }
  0xf7   :  { %v264_v25 = vadd.f32 %v263_v23, %v262_v22  ;;  %v265_v26 = vpop.f32.mrb[2].mxu0 }
  0xf8   :  { %v266_v28 = vpop.f32.mrb[3].mxu0 }
  0xf9   :  { %v217_v29 = vadd.f32 %v264_v25, %v245_v24  ;;  %v267_v30 = vadd.f32 %v266_v28, %v265_v26 }
  0xfb   :  { %v221_v32 = vadd.f32 %v219_v27, %v217_v29  ;;  %v218_v33 = vadd.f32 %v267_v30, %v245_v24 }
  0xfd   :  { %223 = vst [vmem:[%s388_s4] sm:$0xff] %v221_v32  ;;  %v222_v34 = vadd.f32 %v220_v31, %v218_v33 }
  0xff   :  { %224 = vst [vmem:[%s388_s4 + $0x8] sm:$0xff] %v222_v34 }

// kernel: _lambda_.29
= control target key start
LH: loop header
LB: loop body
LE: loop exit
PB: predicated region body
PF: predicated region fallthrough
CT: control target
= control target key end

     0   :  { %vm10_vm0 = vcmask 261120   ;;  %s50_s0 = inlined_call_operand.vmem [shape: f32[8,32], index: 0, kind: input, shape index: {}]   ;;  %s51_s1 = inlined_call_operand.vmem [shape: f32[8,32], index: 1, kind: output, shape index: {}]  }
   0x1   :  { %v8_v0 = vld [vmem:[%s50_s0] sm:$0xff] }
   0x2   :  { %v9_v1 = vmul.f32 %v8_v0, %v8_v0 }
   0x4   :  { %v11_v2 = vsel %vm10_vm0, %v9_v1, 0.0 }
   0x5   :  { %12 = vadd.xlane.f32.xlu0 %v11_v2 }
  0x92   :  { %v13_v3 = vpop.xlane.xlu0 %12 }
  0x93   :  { %28 = vrsqrt.f32 %v13_v3  ;;  %vm16_vm1 = vcmp.eq.f32.partialorder %v13_v3, inf  ;;  %v19_v6 = vand.u32 2147483648, %v13_v3  ;;  %vm18_vm2 = vcmp.eq.f32.partialorder %v13_v3, 0.0 }
  0x9d   :  { %v29_v4 = vpop.eup %28 }
  0x9e   :  { %v15_v5 = vmul.f32 %v29_v4, %v13_v3 }
  0xa0   :  { %v17_v7 = vsel %vm16_vm1, %v13_v3, %v15_v5 }
  0xa1   :  { %v20_v8 = vsel %vm18_vm2, %v19_v6, %v17_v7 }
  0xa2   :  { %30 = vrcp.f32 %v20_v8 }
  0xac   :  { %v31_v9 = vpop.eup %30 }
  0xad   :  { %v22_v10 = vmul.f32 %v31_v9, %v8_v0 }
  0xaf   :  { %23 = vst.msk [vmem:[%s51_s1] sm:$0xff] %vm10_vm0, %v22_v10 }

</bundles_post_ra>
